<compile_context>
chip_gen: v7x
topology: tpu7x:2x2x1
jax: 0.10.0
libtpu: 0.0.40
codegen_flags: <defaults>
</compile_context>

<pallas_src>
import functools

import jax
import jax.numpy as jnp
from jax import lax
from jax.experimental import pallas as pl
from jax.experimental.pallas import tpu as pltpu

LANES = 128


def _flow_kernel(x_ref, cond_ref, trans_ref, inv_ref,
                 w1_ref, b1_ref, w2s_ref, b2s_ref, w2t_ref, b2t_ref,
                 xo_ref, ldj_ref, *, batch, nodes):
    """All T transforms in one invocation; x / ldj are vreg loop carries."""
    T = cond_ref.shape[0]
    BN, P = x_ref.shape

    def body(t, carry):
        x, ldj = carry
        cm = cond_ref[t]                      # (BN, P) conditioner & real nodes
        tm = trans_ref[t]                     # (BN, P) transformed & real nodes

        # conditioner MLP: lane-aligned 128x128 MXU matmuls
        xc = x * cm
        h = jnp.tanh(jnp.dot(xc, w1_ref[t],
                             preferred_element_type=jnp.float32) + b1_ref[t])
        h = h * cm

        # masked mean-pool context per sample; nodes == 8 aligns with sublane
        # tiles so the (BN,P) <-> (B,N,P) reshapes are layout-preserving
        hb = h.reshape(batch, nodes, P)
        ctx = jnp.sum(hb, axis=1, keepdims=True) * inv_ref[t]     # (B, 1, P)
        hh = (hb + ctx).reshape(BN, P)

        # two lane-aligned heads: bounded log-scale and shift
        s = jnp.tanh(jnp.dot(hh, w2s_ref[t],
                             preferred_element_type=jnp.float32)
                     + b2s_ref[t]) * tm
        shift = (jnp.dot(hh, w2t_ref[t],
                         preferred_element_type=jnp.float32)
                 + b2t_ref[t]) * tm

        # affine coupling on the transformed partition (3-op form)
        x_new = x + tm * (x * (jnp.exp(s) - 1.0) + shift)
        return x_new, ldj + s

    x0 = x_ref[...]
    ldj0 = jnp.zeros((BN, P), jnp.float32)
    x_fin, ldj_fin = lax.fori_loop(0, T, body, (x0, ldj0), unroll=True)
    xo_ref[...] = x_fin
    ldj_ref[...] = ldj_fin


def flow_forward(x, mask, cmask, w1, b1, w2s, b2s, w2t, b2t):
    """x: (B, N, F), mask: (B, N, 1), cmask: (T, N, 1); params stacked on T."""
    B, N, F = x.shape
    T = cmask.shape[0]
    H = w1.shape[-1]
    P = LANES
    BN = B * N

    # ---- wrapper-side layout plumbing (lane-dense, zero-padded) ----
    x_pad = jnp.zeros((BN, P), jnp.float32).at[:, :F].set(
        x.reshape(BN, F).astype(jnp.float32))

    node_m = mask.reshape(B, N).astype(jnp.float32)              # (B, N)
    cmt = cmask.reshape(T, 1, N).astype(jnp.float32)             # (T, 1, N)
    cond = cmt * node_m[None]                                    # (T, B, N)
    trans = (1.0 - cmt) * node_m[None]                           # (T, B, N)
    cond_mask = jnp.broadcast_to(cond.reshape(T, BN, 1), (T, BN, P))
    trans_mask = jnp.broadcast_to(trans.reshape(T, BN, 1), (T, BN, P))
    # masked mean-pool 1/denominator, guarded against empty conditioner sets
    inv_cnt = 1.0 / jnp.maximum(jnp.sum(cond, axis=2), 1.0)      # (T, B)
    inv_cnt = jnp.broadcast_to(inv_cnt[:, :, None, None], (T, B, 1, P))

    def pad_w(w, r, c):
        return jnp.zeros((T, P, P), jnp.float32).at[:, :r, :c].set(w)

    w1p = pad_w(w1, F, H)
    w2sp = pad_w(w2s, H, F)
    w2tp = pad_w(w2t, H, F)
    b1p = jnp.zeros((T, 1, P), jnp.float32).at[:, :, :H].set(b1)
    b2sp = jnp.zeros((T, 1, P), jnp.float32).at[:, :, :F].set(b2s)
    b2tp = jnp.zeros((T, 1, P), jnp.float32).at[:, :, :F].set(b2t)

    kernel = functools.partial(_flow_kernel, batch=B, nodes=N)
    vspec = pl.BlockSpec(memory_space=pltpu.MemorySpace.VMEM)

    out_x, ldj_acc = pl.pallas_call(
        kernel,
        out_shape=(jax.ShapeDtypeStruct((BN, P), jnp.float32),
                   jax.ShapeDtypeStruct((BN, P), jnp.float32)),
        in_specs=[vspec] * 10,
        out_specs=(vspec, vspec),
        input_output_aliases={0: 0},      # x_pad buffer is reused for out_x
        compiler_params=pltpu.CompilerParams(
            vmem_limit_bytes=32 * 1024 * 1024),
    )(x_pad, cond_mask, trans_mask, inv_cnt,
      w1p, b1p, w2sp, b2sp, w2tp, b2tp)

    out = out_x[:, :F].reshape(B, N, F)
    log_prob = ldj_acc.reshape(B, N, P).sum(axis=(1, 2))
    return out, log_prob


def _flow_reference(x, mask, cmask, w1, b1, w2s, b2s, w2t, b2t):
    """Pure-JAX reference of the same stand-in transform math."""
    T = cmask.shape[0]
    hi = jax.lax.Precision.HIGHEST
    ldj = jnp.zeros((x.shape[0],), jnp.float32)
    for t in range(T):
        cm = cmask[t][None] * mask                      # (B, N, 1)
        tm = (1.0 - cmask[t][None]) * mask
        xc = x * cm
        h = jnp.tanh(jnp.einsum('bnf,fh->bnh', xc, w1[t], precision=hi)
                     + b1[t]) * cm
        denom = jnp.maximum(jnp.sum(cm, axis=1, keepdims=True), 1.0)
        ctx = jnp.sum(h, axis=1, keepdims=True) / denom
        hh = h + ctx
        s = jnp.tanh(jnp.einsum('bnh,hf->bnf', hh, w2s[t], precision=hi)
                     + b2s[t]) * tm
        shift = (jnp.einsum('bnh,hf->bnf', hh, w2t[t], precision=hi)
                 + b2t[t]) * tm
        x = x * (1.0 - tm) + (x * jnp.exp(s) + shift) * tm
        ldj = ldj + jnp.sum(s, axis=(1, 2))
    return x, ldj


def make_partition_masks(block_size, max_nodes):
    """Per-transform conditioner masks over the node axis.

    transform 0          : FuseFlow stand-in       -> even nodes condition
    transforms 1..bs     : partition_size = 3 blocks
    transforms bs+1..bs+2: partition_size = 2 blocks
    """
    idx = jnp.arange(max_nodes)
    masks = [(idx % 2 == 0).astype(jnp.float32)]
    for t in range(block_size):
        masks.append((idx % 3 == (t % 3)).astype(jnp.float32))
    for t in range(2):
        masks.append((idx % 2 == (t % 2)).astype(jnp.float32))
    return jnp.stack(masks)[:, :, None]                  # (T, N, 1)


def make_flow_params(key, num_transforms, feat, hidden):
    k1, k2, k3 = jax.random.split(key, 3)
    w1 = 0.2 * jax.random.normal(k1, (num_transforms, feat, hidden), jnp.float32)
    b1 = jnp.zeros((num_transforms, 1, hidden), jnp.float32)
    w2s = 0.2 * jax.random.normal(k2, (num_transforms, hidden, feat), jnp.float32)
    b2s = jnp.zeros((num_transforms, 1, feat), jnp.float32)
    w2t = 0.2 * jax.random.normal(k3, (num_transforms, hidden, feat), jnp.float32)
    b2t = jnp.zeros((num_transforms, 1, feat), jnp.float32)
    return w1, b1, w2s, b2s, w2t, b2t


if __name__ == "__main__":
    # Small shapes consistent with the module (scaled down): batch=2,
    # max_nodes=8, num_classes=6, euclidean_dim=3 -> F=9, hidden=32,
    # block_size=6 -> T = 1 + 6 + 2 = 9 transforms.
    B, N, NUM_CLASSES, EUCLID, HIDDEN, BLOCK_SIZE = 2, 8, 6, 3, 32, 6
    F = NUM_CLASSES + EUCLID

    key = jax.random.PRNGKey(0)
    kx, kp = jax.random.split(key)

    x = jax.random.normal(kx, (B, N, F), jnp.float32)
    mask = jnp.ones((B, N, 1), jnp.float32).at[1, N - 1, 0].set(0.0)

    cmask = make_partition_masks(BLOCK_SIZE, N)          # (T, N, 1)
    params = make_flow_params(kp, cmask.shape[0], F, HIDDEN)

    fwd = jax.jit(flow_forward)
    out_x, log_prob = fwd(x, mask, cmask, *params)
    jax.block_until_ready((out_x, log_prob))

    ref_x, ref_lp = _flow_reference(x, mask, cmask, *params)

    assert out_x.shape == (B, N, F)
    assert log_prob.shape == (B,)
    assert bool(jnp.all(jnp.isfinite(out_x)))
    assert bool(jnp.all(jnp.isfinite(log_prob)))
    assert bool(jnp.allclose(out_x, ref_x, atol=5e-2, rtol=5e-2))
    assert bool(jnp.allclose(log_prob, ref_lp, atol=5e-2, rtol=5e-2))
    print("KERNEL_OK")
</pallas_src>

<mosaic_0001>
module attributes {stable_mosaic.version = 11 : i64} {
  func.func @_flow_kernel(%arg0: memref<16x128xf32, #tpu.memory_space<vmem>>, %arg1: memref<9x16x128xf32, #tpu.memory_space<vmem>>, %arg2: memref<9x16x128xf32, #tpu.memory_space<vmem>>, %arg3: memref<9x2x1x128xf32, #tpu.memory_space<vmem>>, %arg4: memref<9x128x128xf32, #tpu.memory_space<vmem>>, %arg5: memref<9x1x128xf32, #tpu.memory_space<vmem>>, %arg6: memref<9x128x128xf32, #tpu.memory_space<vmem>>, %arg7: memref<9x1x128xf32, #tpu.memory_space<vmem>>, %arg8: memref<9x128x128xf32, #tpu.memory_space<vmem>>, %arg9: memref<9x1x128xf32, #tpu.memory_space<vmem>>, %arg10: memref<16x128xf32, #tpu.memory_space<vmem>>, %arg11: memref<16x128xf32, #tpu.memory_space<vmem>>) attributes {dimension_semantics = [], scalar_prefetch = 0 : i64, scratch_operands = 0 : i64, tpu.core_type = #tpu.core_type<tc>} {
    %c0 = arith.constant 0 : index
    %c0_0 = arith.constant 0 : index
    %0 = vector.load %arg0[%c0, %c0_0] : memref<16x128xf32, #tpu.memory_space<vmem>>, vector<16x128xf32>
    %cst = arith.constant 0.000000e+00 : f32
    %1 = vector.broadcast %cst : f32 to vector<16x128xf32>
    %c0_i32 = arith.constant 0 : i32
    %2 = arith.index_cast %c0_i32 : i32 to index
    %c0_1 = arith.constant 0 : index
    %c0_2 = arith.constant 0 : index
    %3 = vector.load %arg1[%2, %c0_1, %c0_2] : memref<9x16x128xf32, #tpu.memory_space<vmem>>, vector<1x16x128xf32>
    %4 = vector.shape_cast %3 : vector<1x16x128xf32> to vector<16x128xf32>
    %5 = arith.index_cast %c0_i32 : i32 to index
    %c0_3 = arith.constant 0 : index
    %c0_4 = arith.constant 0 : index
    %6 = vector.load %arg2[%5, %c0_3, %c0_4] : memref<9x16x128xf32, #tpu.memory_space<vmem>>, vector<1x16x128xf32>
    %7 = vector.shape_cast %6 : vector<1x16x128xf32> to vector<16x128xf32>
    %8 = arith.mulf %0, %4 : vector<16x128xf32>
    %9 = arith.index_cast %c0_i32 : i32 to index
    %c0_5 = arith.constant 0 : index
    %c0_6 = arith.constant 0 : index
    %10 = vector.load %arg4[%9, %c0_5, %c0_6] : memref<9x128x128xf32, #tpu.memory_space<vmem>>, vector<1x128x128xf32>
    %11 = vector.shape_cast %10 : vector<1x128x128xf32> to vector<128x128xf32>
    %cst_7 = arith.constant dense<0.000000e+00> : vector<16x128xf32>
    %12 = tpu.matmul %8, %11, %cst_7 {dimension_numbers = #tpu.dot_dimension_numbers<[1], [0], [0], [1], [0, 0, 1, 1], [], []>} : vector<16x128xf32>, vector<128x128xf32>, vector<16x128xf32> -> vector<16x128xf32>
    %13 = arith.index_cast %c0_i32 : i32 to index
    %c0_8 = arith.constant 0 : index
    %c0_9 = arith.constant 0 : index
    %14 = vector.load %arg5[%13, %c0_8, %c0_9] : memref<9x1x128xf32, #tpu.memory_space<vmem>>, vector<1x1x128xf32>
    %15 = vector.shape_cast %14 : vector<1x1x128xf32> to vector<1x128xf32>
    %16 = vector.broadcast %15 : vector<1x128xf32> to vector<16x128xf32>
    %17 = arith.addf %12, %16 : vector<16x128xf32>
    %18 = math.tanh %17 : vector<16x128xf32>
    %19 = arith.mulf %18, %4 : vector<16x128xf32>
    %20 = vector.shape_cast %19 : vector<16x128xf32> to vector<2x8x128xf32>
    %cst_10 = arith.constant dense<0.000000e+00> : vector<2x128xf32>
    %21 = vector.multi_reduction <add>, %20, %cst_10 [1] : vector<2x8x128xf32> to vector<2x128xf32>
    %22 = vector.shape_cast %21 : vector<2x128xf32> to vector<2x1x128xf32>
    %23 = arith.index_cast %c0_i32 : i32 to index
    %c0_11 = arith.constant 0 : index
    %c0_12 = arith.constant 0 : index
    %c0_13 = arith.constant 0 : index
    %24 = vector.load %arg3[%23, %c0_11, %c0_12, %c0_13] : memref<9x2x1x128xf32, #tpu.memory_space<vmem>>, vector<1x2x1x128xf32>
    %25 = vector.shape_cast %24 : vector<1x2x1x128xf32> to vector<2x1x128xf32>
    %26 = arith.mulf %22, %25 : vector<2x1x128xf32>
    %27 = vector.broadcast %26 : vector<2x1x128xf32> to vector<2x8x128xf32>
    %28 = arith.addf %20, %27 : vector<2x8x128xf32>
    %29 = vector.shape_cast %28 : vector<2x8x128xf32> to vector<16x128xf32>
    %30 = arith.index_cast %c0_i32 : i32 to index
    %c0_14 = arith.constant 0 : index
    %c0_15 = arith.constant 0 : index
    %31 = vector.load %arg6[%30, %c0_14, %c0_15] : memref<9x128x128xf32, #tpu.memory_space<vmem>>, vector<1x128x128xf32>
    %32 = vector.shape_cast %31 : vector<1x128x128xf32> to vector<128x128xf32>
    %cst_16 = arith.constant dense<0.000000e+00> : vector<16x128xf32>
    %33 = tpu.matmul %29, %32, %cst_16 {dimension_numbers = #tpu.dot_dimension_numbers<[1], [0], [0], [1], [0, 0, 1, 1], [], []>} : vector<16x128xf32>, vector<128x128xf32>, vector<16x128xf32> -> vector<16x128xf32>
    %34 = arith.index_cast %c0_i32 : i32 to index
    %c0_17 = arith.constant 0 : index
    %c0_18 = arith.constant 0 : index
    %35 = vector.load %arg7[%34, %c0_17, %c0_18] : memref<9x1x128xf32, #tpu.memory_space<vmem>>, vector<1x1x128xf32>
    %36 = vector.shape_cast %35 : vector<1x1x128xf32> to vector<1x128xf32>
    %37 = vector.broadcast %36 : vector<1x128xf32> to vector<16x128xf32>
    %38 = arith.addf %33, %37 : vector<16x128xf32>
    %39 = math.tanh %38 : vector<16x128xf32>
    %40 = arith.mulf %39, %7 : vector<16x128xf32>
    %41 = arith.index_cast %c0_i32 : i32 to index
    %c0_19 = arith.constant 0 : index
    %c0_20 = arith.constant 0 : index
    %42 = vector.load %arg8[%41, %c0_19, %c0_20] : memref<9x128x128xf32, #tpu.memory_space<vmem>>, vector<1x128x128xf32>
    %43 = vector.shape_cast %42 : vector<1x128x128xf32> to vector<128x128xf32>
    %cst_21 = arith.constant dense<0.000000e+00> : vector<16x128xf32>
    %44 = tpu.matmul %29, %43, %cst_21 {dimension_numbers = #tpu.dot_dimension_numbers<[1], [0], [0], [1], [0, 0, 1, 1], [], []>} : vector<16x128xf32>, vector<128x128xf32>, vector<16x128xf32> -> vector<16x128xf32>
    %45 = arith.index_cast %c0_i32 : i32 to index
    %c0_22 = arith.constant 0 : index
    %c0_23 = arith.constant 0 : index
    %46 = vector.load %arg9[%45, %c0_22, %c0_23] : memref<9x1x128xf32, #tpu.memory_space<vmem>>, vector<1x1x128xf32>
    %47 = vector.shape_cast %46 : vector<1x1x128xf32> to vector<1x128xf32>
    %48 = vector.broadcast %47 : vector<1x128xf32> to vector<16x128xf32>
    %49 = arith.addf %44, %48 : vector<16x128xf32>
    %50 = arith.mulf %49, %7 : vector<16x128xf32>
    %51 = math.exp %40 : vector<16x128xf32>
    %cst_24 = arith.constant 1.000000e+00 : f32
    %52 = vector.broadcast %cst_24 : f32 to vector<16x128xf32>
    %53 = arith.subf %51, %52 : vector<16x128xf32>
    %54 = arith.mulf %0, %53 : vector<16x128xf32>
    %55 = arith.addf %54, %50 : vector<16x128xf32>
    %56 = arith.mulf %7, %55 : vector<16x128xf32>
    %57 = arith.addf %0, %56 : vector<16x128xf32>
    %58 = arith.addf %1, %40 : vector<16x128xf32>
    %c1_i32 = arith.constant 1 : i32
    %59 = arith.index_cast %c1_i32 : i32 to index
    %c0_25 = arith.constant 0 : index
    %c0_26 = arith.constant 0 : index
    %60 = vector.load %arg1[%59, %c0_25, %c0_26] : memref<9x16x128xf32, #tpu.memory_space<vmem>>, vector<1x16x128xf32>
    %61 = vector.shape_cast %60 : vector<1x16x128xf32> to vector<16x128xf32>
    %62 = arith.index_cast %c1_i32 : i32 to index
    %c0_27 = arith.constant 0 : index
    %c0_28 = arith.constant 0 : index
    %63 = vector.load %arg2[%62, %c0_27, %c0_28] : memref<9x16x128xf32, #tpu.memory_space<vmem>>, vector<1x16x128xf32>
    %64 = vector.shape_cast %63 : vector<1x16x128xf32> to vector<16x128xf32>
    %65 = arith.mulf %57, %61 : vector<16x128xf32>
    %66 = arith.index_cast %c1_i32 : i32 to index
    %c0_29 = arith.constant 0 : index
    %c0_30 = arith.constant 0 : index
    %67 = vector.load %arg4[%66, %c0_29, %c0_30] : memref<9x128x128xf32, #tpu.memory_space<vmem>>, vector<1x128x128xf32>
    %68 = vector.shape_cast %67 : vector<1x128x128xf32> to vector<128x128xf32>
    %cst_31 = arith.constant dense<0.000000e+00> : vector<16x128xf32>
    %69 = tpu.matmul %65, %68, %cst_31 {dimension_numbers = #tpu.dot_dimension_numbers<[1], [0], [0], [1], [0, 0, 1, 1], [], []>} : vector<16x128xf32>, vector<128x128xf32>, vector<16x128xf32> -> vector<16x128xf32>
    %70 = arith.index_cast %c1_i32 : i32 to index
    %c0_32 = arith.constant 0 : index
    %c0_33 = arith.constant 0 : index
    %71 = vector.load %arg5[%70, %c0_32, %c0_33] : memref<9x1x128xf32, #tpu.memory_space<vmem>>, vector<1x1x128xf32>
    %72 = vector.shape_cast %71 : vector<1x1x128xf32> to vector<1x128xf32>
    %73 = vector.broadcast %72 : vector<1x128xf32> to vector<16x128xf32>
    %74 = arith.addf %69, %73 : vector<16x128xf32>
    %75 = math.tanh %74 : vector<16x128xf32>
    %76 = arith.mulf %75, %61 : vector<16x128xf32>
    %77 = vector.shape_cast %76 : vector<16x128xf32> to vector<2x8x128xf32>
    %cst_34 = arith.constant dense<0.000000e+00> : vector<2x128xf32>
    %78 = vector.multi_reduction <add>, %77, %cst_34 [1] : vector<2x8x128xf32> to vector<2x128xf32>
    %79 = vector.shape_cast %78 : vector<2x128xf32> to vector<2x1x128xf32>
    %80 = arith.index_cast %c1_i32 : i32 to index
    %c0_35 = arith.constant 0 : index
    %c0_36 = arith.constant 0 : index
    %c0_37 = arith.constant 0 : index
    %81 = vector.load %arg3[%80, %c0_35, %c0_36, %c0_37] : memref<9x2x1x128xf32, #tpu.memory_space<vmem>>, vector<1x2x1x128xf32>
    %82 = vector.shape_cast %81 : vector<1x2x1x128xf32> to vector<2x1x128xf32>
    %83 = arith.mulf %79, %82 : vector<2x1x128xf32>
    %84 = vector.broadcast %83 : vector<2x1x128xf32> to vector<2x8x128xf32>
    %85 = arith.addf %77, %84 : vector<2x8x128xf32>
    %86 = vector.shape_cast %85 : vector<2x8x128xf32> to vector<16x128xf32>
    %87 = arith.index_cast %c1_i32 : i32 to index
    %c0_38 = arith.constant 0 : index
    %c0_39 = arith.constant 0 : index
    %88 = vector.load %arg6[%87, %c0_38, %c0_39] : memref<9x128x128xf32, #tpu.memory_space<vmem>>, vector<1x128x128xf32>
    %89 = vector.shape_cast %88 : vector<1x128x128xf32> to vector<128x128xf32>
    %cst_40 = arith.constant dense<0.000000e+00> : vector<16x128xf32>
    %90 = tpu.matmul %86, %89, %cst_40 {dimension_numbers = #tpu.dot_dimension_numbers<[1], [0], [0], [1], [0, 0, 1, 1], [], []>} : vector<16x128xf32>, vector<128x128xf32>, vector<16x128xf32> -> vector<16x128xf32>
    %91 = arith.index_cast %c1_i32 : i32 to index
    %c0_41 = arith.constant 0 : index
    %c0_42 = arith.constant 0 : index
    %92 = vector.load %arg7[%91, %c0_41, %c0_42] : memref<9x1x128xf32, #tpu.memory_space<vmem>>, vector<1x1x128xf32>
    %93 = vector.shape_cast %92 : vector<1x1x128xf32> to vector<1x128xf32>
    %94 = vector.broadcast %93 : vector<1x128xf32> to vector<16x128xf32>
    %95 = arith.addf %90, %94 : vector<16x128xf32>
    %96 = math.tanh %95 : vector<16x128xf32>
    %97 = arith.mulf %96, %64 : vector<16x128xf32>
    %98 = arith.index_cast %c1_i32 : i32 to index
    %c0_43 = arith.constant 0 : index
    %c0_44 = arith.constant 0 : index
    %99 = vector.load %arg8[%98, %c0_43, %c0_44] : memref<9x128x128xf32, #tpu.memory_space<vmem>>, vector<1x128x128xf32>
    %100 = vector.shape_cast %99 : vector<1x128x128xf32> to vector<128x128xf32>
    %cst_45 = arith.constant dense<0.000000e+00> : vector<16x128xf32>
    %101 = tpu.matmul %86, %100, %cst_45 {dimension_numbers = #tpu.dot_dimension_numbers<[1], [0], [0], [1], [0, 0, 1, 1], [], []>} : vector<16x128xf32>, vector<128x128xf32>, vector<16x128xf32> -> vector<16x128xf32>
    %102 = arith.index_cast %c1_i32 : i32 to index
    %c0_46 = arith.constant 0 : index
    %c0_47 = arith.constant 0 : index
    %103 = vector.load %arg9[%102, %c0_46, %c0_47] : memref<9x1x128xf32, #tpu.memory_space<vmem>>, vector<1x1x128xf32>
    %104 = vector.shape_cast %103 : vector<1x1x128xf32> to vector<1x128xf32>
    %105 = vector.broadcast %104 : vector<1x128xf32> to vector<16x128xf32>
    %106 = arith.addf %101, %105 : vector<16x128xf32>
    %107 = arith.mulf %106, %64 : vector<16x128xf32>
    %108 = math.exp %97 : vector<16x128xf32>
    %cst_48 = arith.constant 1.000000e+00 : f32
    %109 = vector.broadcast %cst_48 : f32 to vector<16x128xf32>
    %110 = arith.subf %108, %109 : vector<16x128xf32>
    %111 = arith.mulf %57, %110 : vector<16x128xf32>
    %112 = arith.addf %111, %107 : vector<16x128xf32>
    %113 = arith.mulf %64, %112 : vector<16x128xf32>
    %114 = arith.addf %57, %113 : vector<16x128xf32>
    %115 = arith.addf %58, %97 : vector<16x128xf32>
    %c2_i32 = arith.constant 2 : i32
    %116 = arith.index_cast %c2_i32 : i32 to index
    %c0_49 = arith.constant 0 : index
    %c0_50 = arith.constant 0 : index
    %117 = vector.load %arg1[%116, %c0_49, %c0_50] : memref<9x16x128xf32, #tpu.memory_space<vmem>>, vector<1x16x128xf32>
    %118 = vector.shape_cast %117 : vector<1x16x128xf32> to vector<16x128xf32>
    %119 = arith.index_cast %c2_i32 : i32 to index
    %c0_51 = arith.constant 0 : index
    %c0_52 = arith.constant 0 : index
    %120 = vector.load %arg2[%119, %c0_51, %c0_52] : memref<9x16x128xf32, #tpu.memory_space<vmem>>, vector<1x16x128xf32>
    %121 = vector.shape_cast %120 : vector<1x16x128xf32> to vector<16x128xf32>
    %122 = arith.mulf %114, %118 : vector<16x128xf32>
    %123 = arith.index_cast %c2_i32 : i32 to index
    %c0_53 = arith.constant 0 : index
    %c0_54 = arith.constant 0 : index
    %124 = vector.load %arg4[%123, %c0_53, %c0_54] : memref<9x128x128xf32, #tpu.memory_space<vmem>>, vector<1x128x128xf32>
    %125 = vector.shape_cast %124 : vector<1x128x128xf32> to vector<128x128xf32>
    %cst_55 = arith.constant dense<0.000000e+00> : vector<16x128xf32>
    %126 = tpu.matmul %122, %125, %cst_55 {dimension_numbers = #tpu.dot_dimension_numbers<[1], [0], [0], [1], [0, 0, 1, 1], [], []>} : vector<16x128xf32>, vector<128x128xf32>, vector<16x128xf32> -> vector<16x128xf32>
    %127 = arith.index_cast %c2_i32 : i32 to index
    %c0_56 = arith.constant 0 : index
    %c0_57 = arith.constant 0 : index
    %128 = vector.load %arg5[%127, %c0_56, %c0_57] : memref<9x1x128xf32, #tpu.memory_space<vmem>>, vector<1x1x128xf32>
    %129 = vector.shape_cast %128 : vector<1x1x128xf32> to vector<1x128xf32>
    %130 = vector.broadcast %129 : vector<1x128xf32> to vector<16x128xf32>
    %131 = arith.addf %126, %130 : vector<16x128xf32>
    %132 = math.tanh %131 : vector<16x128xf32>
    %133 = arith.mulf %132, %118 : vector<16x128xf32>
    %134 = vector.shape_cast %133 : vector<16x128xf32> to vector<2x8x128xf32>
    %cst_58 = arith.constant dense<0.000000e+00> : vector<2x128xf32>
    %135 = vector.multi_reduction <add>, %134, %cst_58 [1] : vector<2x8x128xf32> to vector<2x128xf32>
    %136 = vector.shape_cast %135 : vector<2x128xf32> to vector<2x1x128xf32>
    %137 = arith.index_cast %c2_i32 : i32 to index
    %c0_59 = arith.constant 0 : index
    %c0_60 = arith.constant 0 : index
    %c0_61 = arith.constant 0 : index
    %138 = vector.load %arg3[%137, %c0_59, %c0_60, %c0_61] : memref<9x2x1x128xf32, #tpu.memory_space<vmem>>, vector<1x2x1x128xf32>
    %139 = vector.shape_cast %138 : vector<1x2x1x128xf32> to vector<2x1x128xf32>
    %140 = arith.mulf %136, %139 : vector<2x1x128xf32>
    %141 = vector.broadcast %140 : vector<2x1x128xf32> to vector<2x8x128xf32>
    %142 = arith.addf %134, %141 : vector<2x8x128xf32>
    %143 = vector.shape_cast %142 : vector<2x8x128xf32> to vector<16x128xf32>
    %144 = arith.index_cast %c2_i32 : i32 to index
    %c0_62 = arith.constant 0 : index
    %c0_63 = arith.constant 0 : index
    %145 = vector.load %arg6[%144, %c0_62, %c0_63] : memref<9x128x128xf32, #tpu.memory_space<vmem>>, vector<1x128x128xf32>
    %146 = vector.shape_cast %145 : vector<1x128x128xf32> to vector<128x128xf32>
    %cst_64 = arith.constant dense<0.000000e+00> : vector<16x128xf32>
    %147 = tpu.matmul %143, %146, %cst_64 {dimension_numbers = #tpu.dot_dimension_numbers<[1], [0], [0], [1], [0, 0, 1, 1], [], []>} : vector<16x128xf32>, vector<128x128xf32>, vector<16x128xf32> -> vector<16x128xf32>
    %148 = arith.index_cast %c2_i32 : i32 to index
    %c0_65 = arith.constant 0 : index
    %c0_66 = arith.constant 0 : index
    %149 = vector.load %arg7[%148, %c0_65, %c0_66] : memref<9x1x128xf32, #tpu.memory_space<vmem>>, vector<1x1x128xf32>
    %150 = vector.shape_cast %149 : vector<1x1x128xf32> to vector<1x128xf32>
    %151 = vector.broadcast %150 : vector<1x128xf32> to vector<16x128xf32>
    %152 = arith.addf %147, %151 : vector<16x128xf32>
    %153 = math.tanh %152 : vector<16x128xf32>
    %154 = arith.mulf %153, %121 : vector<16x128xf32>
    %155 = arith.index_cast %c2_i32 : i32 to index
    %c0_67 = arith.constant 0 : index
    %c0_68 = arith.constant 0 : index
    %156 = vector.load %arg8[%155, %c0_67, %c0_68] : memref<9x128x128xf32, #tpu.memory_space<vmem>>, vector<1x128x128xf32>
    %157 = vector.shape_cast %156 : vector<1x128x128xf32> to vector<128x128xf32>
    %cst_69 = arith.constant dense<0.000000e+00> : vector<16x128xf32>
    %158 = tpu.matmul %143, %157, %cst_69 {dimension_numbers = #tpu.dot_dimension_numbers<[1], [0], [0], [1], [0, 0, 1, 1], [], []>} : vector<16x128xf32>, vector<128x128xf32>, vector<16x128xf32> -> vector<16x128xf32>
    %159 = arith.index_cast %c2_i32 : i32 to index
    %c0_70 = arith.constant 0 : index
    %c0_71 = arith.constant 0 : index
    %160 = vector.load %arg9[%159, %c0_70, %c0_71] : memref<9x1x128xf32, #tpu.memory_space<vmem>>, vector<1x1x128xf32>
    %161 = vector.shape_cast %160 : vector<1x1x128xf32> to vector<1x128xf32>
    %162 = vector.broadcast %161 : vector<1x128xf32> to vector<16x128xf32>
    %163 = arith.addf %158, %162 : vector<16x128xf32>
    %164 = arith.mulf %163, %121 : vector<16x128xf32>
    %165 = math.exp %154 : vector<16x128xf32>
    %cst_72 = arith.constant 1.000000e+00 : f32
    %166 = vector.broadcast %cst_72 : f32 to vector<16x128xf32>
    %167 = arith.subf %165, %166 : vector<16x128xf32>
    %168 = arith.mulf %114, %167 : vector<16x128xf32>
    %169 = arith.addf %168, %164 : vector<16x128xf32>
    %170 = arith.mulf %121, %169 : vector<16x128xf32>
    %171 = arith.addf %114, %170 : vector<16x128xf32>
    %172 = arith.addf %115, %154 : vector<16x128xf32>
    %c3_i32 = arith.constant 3 : i32
    %173 = arith.index_cast %c3_i32 : i32 to index
    %c0_73 = arith.constant 0 : index
    %c0_74 = arith.constant 0 : index
    %174 = vector.load %arg1[%173, %c0_73, %c0_74] : memref<9x16x128xf32, #tpu.memory_space<vmem>>, vector<1x16x128xf32>
    %175 = vector.shape_cast %174 : vector<1x16x128xf32> to vector<16x128xf32>
    %176 = arith.index_cast %c3_i32 : i32 to index
    %c0_75 = arith.constant 0 : index
    %c0_76 = arith.constant 0 : index
    %177 = vector.load %arg2[%176, %c0_75, %c0_76] : memref<9x16x128xf32, #tpu.memory_space<vmem>>, vector<1x16x128xf32>
    %178 = vector.shape_cast %177 : vector<1x16x128xf32> to vector<16x128xf32>
    %179 = arith.mulf %171, %175 : vector<16x128xf32>
    %180 = arith.index_cast %c3_i32 : i32 to index
    %c0_77 = arith.constant 0 : index
    %c0_78 = arith.constant 0 : index
    %181 = vector.load %arg4[%180, %c0_77, %c0_78] : memref<9x128x128xf32, #tpu.memory_space<vmem>>, vector<1x128x128xf32>
    %182 = vector.shape_cast %181 : vector<1x128x128xf32> to vector<128x128xf32>
    %cst_79 = arith.constant dense<0.000000e+00> : vector<16x128xf32>
    %183 = tpu.matmul %179, %182, %cst_79 {dimension_numbers = #tpu.dot_dimension_numbers<[1], [0], [0], [1], [0, 0, 1, 1], [], []>} : vector<16x128xf32>, vector<128x128xf32>, vector<16x128xf32> -> vector<16x128xf32>
    %184 = arith.index_cast %c3_i32 : i32 to index
    %c0_80 = arith.constant 0 : index
    %c0_81 = arith.constant 0 : index
    %185 = vector.load %arg5[%184, %c0_80, %c0_81] : memref<9x1x128xf32, #tpu.memory_space<vmem>>, vector<1x1x128xf32>
    %186 = vector.shape_cast %185 : vector<1x1x128xf32> to vector<1x128xf32>
    %187 = vector.broadcast %186 : vector<1x128xf32> to vector<16x128xf32>
    %188 = arith.addf %183, %187 : vector<16x128xf32>
    %189 = math.tanh %188 : vector<16x128xf32>
    %190 = arith.mulf %189, %175 : vector<16x128xf32>
    %191 = vector.shape_cast %190 : vector<16x128xf32> to vector<2x8x128xf32>
    %cst_82 = arith.constant dense<0.000000e+00> : vector<2x128xf32>
    %192 = vector.multi_reduction <add>, %191, %cst_82 [1] : vector<2x8x128xf32> to vector<2x128xf32>
    %193 = vector.shape_cast %192 : vector<2x128xf32> to vector<2x1x128xf32>
    %194 = arith.index_cast %c3_i32 : i32 to index
    %c0_83 = arith.constant 0 : index
    %c0_84 = arith.constant 0 : index
    %c0_85 = arith.constant 0 : index
    %195 = vector.load %arg3[%194, %c0_83, %c0_84, %c0_85] : memref<9x2x1x128xf32, #tpu.memory_space<vmem>>, vector<1x2x1x128xf32>
    %196 = vector.shape_cast %195 : vector<1x2x1x128xf32> to vector<2x1x128xf32>
    %197 = arith.mulf %193, %196 : vector<2x1x128xf32>
    %198 = vector.broadcast %197 : vector<2x1x128xf32> to vector<2x8x128xf32>
    %199 = arith.addf %191, %198 : vector<2x8x128xf32>
    %200 = vector.shape_cast %199 : vector<2x8x128xf32> to vector<16x128xf32>
    %201 = arith.index_cast %c3_i32 : i32 to index
    %c0_86 = arith.constant 0 : index
    %c0_87 = arith.constant 0 : index
    %202 = vector.load %arg6[%201, %c0_86, %c0_87] : memref<9x128x128xf32, #tpu.memory_space<vmem>>, vector<1x128x128xf32>
    %203 = vector.shape_cast %202 : vector<1x128x128xf32> to vector<128x128xf32>
    %cst_88 = arith.constant dense<0.000000e+00> : vector<16x128xf32>
    %204 = tpu.matmul %200, %203, %cst_88 {dimension_numbers = #tpu.dot_dimension_numbers<[1], [0], [0], [1], [0, 0, 1, 1], [], []>} : vector<16x128xf32>, vector<128x128xf32>, vector<16x128xf32> -> vector<16x128xf32>
    %205 = arith.index_cast %c3_i32 : i32 to index
    %c0_89 = arith.constant 0 : index
    %c0_90 = arith.constant 0 : index
    %206 = vector.load %arg7[%205, %c0_89, %c0_90] : memref<9x1x128xf32, #tpu.memory_space<vmem>>, vector<1x1x128xf32>
    %207 = vector.shape_cast %206 : vector<1x1x128xf32> to vector<1x128xf32>
    %208 = vector.broadcast %207 : vector<1x128xf32> to vector<16x128xf32>
    %209 = arith.addf %204, %208 : vector<16x128xf32>
    %210 = math.tanh %209 : vector<16x128xf32>
    %211 = arith.mulf %210, %178 : vector<16x128xf32>
    %212 = arith.index_cast %c3_i32 : i32 to index
    %c0_91 = arith.constant 0 : index
    %c0_92 = arith.constant 0 : index
    %213 = vector.load %arg8[%212, %c0_91, %c0_92] : memref<9x128x128xf32, #tpu.memory_space<vmem>>, vector<1x128x128xf32>
    %214 = vector.shape_cast %213 : vector<1x128x128xf32> to vector<128x128xf32>
    %cst_93 = arith.constant dense<0.000000e+00> : vector<16x128xf32>
    %215 = tpu.matmul %200, %214, %cst_93 {dimension_numbers = #tpu.dot_dimension_numbers<[1], [0], [0], [1], [0, 0, 1, 1], [], []>} : vector<16x128xf32>, vector<128x128xf32>, vector<16x128xf32> -> vector<16x128xf32>
    %216 = arith.index_cast %c3_i32 : i32 to index
    %c0_94 = arith.constant 0 : index
    %c0_95 = arith.constant 0 : index
    %217 = vector.load %arg9[%216, %c0_94, %c0_95] : memref<9x1x128xf32, #tpu.memory_space<vmem>>, vector<1x1x128xf32>
    %218 = vector.shape_cast %217 : vector<1x1x128xf32> to vector<1x128xf32>
    %219 = vector.broadcast %218 : vector<1x128xf32> to vector<16x128xf32>
    %220 = arith.addf %215, %219 : vector<16x128xf32>
    %221 = arith.mulf %220, %178 : vector<16x128xf32>
    %222 = math.exp %211 : vector<16x128xf32>
    %cst_96 = arith.constant 1.000000e+00 : f32
    %223 = vector.broadcast %cst_96 : f32 to vector<16x128xf32>
    %224 = arith.subf %222, %223 : vector<16x128xf32>
    %225 = arith.mulf %171, %224 : vector<16x128xf32>
    %226 = arith.addf %225, %221 : vector<16x128xf32>
    %227 = arith.mulf %178, %226 : vector<16x128xf32>
    %228 = arith.addf %171, %227 : vector<16x128xf32>
    %229 = arith.addf %172, %211 : vector<16x128xf32>
    %c4_i32 = arith.constant 4 : i32
    %230 = arith.index_cast %c4_i32 : i32 to index
    %c0_97 = arith.constant 0 : index
    %c0_98 = arith.constant 0 : index
    %231 = vector.load %arg1[%230, %c0_97, %c0_98] : memref<9x16x128xf32, #tpu.memory_space<vmem>>, vector<1x16x128xf32>
    %232 = vector.shape_cast %231 : vector<1x16x128xf32> to vector<16x128xf32>
    %233 = arith.index_cast %c4_i32 : i32 to index
    %c0_99 = arith.constant 0 : index
    %c0_100 = arith.constant 0 : index
    %234 = vector.load %arg2[%233, %c0_99, %c0_100] : memref<9x16x128xf32, #tpu.memory_space<vmem>>, vector<1x16x128xf32>
    %235 = vector.shape_cast %234 : vector<1x16x128xf32> to vector<16x128xf32>
    %236 = arith.mulf %228, %232 : vector<16x128xf32>
    %237 = arith.index_cast %c4_i32 : i32 to index
    %c0_101 = arith.constant 0 : index
    %c0_102 = arith.constant 0 : index
    %238 = vector.load %arg4[%237, %c0_101, %c0_102] : memref<9x128x128xf32, #tpu.memory_space<vmem>>, vector<1x128x128xf32>
    %239 = vector.shape_cast %238 : vector<1x128x128xf32> to vector<128x128xf32>
    %cst_103 = arith.constant dense<0.000000e+00> : vector<16x128xf32>
    %240 = tpu.matmul %236, %239, %cst_103 {dimension_numbers = #tpu.dot_dimension_numbers<[1], [0], [0], [1], [0, 0, 1, 1], [], []>} : vector<16x128xf32>, vector<128x128xf32>, vector<16x128xf32> -> vector<16x128xf32>
    %241 = arith.index_cast %c4_i32 : i32 to index
    %c0_104 = arith.constant 0 : index
    %c0_105 = arith.constant 0 : index
    %242 = vector.load %arg5[%241, %c0_104, %c0_105] : memref<9x1x128xf32, #tpu.memory_space<vmem>>, vector<1x1x128xf32>
    %243 = vector.shape_cast %242 : vector<1x1x128xf32> to vector<1x128xf32>
    %244 = vector.broadcast %243 : vector<1x128xf32> to vector<16x128xf32>
    %245 = arith.addf %240, %244 : vector<16x128xf32>
    %246 = math.tanh %245 : vector<16x128xf32>
    %247 = arith.mulf %246, %232 : vector<16x128xf32>
    %248 = vector.shape_cast %247 : vector<16x128xf32> to vector<2x8x128xf32>
    %cst_106 = arith.constant dense<0.000000e+00> : vector<2x128xf32>
    %249 = vector.multi_reduction <add>, %248, %cst_106 [1] : vector<2x8x128xf32> to vector<2x128xf32>
    %250 = vector.shape_cast %249 : vector<2x128xf32> to vector<2x1x128xf32>
    %251 = arith.index_cast %c4_i32 : i32 to index
    %c0_107 = arith.constant 0 : index
    %c0_108 = arith.constant 0 : index
    %c0_109 = arith.constant 0 : index
    %252 = vector.load %arg3[%251, %c0_107, %c0_108, %c0_109] : memref<9x2x1x128xf32, #tpu.memory_space<vmem>>, vector<1x2x1x128xf32>
    %253 = vector.shape_cast %252 : vector<1x2x1x128xf32> to vector<2x1x128xf32>
    %254 = arith.mulf %250, %253 : vector<2x1x128xf32>
    %255 = vector.broadcast %254 : vector<2x1x128xf32> to vector<2x8x128xf32>
    %256 = arith.addf %248, %255 : vector<2x8x128xf32>
    %257 = vector.shape_cast %256 : vector<2x8x128xf32> to vector<16x128xf32>
    %258 = arith.index_cast %c4_i32 : i32 to index
    %c0_110 = arith.constant 0 : index
    %c0_111 = arith.constant 0 : index
    %259 = vector.load %arg6[%258, %c0_110, %c0_111] : memref<9x128x128xf32, #tpu.memory_space<vmem>>, vector<1x128x128xf32>
    %260 = vector.shape_cast %259 : vector<1x128x128xf32> to vector<128x128xf32>
    %cst_112 = arith.constant dense<0.000000e+00> : vector<16x128xf32>
    %261 = tpu.matmul %257, %260, %cst_112 {dimension_numbers = #tpu.dot_dimension_numbers<[1], [0], [0], [1], [0, 0, 1, 1], [], []>} : vector<16x128xf32>, vector<128x128xf32>, vector<16x128xf32> -> vector<16x128xf32>
    %262 = arith.index_cast %c4_i32 : i32 to index
    %c0_113 = arith.constant 0 : index
    %c0_114 = arith.constant 0 : index
    %263 = vector.load %arg7[%262, %c0_113, %c0_114] : memref<9x1x128xf32, #tpu.memory_space<vmem>>, vector<1x1x128xf32>
    %264 = vector.shape_cast %263 : vector<1x1x128xf32> to vector<1x128xf32>
    %265 = vector.broadcast %264 : vector<1x128xf32> to vector<16x128xf32>
    %266 = arith.addf %261, %265 : vector<16x128xf32>
    %267 = math.tanh %266 : vector<16x128xf32>
    %268 = arith.mulf %267, %235 : vector<16x128xf32>
    %269 = arith.index_cast %c4_i32 : i32 to index
    %c0_115 = arith.constant 0 : index
    %c0_116 = arith.constant 0 : index
    %270 = vector.load %arg8[%269, %c0_115, %c0_116] : memref<9x128x128xf32, #tpu.memory_space<vmem>>, vector<1x128x128xf32>
    %271 = vector.shape_cast %270 : vector<1x128x128xf32> to vector<128x128xf32>
    %cst_117 = arith.constant dense<0.000000e+00> : vector<16x128xf32>
    %272 = tpu.matmul %257, %271, %cst_117 {dimension_numbers = #tpu.dot_dimension_numbers<[1], [0], [0], [1], [0, 0, 1, 1], [], []>} : vector<16x128xf32>, vector<128x128xf32>, vector<16x128xf32> -> vector<16x128xf32>
    %273 = arith.index_cast %c4_i32 : i32 to index
    %c0_118 = arith.constant 0 : index
    %c0_119 = arith.constant 0 : index
    %274 = vector.load %arg9[%273, %c0_118, %c0_119] : memref<9x1x128xf32, #tpu.memory_space<vmem>>, vector<1x1x128xf32>
    %275 = vector.shape_cast %274 : vector<1x1x128xf32> to vector<1x128xf32>
    %276 = vector.broadcast %275 : vector<1x128xf32> to vector<16x128xf32>
    %277 = arith.addf %272, %276 : vector<16x128xf32>
    %278 = arith.mulf %277, %235 : vector<16x128xf32>
    %279 = math.exp %268 : vector<16x128xf32>
    %cst_120 = arith.constant 1.000000e+00 : f32
    %280 = vector.broadcast %cst_120 : f32 to vector<16x128xf32>
    %281 = arith.subf %279, %280 : vector<16x128xf32>
    %282 = arith.mulf %228, %281 : vector<16x128xf32>
    %283 = arith.addf %282, %278 : vector<16x128xf32>
    %284 = arith.mulf %235, %283 : vector<16x128xf32>
    %285 = arith.addf %228, %284 : vector<16x128xf32>
    %286 = arith.addf %229, %268 : vector<16x128xf32>
    %c5_i32 = arith.constant 5 : i32
    %287 = arith.index_cast %c5_i32 : i32 to index
    %c0_121 = arith.constant 0 : index
    %c0_122 = arith.constant 0 : index
    %288 = vector.load %arg1[%287, %c0_121, %c0_122] : memref<9x16x128xf32, #tpu.memory_space<vmem>>, vector<1x16x128xf32>
    %289 = vector.shape_cast %288 : vector<1x16x128xf32> to vector<16x128xf32>
    %290 = arith.index_cast %c5_i32 : i32 to index
    %c0_123 = arith.constant 0 : index
    %c0_124 = arith.constant 0 : index
    %291 = vector.load %arg2[%290, %c0_123, %c0_124] : memref<9x16x128xf32, #tpu.memory_space<vmem>>, vector<1x16x128xf32>
    %292 = vector.shape_cast %291 : vector<1x16x128xf32> to vector<16x128xf32>
    %293 = arith.mulf %285, %289 : vector<16x128xf32>
    %294 = arith.index_cast %c5_i32 : i32 to index
    %c0_125 = arith.constant 0 : index
    %c0_126 = arith.constant 0 : index
    %295 = vector.load %arg4[%294, %c0_125, %c0_126] : memref<9x128x128xf32, #tpu.memory_space<vmem>>, vector<1x128x128xf32>
    %296 = vector.shape_cast %295 : vector<1x128x128xf32> to vector<128x128xf32>
    %cst_127 = arith.constant dense<0.000000e+00> : vector<16x128xf32>
    %297 = tpu.matmul %293, %296, %cst_127 {dimension_numbers = #tpu.dot_dimension_numbers<[1], [0], [0], [1], [0, 0, 1, 1], [], []>} : vector<16x128xf32>, vector<128x128xf32>, vector<16x128xf32> -> vector<16x128xf32>
    %298 = arith.index_cast %c5_i32 : i32 to index
    %c0_128 = arith.constant 0 : index
    %c0_129 = arith.constant 0 : index
    %299 = vector.load %arg5[%298, %c0_128, %c0_129] : memref<9x1x128xf32, #tpu.memory_space<vmem>>, vector<1x1x128xf32>
    %300 = vector.shape_cast %299 : vector<1x1x128xf32> to vector<1x128xf32>
    %301 = vector.broadcast %300 : vector<1x128xf32> to vector<16x128xf32>
    %302 = arith.addf %297, %301 : vector<16x128xf32>
    %303 = math.tanh %302 : vector<16x128xf32>
    %304 = arith.mulf %303, %289 : vector<16x128xf32>
    %305 = vector.shape_cast %304 : vector<16x128xf32> to vector<2x8x128xf32>
    %cst_130 = arith.constant dense<0.000000e+00> : vector<2x128xf32>
    %306 = vector.multi_reduction <add>, %305, %cst_130 [1] : vector<2x8x128xf32> to vector<2x128xf32>
    %307 = vector.shape_cast %306 : vector<2x128xf32> to vector<2x1x128xf32>
    %308 = arith.index_cast %c5_i32 : i32 to index
    %c0_131 = arith.constant 0 : index
    %c0_132 = arith.constant 0 : index
    %c0_133 = arith.constant 0 : index
    %309 = vector.load %arg3[%308, %c0_131, %c0_132, %c0_133] : memref<9x2x1x128xf32, #tpu.memory_space<vmem>>, vector<1x2x1x128xf32>
    %310 = vector.shape_cast %309 : vector<1x2x1x128xf32> to vector<2x1x128xf32>
    %311 = arith.mulf %307, %310 : vector<2x1x128xf32>
    %312 = vector.broadcast %311 : vector<2x1x128xf32> to vector<2x8x128xf32>
    %313 = arith.addf %305, %312 : vector<2x8x128xf32>
    %314 = vector.shape_cast %313 : vector<2x8x128xf32> to vector<16x128xf32>
    %315 = arith.index_cast %c5_i32 : i32 to index
    %c0_134 = arith.constant 0 : index
    %c0_135 = arith.constant 0 : index
    %316 = vector.load %arg6[%315, %c0_134, %c0_135] : memref<9x128x128xf32, #tpu.memory_space<vmem>>, vector<1x128x128xf32>
    %317 = vector.shape_cast %316 : vector<1x128x128xf32> to vector<128x128xf32>
    %cst_136 = arith.constant dense<0.000000e+00> : vector<16x128xf32>
    %318 = tpu.matmul %314, %317, %cst_136 {dimension_numbers = #tpu.dot_dimension_numbers<[1], [0], [0], [1], [0, 0, 1, 1], [], []>} : vector<16x128xf32>, vector<128x128xf32>, vector<16x128xf32> -> vector<16x128xf32>
    %319 = arith.index_cast %c5_i32 : i32 to index
    %c0_137 = arith.constant 0 : index
    %c0_138 = arith.constant 0 : index
    %320 = vector.load %arg7[%319, %c0_137, %c0_138] : memref<9x1x128xf32, #tpu.memory_space<vmem>>, vector<1x1x128xf32>
    %321 = vector.shape_cast %320 : vector<1x1x128xf32> to vector<1x128xf32>
    %322 = vector.broadcast %321 : vector<1x128xf32> to vector<16x128xf32>
    %323 = arith.addf %318, %322 : vector<16x128xf32>
    %324 = math.tanh %323 : vector<16x128xf32>
    %325 = arith.mulf %324, %292 : vector<16x128xf32>
    %326 = arith.index_cast %c5_i32 : i32 to index
    %c0_139 = arith.constant 0 : index
    %c0_140 = arith.constant 0 : index
    %327 = vector.load %arg8[%326, %c0_139, %c0_140] : memref<9x128x128xf32, #tpu.memory_space<vmem>>, vector<1x128x128xf32>
    %328 = vector.shape_cast %327 : vector<1x128x128xf32> to vector<128x128xf32>
    %cst_141 = arith.constant dense<0.000000e+00> : vector<16x128xf32>
    %329 = tpu.matmul %314, %328, %cst_141 {dimension_numbers = #tpu.dot_dimension_numbers<[1], [0], [0], [1], [0, 0, 1, 1], [], []>} : vector<16x128xf32>, vector<128x128xf32>, vector<16x128xf32> -> vector<16x128xf32>
    %330 = arith.index_cast %c5_i32 : i32 to index
    %c0_142 = arith.constant 0 : index
    %c0_143 = arith.constant 0 : index
    %331 = vector.load %arg9[%330, %c0_142, %c0_143] : memref<9x1x128xf32, #tpu.memory_space<vmem>>, vector<1x1x128xf32>
    %332 = vector.shape_cast %331 : vector<1x1x128xf32> to vector<1x128xf32>
    %333 = vector.broadcast %332 : vector<1x128xf32> to vector<16x128xf32>
    %334 = arith.addf %329, %333 : vector<16x128xf32>
    %335 = arith.mulf %334, %292 : vector<16x128xf32>
    %336 = math.exp %325 : vector<16x128xf32>
    %cst_144 = arith.constant 1.000000e+00 : f32
    %337 = vector.broadcast %cst_144 : f32 to vector<16x128xf32>
    %338 = arith.subf %336, %337 : vector<16x128xf32>
    %339 = arith.mulf %285, %338 : vector<16x128xf32>
    %340 = arith.addf %339, %335 : vector<16x128xf32>
    %341 = arith.mulf %292, %340 : vector<16x128xf32>
    %342 = arith.addf %285, %341 : vector<16x128xf32>
    %343 = arith.addf %286, %325 : vector<16x128xf32>
    %c6_i32 = arith.constant 6 : i32
    %344 = arith.index_cast %c6_i32 : i32 to index
    %c0_145 = arith.constant 0 : index
    %c0_146 = arith.constant 0 : index
    %345 = vector.load %arg1[%344, %c0_145, %c0_146] : memref<9x16x128xf32, #tpu.memory_space<vmem>>, vector<1x16x128xf32>
    %346 = vector.shape_cast %345 : vector<1x16x128xf32> to vector<16x128xf32>
    %347 = arith.index_cast %c6_i32 : i32 to index
    %c0_147 = arith.constant 0 : index
    %c0_148 = arith.constant 0 : index
    %348 = vector.load %arg2[%347, %c0_147, %c0_148] : memref<9x16x128xf32, #tpu.memory_space<vmem>>, vector<1x16x128xf32>
    %349 = vector.shape_cast %348 : vector<1x16x128xf32> to vector<16x128xf32>
    %350 = arith.mulf %342, %346 : vector<16x128xf32>
    %351 = arith.index_cast %c6_i32 : i32 to index
    %c0_149 = arith.constant 0 : index
    %c0_150 = arith.constant 0 : index
    %352 = vector.load %arg4[%351, %c0_149, %c0_150] : memref<9x128x128xf32, #tpu.memory_space<vmem>>, vector<1x128x128xf32>
    %353 = vector.shape_cast %352 : vector<1x128x128xf32> to vector<128x128xf32>
    %cst_151 = arith.constant dense<0.000000e+00> : vector<16x128xf32>
    %354 = tpu.matmul %350, %353, %cst_151 {dimension_numbers = #tpu.dot_dimension_numbers<[1], [0], [0], [1], [0, 0, 1, 1], [], []>} : vector<16x128xf32>, vector<128x128xf32>, vector<16x128xf32> -> vector<16x128xf32>
    %355 = arith.index_cast %c6_i32 : i32 to index
    %c0_152 = arith.constant 0 : index
    %c0_153 = arith.constant 0 : index
    %356 = vector.load %arg5[%355, %c0_152, %c0_153] : memref<9x1x128xf32, #tpu.memory_space<vmem>>, vector<1x1x128xf32>
    %357 = vector.shape_cast %356 : vector<1x1x128xf32> to vector<1x128xf32>
    %358 = vector.broadcast %357 : vector<1x128xf32> to vector<16x128xf32>
    %359 = arith.addf %354, %358 : vector<16x128xf32>
    %360 = math.tanh %359 : vector<16x128xf32>
    %361 = arith.mulf %360, %346 : vector<16x128xf32>
    %362 = vector.shape_cast %361 : vector<16x128xf32> to vector<2x8x128xf32>
    %cst_154 = arith.constant dense<0.000000e+00> : vector<2x128xf32>
    %363 = vector.multi_reduction <add>, %362, %cst_154 [1] : vector<2x8x128xf32> to vector<2x128xf32>
    %364 = vector.shape_cast %363 : vector<2x128xf32> to vector<2x1x128xf32>
    %365 = arith.index_cast %c6_i32 : i32 to index
    %c0_155 = arith.constant 0 : index
    %c0_156 = arith.constant 0 : index
    %c0_157 = arith.constant 0 : index
    %366 = vector.load %arg3[%365, %c0_155, %c0_156, %c0_157] : memref<9x2x1x128xf32, #tpu.memory_space<vmem>>, vector<1x2x1x128xf32>
    %367 = vector.shape_cast %366 : vector<1x2x1x128xf32> to vector<2x1x128xf32>
    %368 = arith.mulf %364, %367 : vector<2x1x128xf32>
    %369 = vector.broadcast %368 : vector<2x1x128xf32> to vector<2x8x128xf32>
    %370 = arith.addf %362, %369 : vector<2x8x128xf32>
    %371 = vector.shape_cast %370 : vector<2x8x128xf32> to vector<16x128xf32>
    %372 = arith.index_cast %c6_i32 : i32 to index
    %c0_158 = arith.constant 0 : index
    %c0_159 = arith.constant 0 : index
    %373 = vector.load %arg6[%372, %c0_158, %c0_159] : memref<9x128x128xf32, #tpu.memory_space<vmem>>, vector<1x128x128xf32>
    %374 = vector.shape_cast %373 : vector<1x128x128xf32> to vector<128x128xf32>
    %cst_160 = arith.constant dense<0.000000e+00> : vector<16x128xf32>
    %375 = tpu.matmul %371, %374, %cst_160 {dimension_numbers = #tpu.dot_dimension_numbers<[1], [0], [0], [1], [0, 0, 1, 1], [], []>} : vector<16x128xf32>, vector<128x128xf32>, vector<16x128xf32> -> vector<16x128xf32>
    %376 = arith.index_cast %c6_i32 : i32 to index
    %c0_161 = arith.constant 0 : index
    %c0_162 = arith.constant 0 : index
    %377 = vector.load %arg7[%376, %c0_161, %c0_162] : memref<9x1x128xf32, #tpu.memory_space<vmem>>, vector<1x1x128xf32>
    %378 = vector.shape_cast %377 : vector<1x1x128xf32> to vector<1x128xf32>
    %379 = vector.broadcast %378 : vector<1x128xf32> to vector<16x128xf32>
    %380 = arith.addf %375, %379 : vector<16x128xf32>
    %381 = math.tanh %380 : vector<16x128xf32>
    %382 = arith.mulf %381, %349 : vector<16x128xf32>
    %383 = arith.index_cast %c6_i32 : i32 to index
    %c0_163 = arith.constant 0 : index
    %c0_164 = arith.constant 0 : index
    %384 = vector.load %arg8[%383, %c0_163, %c0_164] : memref<9x128x128xf32, #tpu.memory_space<vmem>>, vector<1x128x128xf32>
    %385 = vector.shape_cast %384 : vector<1x128x128xf32> to vector<128x128xf32>
    %cst_165 = arith.constant dense<0.000000e+00> : vector<16x128xf32>
    %386 = tpu.matmul %371, %385, %cst_165 {dimension_numbers = #tpu.dot_dimension_numbers<[1], [0], [0], [1], [0, 0, 1, 1], [], []>} : vector<16x128xf32>, vector<128x128xf32>, vector<16x128xf32> -> vector<16x128xf32>
    %387 = arith.index_cast %c6_i32 : i32 to index
    %c0_166 = arith.constant 0 : index
    %c0_167 = arith.constant 0 : index
    %388 = vector.load %arg9[%387, %c0_166, %c0_167] : memref<9x1x128xf32, #tpu.memory_space<vmem>>, vector<1x1x128xf32>
    %389 = vector.shape_cast %388 : vector<1x1x128xf32> to vector<1x128xf32>
    %390 = vector.broadcast %389 : vector<1x128xf32> to vector<16x128xf32>
    %391 = arith.addf %386, %390 : vector<16x128xf32>
    %392 = arith.mulf %391, %349 : vector<16x128xf32>
    %393 = math.exp %382 : vector<16x128xf32>
    %cst_168 = arith.constant 1.000000e+00 : f32
    %394 = vector.broadcast %cst_168 : f32 to vector<16x128xf32>
    %395 = arith.subf %393, %394 : vector<16x128xf32>
    %396 = arith.mulf %342, %395 : vector<16x128xf32>
    %397 = arith.addf %396, %392 : vector<16x128xf32>
    %398 = arith.mulf %349, %397 : vector<16x128xf32>
    %399 = arith.addf %342, %398 : vector<16x128xf32>
    %400 = arith.addf %343, %382 : vector<16x128xf32>
    %c7_i32 = arith.constant 7 : i32
    %401 = arith.index_cast %c7_i32 : i32 to index
    %c0_169 = arith.constant 0 : index
    %c0_170 = arith.constant 0 : index
    %402 = vector.load %arg1[%401, %c0_169, %c0_170] : memref<9x16x128xf32, #tpu.memory_space<vmem>>, vector<1x16x128xf32>
    %403 = vector.shape_cast %402 : vector<1x16x128xf32> to vector<16x128xf32>
    %404 = arith.index_cast %c7_i32 : i32 to index
    %c0_171 = arith.constant 0 : index
    %c0_172 = arith.constant 0 : index
    %405 = vector.load %arg2[%404, %c0_171, %c0_172] : memref<9x16x128xf32, #tpu.memory_space<vmem>>, vector<1x16x128xf32>
    %406 = vector.shape_cast %405 : vector<1x16x128xf32> to vector<16x128xf32>
    %407 = arith.mulf %399, %403 : vector<16x128xf32>
    %408 = arith.index_cast %c7_i32 : i32 to index
    %c0_173 = arith.constant 0 : index
    %c0_174 = arith.constant 0 : index
    %409 = vector.load %arg4[%408, %c0_173, %c0_174] : memref<9x128x128xf32, #tpu.memory_space<vmem>>, vector<1x128x128xf32>
    %410 = vector.shape_cast %409 : vector<1x128x128xf32> to vector<128x128xf32>
    %cst_175 = arith.constant dense<0.000000e+00> : vector<16x128xf32>
    %411 = tpu.matmul %407, %410, %cst_175 {dimension_numbers = #tpu.dot_dimension_numbers<[1], [0], [0], [1], [0, 0, 1, 1], [], []>} : vector<16x128xf32>, vector<128x128xf32>, vector<16x128xf32> -> vector<16x128xf32>
    %412 = arith.index_cast %c7_i32 : i32 to index
    %c0_176 = arith.constant 0 : index
    %c0_177 = arith.constant 0 : index
    %413 = vector.load %arg5[%412, %c0_176, %c0_177] : memref<9x1x128xf32, #tpu.memory_space<vmem>>, vector<1x1x128xf32>
    %414 = vector.shape_cast %413 : vector<1x1x128xf32> to vector<1x128xf32>
    %415 = vector.broadcast %414 : vector<1x128xf32> to vector<16x128xf32>
    %416 = arith.addf %411, %415 : vector<16x128xf32>
    %417 = math.tanh %416 : vector<16x128xf32>
    %418 = arith.mulf %417, %403 : vector<16x128xf32>
    %419 = vector.shape_cast %418 : vector<16x128xf32> to vector<2x8x128xf32>
    %cst_178 = arith.constant dense<0.000000e+00> : vector<2x128xf32>
    %420 = vector.multi_reduction <add>, %419, %cst_178 [1] : vector<2x8x128xf32> to vector<2x128xf32>
    %421 = vector.shape_cast %420 : vector<2x128xf32> to vector<2x1x128xf32>
    %422 = arith.index_cast %c7_i32 : i32 to index
    %c0_179 = arith.constant 0 : index
    %c0_180 = arith.constant 0 : index
    %c0_181 = arith.constant 0 : index
    %423 = vector.load %arg3[%422, %c0_179, %c0_180, %c0_181] : memref<9x2x1x128xf32, #tpu.memory_space<vmem>>, vector<1x2x1x128xf32>
    %424 = vector.shape_cast %423 : vector<1x2x1x128xf32> to vector<2x1x128xf32>
    %425 = arith.mulf %421, %424 : vector<2x1x128xf32>
    %426 = vector.broadcast %425 : vector<2x1x128xf32> to vector<2x8x128xf32>
    %427 = arith.addf %419, %426 : vector<2x8x128xf32>
    %428 = vector.shape_cast %427 : vector<2x8x128xf32> to vector<16x128xf32>
    %429 = arith.index_cast %c7_i32 : i32 to index
    %c0_182 = arith.constant 0 : index
    %c0_183 = arith.constant 0 : index
    %430 = vector.load %arg6[%429, %c0_182, %c0_183] : memref<9x128x128xf32, #tpu.memory_space<vmem>>, vector<1x128x128xf32>
    %431 = vector.shape_cast %430 : vector<1x128x128xf32> to vector<128x128xf32>
    %cst_184 = arith.constant dense<0.000000e+00> : vector<16x128xf32>
    %432 = tpu.matmul %428, %431, %cst_184 {dimension_numbers = #tpu.dot_dimension_numbers<[1], [0], [0], [1], [0, 0, 1, 1], [], []>} : vector<16x128xf32>, vector<128x128xf32>, vector<16x128xf32> -> vector<16x128xf32>
    %433 = arith.index_cast %c7_i32 : i32 to index
    %c0_185 = arith.constant 0 : index
    %c0_186 = arith.constant 0 : index
    %434 = vector.load %arg7[%433, %c0_185, %c0_186] : memref<9x1x128xf32, #tpu.memory_space<vmem>>, vector<1x1x128xf32>
    %435 = vector.shape_cast %434 : vector<1x1x128xf32> to vector<1x128xf32>
    %436 = vector.broadcast %435 : vector<1x128xf32> to vector<16x128xf32>
    %437 = arith.addf %432, %436 : vector<16x128xf32>
    %438 = math.tanh %437 : vector<16x128xf32>
    %439 = arith.mulf %438, %406 : vector<16x128xf32>
    %440 = arith.index_cast %c7_i32 : i32 to index
    %c0_187 = arith.constant 0 : index
    %c0_188 = arith.constant 0 : index
    %441 = vector.load %arg8[%440, %c0_187, %c0_188] : memref<9x128x128xf32, #tpu.memory_space<vmem>>, vector<1x128x128xf32>
    %442 = vector.shape_cast %441 : vector<1x128x128xf32> to vector<128x128xf32>
    %cst_189 = arith.constant dense<0.000000e+00> : vector<16x128xf32>
    %443 = tpu.matmul %428, %442, %cst_189 {dimension_numbers = #tpu.dot_dimension_numbers<[1], [0], [0], [1], [0, 0, 1, 1], [], []>} : vector<16x128xf32>, vector<128x128xf32>, vector<16x128xf32> -> vector<16x128xf32>
    %444 = arith.index_cast %c7_i32 : i32 to index
    %c0_190 = arith.constant 0 : index
    %c0_191 = arith.constant 0 : index
    %445 = vector.load %arg9[%444, %c0_190, %c0_191] : memref<9x1x128xf32, #tpu.memory_space<vmem>>, vector<1x1x128xf32>
    %446 = vector.shape_cast %445 : vector<1x1x128xf32> to vector<1x128xf32>
    %447 = vector.broadcast %446 : vector<1x128xf32> to vector<16x128xf32>
    %448 = arith.addf %443, %447 : vector<16x128xf32>
    %449 = arith.mulf %448, %406 : vector<16x128xf32>
    %450 = math.exp %439 : vector<16x128xf32>
    %cst_192 = arith.constant 1.000000e+00 : f32
    %451 = vector.broadcast %cst_192 : f32 to vector<16x128xf32>
    %452 = arith.subf %450, %451 : vector<16x128xf32>
    %453 = arith.mulf %399, %452 : vector<16x128xf32>
    %454 = arith.addf %453, %449 : vector<16x128xf32>
    %455 = arith.mulf %406, %454 : vector<16x128xf32>
    %456 = arith.addf %399, %455 : vector<16x128xf32>
    %457 = arith.addf %400, %439 : vector<16x128xf32>
    %c8_i32 = arith.constant 8 : i32
    %458 = arith.index_cast %c8_i32 : i32 to index
    %c0_193 = arith.constant 0 : index
    %c0_194 = arith.constant 0 : index
    %459 = vector.load %arg1[%458, %c0_193, %c0_194] : memref<9x16x128xf32, #tpu.memory_space<vmem>>, vector<1x16x128xf32>
    %460 = vector.shape_cast %459 : vector<1x16x128xf32> to vector<16x128xf32>
    %461 = arith.index_cast %c8_i32 : i32 to index
    %c0_195 = arith.constant 0 : index
    %c0_196 = arith.constant 0 : index
    %462 = vector.load %arg2[%461, %c0_195, %c0_196] : memref<9x16x128xf32, #tpu.memory_space<vmem>>, vector<1x16x128xf32>
    %463 = vector.shape_cast %462 : vector<1x16x128xf32> to vector<16x128xf32>
    %464 = arith.mulf %456, %460 : vector<16x128xf32>
    %465 = arith.index_cast %c8_i32 : i32 to index
    %c0_197 = arith.constant 0 : index
    %c0_198 = arith.constant 0 : index
    %466 = vector.load %arg4[%465, %c0_197, %c0_198] : memref<9x128x128xf32, #tpu.memory_space<vmem>>, vector<1x128x128xf32>
    %467 = vector.shape_cast %466 : vector<1x128x128xf32> to vector<128x128xf32>
    %cst_199 = arith.constant dense<0.000000e+00> : vector<16x128xf32>
    %468 = tpu.matmul %464, %467, %cst_199 {dimension_numbers = #tpu.dot_dimension_numbers<[1], [0], [0], [1], [0, 0, 1, 1], [], []>} : vector<16x128xf32>, vector<128x128xf32>, vector<16x128xf32> -> vector<16x128xf32>
    %469 = arith.index_cast %c8_i32 : i32 to index
    %c0_200 = arith.constant 0 : index
    %c0_201 = arith.constant 0 : index
    %470 = vector.load %arg5[%469, %c0_200, %c0_201] : memref<9x1x128xf32, #tpu.memory_space<vmem>>, vector<1x1x128xf32>
    %471 = vector.shape_cast %470 : vector<1x1x128xf32> to vector<1x128xf32>
    %472 = vector.broadcast %471 : vector<1x128xf32> to vector<16x128xf32>
    %473 = arith.addf %468, %472 : vector<16x128xf32>
    %474 = math.tanh %473 : vector<16x128xf32>
    %475 = arith.mulf %474, %460 : vector<16x128xf32>
    %476 = vector.shape_cast %475 : vector<16x128xf32> to vector<2x8x128xf32>
    %cst_202 = arith.constant dense<0.000000e+00> : vector<2x128xf32>
    %477 = vector.multi_reduction <add>, %476, %cst_202 [1] : vector<2x8x128xf32> to vector<2x128xf32>
    %478 = vector.shape_cast %477 : vector<2x128xf32> to vector<2x1x128xf32>
    %479 = arith.index_cast %c8_i32 : i32 to index
    %c0_203 = arith.constant 0 : index
    %c0_204 = arith.constant 0 : index
    %c0_205 = arith.constant 0 : index
    %480 = vector.load %arg3[%479, %c0_203, %c0_204, %c0_205] : memref<9x2x1x128xf32, #tpu.memory_space<vmem>>, vector<1x2x1x128xf32>
    %481 = vector.shape_cast %480 : vector<1x2x1x128xf32> to vector<2x1x128xf32>
    %482 = arith.mulf %478, %481 : vector<2x1x128xf32>
    %483 = vector.broadcast %482 : vector<2x1x128xf32> to vector<2x8x128xf32>
    %484 = arith.addf %476, %483 : vector<2x8x128xf32>
    %485 = vector.shape_cast %484 : vector<2x8x128xf32> to vector<16x128xf32>
    %486 = arith.index_cast %c8_i32 : i32 to index
    %c0_206 = arith.constant 0 : index
    %c0_207 = arith.constant 0 : index
    %487 = vector.load %arg6[%486, %c0_206, %c0_207] : memref<9x128x128xf32, #tpu.memory_space<vmem>>, vector<1x128x128xf32>
    %488 = vector.shape_cast %487 : vector<1x128x128xf32> to vector<128x128xf32>
    %cst_208 = arith.constant dense<0.000000e+00> : vector<16x128xf32>
    %489 = tpu.matmul %485, %488, %cst_208 {dimension_numbers = #tpu.dot_dimension_numbers<[1], [0], [0], [1], [0, 0, 1, 1], [], []>} : vector<16x128xf32>, vector<128x128xf32>, vector<16x128xf32> -> vector<16x128xf32>
    %490 = arith.index_cast %c8_i32 : i32 to index
    %c0_209 = arith.constant 0 : index
    %c0_210 = arith.constant 0 : index
    %491 = vector.load %arg7[%490, %c0_209, %c0_210] : memref<9x1x128xf32, #tpu.memory_space<vmem>>, vector<1x1x128xf32>
    %492 = vector.shape_cast %491 : vector<1x1x128xf32> to vector<1x128xf32>
    %493 = vector.broadcast %492 : vector<1x128xf32> to vector<16x128xf32>
    %494 = arith.addf %489, %493 : vector<16x128xf32>
    %495 = math.tanh %494 : vector<16x128xf32>
    %496 = arith.mulf %495, %463 : vector<16x128xf32>
    %497 = arith.index_cast %c8_i32 : i32 to index
    %c0_211 = arith.constant 0 : index
    %c0_212 = arith.constant 0 : index
    %498 = vector.load %arg8[%497, %c0_211, %c0_212] : memref<9x128x128xf32, #tpu.memory_space<vmem>>, vector<1x128x128xf32>
    %499 = vector.shape_cast %498 : vector<1x128x128xf32> to vector<128x128xf32>
    %cst_213 = arith.constant dense<0.000000e+00> : vector<16x128xf32>
    %500 = tpu.matmul %485, %499, %cst_213 {dimension_numbers = #tpu.dot_dimension_numbers<[1], [0], [0], [1], [0, 0, 1, 1], [], []>} : vector<16x128xf32>, vector<128x128xf32>, vector<16x128xf32> -> vector<16x128xf32>
    %501 = arith.index_cast %c8_i32 : i32 to index
    %c0_214 = arith.constant 0 : index
    %c0_215 = arith.constant 0 : index
    %502 = vector.load %arg9[%501, %c0_214, %c0_215] : memref<9x1x128xf32, #tpu.memory_space<vmem>>, vector<1x1x128xf32>
    %503 = vector.shape_cast %502 : vector<1x1x128xf32> to vector<1x128xf32>
    %504 = vector.broadcast %503 : vector<1x128xf32> to vector<16x128xf32>
    %505 = arith.addf %500, %504 : vector<16x128xf32>
    %506 = arith.mulf %505, %463 : vector<16x128xf32>
    %507 = math.exp %496 : vector<16x128xf32>
    %cst_216 = arith.constant 1.000000e+00 : f32
    %508 = vector.broadcast %cst_216 : f32 to vector<16x128xf32>
    %509 = arith.subf %507, %508 : vector<16x128xf32>
    %510 = arith.mulf %456, %509 : vector<16x128xf32>
    %511 = arith.addf %510, %506 : vector<16x128xf32>
    %512 = arith.mulf %463, %511 : vector<16x128xf32>
    %513 = arith.addf %456, %512 : vector<16x128xf32>
    %514 = arith.addf %457, %496 : vector<16x128xf32>
    %c9_i32 = arith.constant 9 : i32
    %c0_217 = arith.constant 0 : index
    %c0_218 = arith.constant 0 : index
    %515 = vector.load %arg10[%c0_217, %c0_218] : memref<16x128xf32, #tpu.memory_space<vmem>>, vector<16x128xf32>
    tpu.vector_store %arg10[%c0_217, %c0_218], %513 {strides = array<i32>} : memref<16x128xf32, #tpu.memory_space<vmem>>, vector<16x128xf32>,
    %c0_219 = arith.constant 0 : index
    %c0_220 = arith.constant 0 : index
    %516 = vector.load %arg11[%c0_219, %c0_220] : memref<16x128xf32, #tpu.memory_space<vmem>>, vector<16x128xf32>
    tpu.vector_store %arg11[%c0_219, %c0_220], %514 {strides = array<i32>} : memref<16x128xf32, #tpu.memory_space<vmem>>, vector<16x128xf32>,
    return
  }
}

</mosaic_0001>

<bundles_post_ra>
// kernel: flow_forward.1
= control target key start
LH: loop header
LB: loop body
LE: loop exit
PB: predicated region body
PF: predicated region fallthrough
CT: control target
= control target key end

     0   :  { %s8046_s4 = inlined_call_operand.vmem [shape: f32[9,128,128], index: 4, kind: input, shape index: {}]   ;;  %s8047_s0 = inlined_call_operand.vmem [shape: f32[16,128], index: 0, kind: input, shape index: {}, may-alias: {0,10}]   ;;  %s8048_s1 = inlined_call_operand.vmem [shape: f32[9,16,128], index: 1, kind: input, shape index: {}]   ;;  %s8049_s6 = inlined_call_operand.vmem [shape: f32[9,128,128], index: 6, kind: input, shape index: {}]   ;;  %s8050_s8 = inlined_call_operand.vmem [shape: f32[9,128,128], index: 8, kind: input, shape index: {}]   ;;  %s8051_s5 = inlined_call_operand.vmem [shape: f32[9,1,128], index: 5, kind: input, shape index: {}]   ;;  %s8052_s3 = inlined_call_operand.vmem [shape: f32[9,2,1,128], index: 3, kind: input, shape index: {}]   ;;  %s8053_s7 = inlined_call_operand.vmem [shape: f32[9,1,128], index: 7, kind: input, shape index: {}]   ;;  %s8054_s2 = inlined_call_operand.vmem [shape: f32[9,16,128], index: 2, kind: input, shape index: {}]   ;;  %s8055_s9 = inlined_call_operand.vmem [shape: f32[9,1,128], index: 9, kind: input, shape index: {}]   ;;  %s8056_s11 = inlined_call_operand.vmem [shape: f32[16,128], index: 11, kind: output, shape index: {1}]   ;;  %s8057_s10 = inlined_call_operand.vmem [shape: f32[16,128], index: 10, kind: output, shape index: {0}, may-alias: {0,10}]  }
   0x1   :  { %v45_v0 = vld [vmem:[%s8046_s4] sm:$0xff]  ;;  %v46_v1 = vld [vmem:[%s8046_s4 + $0x8] sm:$0xff]  ;;  %v47_v2 = vld [vmem:[%s8046_s4 + $0x10] sm:$0xff] }
   0x2   :  { %v5223_v3 = vpack.c.bf16 %v46_v1, %v45_v0  ;;  %v48_v4 = vld [vmem:[%s8046_s4 + $0x18] sm:$0xff]  ;;  %v49_v6 = vld [vmem:[%s8046_s4 + $0x20] sm:$0xff]  ;;  %v50_v7 = vld [vmem:[%s8046_s4 + $0x28] sm:$0xff] }
   0x3   :  { %v5227_v5 = vpack.c.bf16 %v48_v4, %v47_v2  ;;  %v5231_v8 = vpack.c.bf16 %v50_v7, %v49_v6  ;;  %v6276_v9 = vld [vmem:[%s8047_s0] sm:$0xff]  ;;  %v51_v10 = vld [vmem:[%s8046_s4 + $0x30] sm:$0xff]  ;;  %v52_v11 = vld [vmem:[%s8046_s4 + $0x38] sm:$0xff] }
   0x4   :  { %5224 = vmatprep.subr.bf16.mxu0 %v5223_v3  ;;  %v6287_v12 = vld [vmem:[%s8048_s1] sm:$0xff]  ;;  %v5235_v14 = vpack.c.bf16 %v52_v11, %v51_v10  ;;  %v54_v16 = vld [vmem:[%s8046_s4 + $0x48] sm:$0xff]  ;;  %v55_v18 = vld [vmem:[%s8046_s4 + $0x50] sm:$0xff] }
   0x5   :  { %5226 = vmatpush3.bf16.msra.mxu0 %v5223_v3  ;;  %v43_v13 = vmul.f32 %v6287_v12, %v6276_v9  ;;  %v53_v15 = vld [vmem:[%s8046_s4 + $0x40] sm:$0xff]  ;;  %v56_v19 = vld [vmem:[%s8046_s4 + $0x58] sm:$0xff]  ;;  %v58_v22 = vld [vmem:[%s8046_s4 + $0x68] sm:$0xff] }
   0x6   :  { %5228 = vmatprep.subr.bf16.mxu0 %v5227_v5  ;;  %v5239_v17 = vpack.c.bf16 %v54_v16, %v53_v15  ;;  %v5243_v20 = vpack.c.bf16 %v56_v19, %v55_v18  ;;  %v57_v21 = vld [vmem:[%s8046_s4 + $0x60] sm:$0xff]  ;;  %v59_v24 = vld [vmem:[%s8046_s4 + $0x70] sm:$0xff]  ;;  %v60_v25 = vld [vmem:[%s8046_s4 + $0x78] sm:$0xff] }
   0x7   :  { %4310 = vmatprep.mubr.f32.mxu0 %v43_v13  ;;  %v5247_v23 = vpack.c.bf16 %v58_v22, %v57_v21  ;;  %v5251_v26 = vpack.c.bf16 %v60_v25, %v59_v24  ;;  %v6318_v27 = vld [vmem:[%s8047_s0 + $0x8] sm:$0xff]  ;;  %v173_v30 = vld [vmem:[%s8049_s6] sm:$0xff]  ;;  %v175_v36 = vld [vmem:[%s8049_s6 + $0x10] sm:$0xff] }
   0x8   :  { %v6323_v28 = vld [vmem:[%s8048_s1 + $0x8] sm:$0xff]  ;;  %v275_v32 = vld [vmem:[%s8050_s8] sm:$0xff]  ;;  %v176_v37 = vld [vmem:[%s8049_s6 + $0x18] sm:$0xff] }
   0x9   :  { %5230 = vmatpush3.bf16.msra.mxu0 %v5227_v5  ;;  %v44_v29 = vmul.f32 %v6323_v28, %v6318_v27  ;;  %v174_v31 = vld [vmem:[%s8049_s6 + $0x8] sm:$0xff]  ;;  %v277_v38 = vld [vmem:[%s8050_s8 + $0x10] sm:$0xff]  ;;  %v5259_v39 = vpack.c.bf16 %v176_v37, %v175_v36  ;;  %v278_v40 = vld [vmem:[%s8050_s8 + $0x18] sm:$0xff] }
   0xa   :  { %5232 = vmatprep.subr.bf16.mxu0 %v5231_v8  ;;  %v5255_v33 = vpack.c.bf16 %v174_v31, %v173_v30  ;;  %v276_v34 = vld [vmem:[%s8050_s8 + $0x8] sm:$0xff]  ;;  %v177_v41 = vld [vmem:[%s8049_s6 + $0x20] sm:$0xff]  ;;  %v5291_v43 = vpack.c.bf16 %v278_v40, %v277_v38  ;;  %v179_v48 = vld [vmem:[%s8049_s6 + $0x30] sm:$0xff] }
   0xb   :  { %v5287_v35 = vpack.c.bf16 %v276_v34, %v275_v32  ;;  %v178_v42 = vld [vmem:[%s8049_s6 + $0x28] sm:$0xff]  ;;  %v279_v45 = vld [vmem:[%s8050_s8 + $0x20] sm:$0xff]  ;;  %v180_v49 = vld [vmem:[%s8049_s6 + $0x38] sm:$0xff] }
   0xc   :  { %5256 = vmatprep.subr.bf16.mxu1 %v5255_v33  ;;  %v5263_v44 = vpack.c.bf16 %v178_v42, %v177_v41  ;;  %v280_v46 = vld [vmem:[%s8050_s8 + $0x28] sm:$0xff]  ;;  %v281_v50 = vld [vmem:[%s8050_s8 + $0x30] sm:$0xff]  ;;  %v282_v51 = vld [vmem:[%s8050_s8 + $0x38] sm:$0xff]  ;;  %v5267_v52 = vpack.c.bf16 %v180_v49, %v179_v48 }
   0xd   :  { %5234 = vmatpush3.bf16.msra.mxu0 %v5231_v8  ;;  %5258 = vmatpush3.bf16.msra.mxu1 %v5255_v33  ;;  %v5295_v47 = vpack.c.bf16 %v280_v46, %v279_v45  ;;  %v5299_v53 = vpack.c.bf16 %v282_v51, %v281_v50  ;;  %v181_v54 = vld [vmem:[%s8049_s6 + $0x40] sm:$0xff]  ;;  %v182_v55 = vld [vmem:[%s8049_s6 + $0x48] sm:$0xff]  ;;  %v183_v60 = vld [vmem:[%s8049_s6 + $0x50] sm:$0xff] }
   0xe   :  { %5236 = vmatprep.subr.bf16.mxu0 %v5235_v14  ;;  %5260 = vmatprep.subr.bf16.mxu1 %v5259_v39  ;;  %v283_v56 = vld [vmem:[%s8050_s8 + $0x40] sm:$0xff]  ;;  %v284_v57 = vld [vmem:[%s8050_s8 + $0x48] sm:$0xff]  ;;  %v5271_v58 = vpack.c.bf16 %v182_v55, %v181_v54  ;;  %v184_v61 = vld [vmem:[%s8049_s6 + $0x58] sm:$0xff] }
   0xf   :  { %v5303_v59 = vpack.c.bf16 %v284_v57, %v283_v56  ;;  %v285_v62 = vld [vmem:[%s8050_s8 + $0x50] sm:$0xff]  ;;  %v286_v63 = vld [vmem:[%s8050_s8 + $0x58] sm:$0xff]  ;;  %v5275_v0 = vpack.c.bf16 %v184_v61, %v183_v60  ;;  %v185_v2 = vld [vmem:[%s8049_s6 + $0x60] sm:$0xff] }
  0x10   :  { %v5307_v1 = vpack.c.bf16 %v286_v63, %v285_v62  ;;  %v186_v3 = vld [vmem:[%s8049_s6 + $0x68] sm:$0xff]  ;;  %v287_v4 = vld [vmem:[%s8050_s8 + $0x60] sm:$0xff]  ;;  %v187_v8 = vld [vmem:[%s8049_s6 + $0x70] sm:$0xff] }
  0x11   :  { %5238 = vmatpush3.bf16.msra.mxu0 %v5235_v14  ;;  %5262 = vmatpush3.bf16.msra.mxu1 %v5259_v39  ;;  %v288_v5 = vld [vmem:[%s8050_s8 + $0x68] sm:$0xff]  ;;  %v5279_v6 = vpack.c.bf16 %v186_v3, %v185_v2  ;;  %v188_v10 = vld [vmem:[%s8049_s6 + $0x78] sm:$0xff]  ;;  %v289_v11 = vld [vmem:[%s8050_s8 + $0x70] sm:$0xff] }
  0x12   :  { %5240 = vmatprep.subr.bf16.mxu0 %v5239_v17  ;;  %5264 = vmatprep.subr.bf16.mxu1 %v5263_v44  ;;  %v5311_v7 = vpack.c.bf16 %v288_v5, %v287_v4  ;;  %v290_v13 = vld [vmem:[%s8050_s8 + $0x78] sm:$0xff]  ;;  %v5283_v14 = vpack.c.bf16 %v188_v10, %v187_v8  ;;  %v3291_v16 = vld [vmem:[%s8051_s5] ss:$0 sm:$0xff]  ;;  %v160_v39 = vld [vmem:[%s8052_s3 + $0x1] sm:$0x1] }
  0x13   :  { %v5315_v15 = vpack.c.bf16 %v290_v13, %v289_v11  ;;  %v3300_v48 = vld [vmem:[%s8046_s4 + $0x80] sm:$0xff]  ;;  %v3301_v49 = vld [vmem:[%s8046_s4 + $0x88] sm:$0xff]  ;;  %v3302_v51 = vld [vmem:[%s8046_s4 + $0x90] sm:$0xff] }
  0x14   :  { %v5319_v50 = vpack.c.bf16 %v3301_v49, %v3300_v48  ;;  %v3304_v54 = vld [vmem:[%s8046_s4 + $0xa0] sm:$0xff]  ;;  %v3305_v55 = vld [vmem:[%s8046_s4 + $0xa8] sm:$0xff]  ;;  %v3306_v57 = vld [vmem:[%s8046_s4 + $0xb0] sm:$0xff] }
  0x15   :  { %5242 = vmatpush3.bf16.msra.mxu0 %v5239_v17  ;;  %5266 = vmatpush3.bf16.msra.mxu1 %v5263_v44  ;;  %v5327_v56 = vpack.c.bf16 %v3305_v55, %v3304_v54  ;;  %v3308_v60 = vld [vmem:[%s8046_s4 + $0xc0] sm:$0xff]  ;;  %v3309_v61 = vld [vmem:[%s8046_s4 + $0xc8] sm:$0xff]  ;;  %v3310_v63 = vld [vmem:[%s8046_s4 + $0xd0] sm:$0xff] }
  0x16   :  { %5244 = vmatprep.subr.bf16.mxu0 %v5243_v20  ;;  %5268 = vmatprep.subr.bf16.mxu1 %v5267_v52  ;;  %v5335_v62 = vpack.c.bf16 %v3309_v61, %v3308_v60  ;;  %v3312_v2 = vld [vmem:[%s8046_s4 + $0xe0] sm:$0xff]  ;;  %v3313_v3 = vld [vmem:[%s8046_s4 + $0xe8] sm:$0xff]  ;;  %v3314_v5 = vld [vmem:[%s8046_s4 + $0xf0] sm:$0xff] }
  0x17   :  { %v5343_v4 = vpack.c.bf16 %v3313_v3, %v3312_v2  ;;  %v3292_v8 = vld [vmem:[%s8053_s7] ss:$0 sm:$0xff]  ;;  %v3339_v49 = vld [vmem:[%s8050_s8 + $0x88] sm:$0xff]  ;;  %v3341_v55 = vld [vmem:[%s8050_s8 + $0x98] sm:$0xff] }
  0x18   :  { %v3342_v60 = vld [vmem:[%s8050_s8 + $0xa0] sm:$0xff]  ;;  %v3343_v61 = vld [vmem:[%s8050_s8 + $0xa8] sm:$0xff]  ;;  %v3345_v2 = vld [vmem:[%s8050_s8 + $0xb8] sm:$0xff] }
  0x19   :  { %5246 = vmatpush3.bf16.msra.mxu0 %v5243_v20  ;;  %5270 = vmatpush3.bf16.msra.mxu1 %v5267_v52  ;;  %v3303_v52 = vld [vmem:[%s8046_s4 + $0x98] sm:$0xff] }
  0x1a   :  { %5248 = vmatprep.subr.bf16.mxu0 %v5247_v23  ;;  %5272 = vmatprep.subr.bf16.mxu1 %v5271_v58 }
  0x1d   :  { %5250 = vmatpush3.bf16.msra.mxu0 %v5247_v23  ;;  %5274 = vmatpush3.bf16.msra.mxu1 %v5271_v58  ;;  %v3307_v58 = vld [vmem:[%s8046_s4 + $0xb8] sm:$0xff] }
  0x1e   :  { %5252 = vmatprep.subr.bf16.mxu0 %v5251_v26  ;;  %5276 = vmatprep.subr.bf16.mxu1 %v5275_v0 }
  0x21   :  { %5254 = vmatpush3.bf16.msra.mxu0 %v5251_v26  ;;  %5278 = vmatpush3.bf16.msra.mxu1 %v5275_v0  ;;  %v3311_v0 = vld [vmem:[%s8046_s4 + $0xd8] sm:$0xff] }
  0x22   :  { %5288 = vmatprep.subr.bf16.mxu0 %v5287_v35  ;;  %5280 = vmatprep.subr.bf16.mxu1 %v5279_v6 }
  0x24   :  { %4311 = vmatmul.mubr.f32.vlgmr.msra.gmra.mrb[0].mxu0 %v44_v29  ;;  %v163_v29 = vlaneseq }
  0x25   :  { %5290 = vmatpush3.bf16.msra.mxu0 %v5287_v35  ;;  %5282 = vmatpush3.bf16.msra.mxu1 %v5279_v6  ;;  %v3315_v6 = vld [vmem:[%s8046_s4 + $0xf8] sm:$0xff] }
  0x26   :  { %5292 = vmatprep.subr.bf16.mxu0 %v5291_v43  ;;  %5284 = vmatprep.subr.bf16.mxu1 %v5283_v14  ;;  %v164_v34 = vshrl.u32 %v163_v29, 7 }
  0x29   :  { %5294 = vmatpush3.bf16.msra.mxu0 %v5291_v43  ;;  %5286 = vmatpush3.bf16.msra.mxu1 %v5283_v14 }
  0x2a   :  { %5296 = vmatprep.subr.bf16.mxu0 %v5295_v47  ;;  %5320 = vmatprep.subr.bf16.mxu1 %v5319_v50 }
  0x2d   :  { %5298 = vmatpush3.bf16.msra.mxu0 %v5295_v47 }
  0x2e   :  { %5300 = vmatprep.subr.bf16.mxu0 %v5299_v53 }
  0x31   :  { %5302 = vmatpush3.bf16.msra.mxu0 %v5299_v53  ;;  %v5323_v53 = vpack.c.bf16 %v3303_v52, %v3302_v51  ;;  %v3322_v51 = vld [vmem:[%s8049_s6 + $0x90] sm:$0xff]  ;;  %v3323_v52 = vld [vmem:[%s8049_s6 + $0x98] sm:$0xff] }
  0x32   :  { %5304 = vmatprep.subr.bf16.mxu0 %v5303_v59  ;;  %v5355_v54 = vpack.c.bf16 %v3323_v52, %v3322_v51 }
  0x35   :  { %5306 = vmatpush3.bf16.msra.mxu0 %v5303_v59  ;;  %v5331_v59 = vpack.c.bf16 %v3307_v58, %v3306_v57  ;;  %v3325_v57 = vld [vmem:[%s8049_s6 + $0xa8] sm:$0xff] }
  0x36   :  { %5308 = vmatprep.subr.bf16.mxu0 %v5307_v1 }
  0x39   :  { %5310 = vmatpush3.bf16.msra.mxu0 %v5307_v1  ;;  %v5339_v1 = vpack.c.bf16 %v3311_v0, %v3310_v63  ;;  %v3326_v63 = vld [vmem:[%s8049_s6 + $0xb0] sm:$0xff]  ;;  %v3327_v0 = vld [vmem:[%s8049_s6 + $0xb8] sm:$0xff] }
  0x3a   :  { %5312 = vmatprep.subr.bf16.mxu0 %v5311_v7  ;;  %v5363_v3 = vpack.c.bf16 %v3327_v0, %v3326_v63  ;;  %v3362_v63 = vld [vmem:[%s8046_s4 + $0x100] sm:$0xff]  ;;  %v3363_v0 = vld [vmem:[%s8046_s4 + $0x108] sm:$0xff] }
  0x3d   :  { %5314 = vmatpush3.bf16.msra.mxu0 %v5311_v7  ;;  %v5347_v7 = vpack.c.bf16 %v3315_v6, %v3314_v5  ;;  %v3328_v5 = vld [vmem:[%s8049_s6 + $0xc0] sm:$0xff]  ;;  %v3329_v6 = vld [vmem:[%s8049_s6 + $0xc8] sm:$0xff] }
  0x3e   :  { %5316 = vmatprep.subr.bf16.mxu0 %v5315_v15 }
  0x41   :  { %5318 = vmatpush3.bf16.msra.mxu0 %v5315_v15 }
  0xf7   :  { %v4312_v17 = vpop.f32.mrb[0].mxu0 }
  0xf8   :  { %v140_v18 = vadd.f32 %v4312_v17, %v3291_v16  ;;  %v134_v19 = vpop.f32.mrb[1].mxu0 }
  0xf9   :  { %v135_v20 = vadd.f32 %v3291_v16, %v134_v19 }
  0xfa   :  { %6087 = vtanh.f32 %v140_v18  ;;  %v42_v18 = vld [vmem:[%s8054_s2 + $0x8] sm:$0xff] }
  0xfb   :  { %6089 = vtanh.f32 %v135_v20 }
 0x104   :  { %v6088_v21 = vpop.eup %6087 }
 0x105   :  { %v6090_v22 = vpop.eup %6089  ;;  %v146_v23 = vmul.f32 %v6088_v21, %v6323_v28  ;;  %v6434_v28 = vsub.s32 0, %v164_v34  ;;  %v41_v21 = vld [vmem:[%s8054_s2] sm:$0xff] }
 0x106   :  { %v145_v24 = vmul.f32 %v6090_v22, %v6287_v12  ;;  %v159_v12 = vld [vmem:[%s8052_s3] sm:$0x1] }
 0x107   :  { %v153_v25 = vrot.slane %v146_v23, 4 }
 0x108   :  { %v147_v26 = vrot.slane %v145_v24, 4 }
 0x109   :  { %v154_v30 = vadd.f32 %v153_v25, %v146_v23  ;;  %v3293_v25 = vld [vmem:[%s8055_s9] ss:$0 sm:$0xff] }
 0x10a   :  { %v148_v31 = vadd.f32 %v147_v26, %v145_v24 }
 0x10b   :  { %v155_v32 = vrot.slane %v154_v30, 2 }
 0x10c   :  { %v149_v33 = vrot.slane %v148_v31, 2 }
 0x10d   :  { %v156_v35 = vadd.f32 %v155_v32, %v154_v30 }
 0x10e   :  { %v150_v36 = vadd.f32 %v149_v33, %v148_v31 }
 0x10f   :  { %v157_v37 = vrot.slane %v156_v35, 1 }
 0x110   :  { %v151_v38 = vrot.slane %v150_v36, 1 }
 0x111   :  { %v158_v40 = vadd.f32 %v157_v37, %v156_v35 }
 0x112   :  { %v152_v41 = vadd.f32 %v151_v38, %v150_v36 }
 0x113   :  { %v162_v42 = vmul.f32 %v160_v39, %v158_v40 }
 0x114   :  { %v161_v43 = vmul.f32 %v159_v12, %v152_v41 }
 0x115   :  { %v170_v44 = vrot.slane %v162_v42, %v6434_v28  ;;  %v6512_v42 = vld [vmem:[%s8048_s1 + $0x10] sm:$0xff] }
 0x116   :  { %v166_v45 = vrot.slane %v161_v43, %v6434_v28 }
 0x117   :  { %v172_v47 = vadd.f32 %v170_v44, %v146_v23  ;;  %v6520_v44 = vld [vmem:[%s8048_s1 + $0x18] sm:$0xff] }
 0x118   :  { %v171_v46 = vadd.f32 %v166_v45, %v145_v24 }
 0x11a   :  { %4345 = vmatprep.mubr.f32.mxu1 %v171_v46  ;;  %4380 = vmatprep.mubr.f32.mxu0 %v171_v46  ;;  %v3320_v46 = vld [vmem:[%s8049_s6 + $0x80] sm:$0xff] }
 0x11b   :  { %4346 = vmatmul.mubr.f32.vlgmr.msra.gmra.mrb[0].mxu1 %v172_v47  ;;  %4381 = vmatmul.mubr.f32.vlgmr.msra.gmra.mrb[2].mxu0 %v172_v47  ;;  %v3338_v47 = vld [vmem:[%s8050_s8 + $0x80] sm:$0xff] }
 0x11c   :  { %5322 = vmatpush3.bf16.msra.mxu1 %v5319_v50  ;;  %v5383_v50 = vpack.c.bf16 %v3339_v49, %v3338_v47 }
 0x11d   :  { %5324 = vmatprep.subr.bf16.mxu1 %v5323_v53 }
 0x120   :  { %5326 = vmatpush3.bf16.msra.mxu1 %v5323_v53  ;;  %v3340_v53 = vld [vmem:[%s8050_s8 + $0x90] sm:$0xff] }
 0x121   :  { %5328 = vmatprep.subr.bf16.mxu1 %v5327_v56  ;;  %v5387_v58 = vpack.c.bf16 %v3341_v55, %v3340_v53  ;;  %v3319_v55 = vld [vmem:[%s8052_s3 + $0x3] sm:$0x1] }
 0x124   :  { %5330 = vmatpush3.bf16.msra.mxu1 %v5327_v56  ;;  %v3324_v56 = vld [vmem:[%s8049_s6 + $0xa0] sm:$0xff] }
 0x125   :  { %5332 = vmatprep.subr.bf16.mxu1 %v5331_v59 }
 0x128   :  { %5334 = vmatpush3.bf16.msra.mxu1 %v5331_v59  ;;  %v5359_v59 = vpack.c.bf16 %v3325_v57, %v3324_v56 }
 0x129   :  { %5336 = vmatprep.subr.bf16.mxu1 %v5335_v62 }
 0x12c   :  { %5338 = vmatpush3.bf16.msra.mxu1 %v5335_v62  ;;  %v5391_v62 = vpack.c.bf16 %v3343_v61, %v3342_v60 }
 0x12d   :  { %5340 = vmatprep.subr.bf16.mxu1 %v5339_v1 }
 0x130   :  { %5342 = vmatpush3.bf16.msra.mxu1 %v5339_v1  ;;  %v3344_v1 = vld [vmem:[%s8050_s8 + $0xb0] sm:$0xff] }
 0x131   :  { %5344 = vmatprep.subr.bf16.mxu1 %v5343_v4 }
 0x134   :  { %5346 = vmatpush3.bf16.msra.mxu1 %v5343_v4  ;;  %v5395_v4 = vpack.c.bf16 %v3345_v2, %v3344_v1  ;;  %v5415_v1 = vpack.c.bf16 %v3363_v0, %v3362_v63  ;;  %v3364_v2 = vld [vmem:[%s8046_s4 + $0x110] sm:$0xff]  ;;  %v3382_v63 = vld [vmem:[%s8049_s6 + $0x100] sm:$0xff] }
 0x135   :  { %5348 = vmatprep.subr.bf16.mxu1 %v5347_v7  ;;  %v3400_v0 = vld [vmem:[%s8050_s8 + $0x100] sm:$0xff] }
 0x138   :  { %5350 = vmatpush3.bf16.msra.mxu1 %v5347_v7  ;;  %v3346_v7 = vld [vmem:[%s8050_s8 + $0xc0] sm:$0xff] }
 0x139   :  { %5384 = vmatprep.subr.bf16.mxu1 %v5383_v50 }
 0x1ee   :  { %v4347_v10 = vpop.f32.mrb[0].mxu1  ;;  %v4382_v11 = vpop.f32.mrb[2].mxu0 }
 0x1ef   :  { %v268_v13 = vadd.f32 %v4347_v10, %v3292_v8  ;;  %v262_v14 = vpop.f32.mrb[1].mxu1  ;;  %v364_v15 = vpop.f32.mrb[3].mxu0  ;;  %v370_v26 = vadd.f32 %v4382_v11, %v3293_v25  ;;  %v5367_v10 = vpack.c.bf16 %v3329_v6, %v3328_v5  ;;  %v3366_v5 = vld [vmem:[%s8046_s4 + $0x120] sm:$0xff]  ;;  %v3367_v6 = vld [vmem:[%s8046_s4 + $0x128] sm:$0xff] }
 0x1f0   :  { %v263_v16 = vadd.f32 %v3292_v8, %v262_v14  ;;  %v365_v30 = vadd.f32 %v3293_v25, %v364_v15  ;;  %v3347_v8 = vld [vmem:[%s8050_s8 + $0xc8] sm:$0xff]  ;;  %v3331_v14 = vld [vmem:[%s8049_s6 + $0xd8] sm:$0xff]  ;;  %v3348_v15 = vld [vmem:[%s8050_s8 + $0xd0] sm:$0xff] }
 0x1f1   :  { %6091 = vtanh.f32 %v268_v13  ;;  %v374_v34 = vmul.f32 %v370_v26, %v42_v18  ;;  %v5399_v11 = vpack.c.bf16 %v3347_v8, %v3346_v7  ;;  %v3330_v13 = vld [vmem:[%s8049_s6 + $0xd0] sm:$0xff]  ;;  %v5423_v7 = vpack.c.bf16 %v3367_v6, %v3366_v5  ;;  %v3385_v5 = vld [vmem:[%s8049_s6 + $0x118] sm:$0xff] }
 0x1f2   :  { %6093 = vtanh.f32 %v263_v16  ;;  %v373_v36 = vmul.f32 %v365_v30, %v41_v21  ;;  %v3349_v16 = vld [vmem:[%s8050_s8 + $0xd8] sm:$0xff]  ;;  %v3368_v8 = vld [vmem:[%s8046_s4 + $0x130] sm:$0xff] }
 0x1f3   :  { %v3335_v30 = vld [vmem:[%s8049_s6 + $0xf8] sm:$0xff]  ;;  %v3402_v6 = vld [vmem:[%s8050_s8 + $0x110] sm:$0xff] }
 0x1fb   :  { %v6092_v17 = vpop.eup %6091 }
 0x1fc   :  { %v6094_v19 = vpop.eup %6093  ;;  %v6492_v20 = vmul.f32 %v6092_v17, %v42_v18  ;;  %v5371_v17 = vpack.c.bf16 %v3331_v14, %v3330_v13  ;;  %v3370_v13 = vld [vmem:[%s8046_s4 + $0x140] sm:$0xff]  ;;  %v3371_v14 = vld [vmem:[%s8046_s4 + $0x148] sm:$0xff] }
 0x1fd   :  { %v6497_v22 = vmul.f32 %v6094_v19, %v41_v21  ;;  %v3332_v19 = vld [vmem:[%s8049_s6 + $0xe0] sm:$0xff] }
 0x1fe   :  { %v377_v23 = vmul.f32 1.442695, %v6492_v20 }
 0x1ff   :  { %v375_v24 = vmul.f32 1.442695, %v6497_v22 }
 0x200   :  { %6095 = vpow2.f32 %v377_v23  ;;  %v3350_v23 = vld [vmem:[%s8050_s8 + $0xe0] sm:$0xff] }
 0x201   :  { %6097 = vpow2.f32 %v375_v24  ;;  %v3351_v24 = vld [vmem:[%s8050_s8 + $0xe8] sm:$0xff] }
 0x202   :  { %v5407_v26 = vpack.c.bf16 %v3351_v24, %v3350_v23  ;;  %v3376_v24 = vld [vmem:[%s8046_s4 + $0x170] sm:$0xff] }
 0x20a   :  { %v6096_v29 = vpop.eup %6095 }
 0x20b   :  { %v6098_v31 = vpop.eup %6097  ;;  %v3295_v32 = vadd.f32 -1.0, %v6096_v29  ;;  %v3334_v29 = vld [vmem:[%s8049_s6 + $0xf0] sm:$0xff] }
 0x20c   :  { %v3294_v33 = vadd.f32 -1.0, %v6098_v31  ;;  %v3352_v31 = vld [vmem:[%s8050_s8 + $0xf0] sm:$0xff] }
 0x20d   :  { %v382_v35 = vmul.f32 %v3295_v32, %v6318_v27  ;;  %v3353_v32 = vld [vmem:[%s8050_s8 + $0xf8] sm:$0xff] }
 0x20e   :  { %v381_v37 = vmul.f32 %v3294_v33, %v6276_v9  ;;  %v5379_v33 = vpack.c.bf16 %v3335_v30, %v3334_v29  ;;  %v3337_v29 = vld [vmem:[%s8053_s7 + $0x1] ss:$0 sm:$0xff] }
 0x20f   :  { %v384_v38 = vadd.f32 %v382_v35, %v374_v34  ;;  %v5411_v34 = vpack.c.bf16 %v3353_v32, %v3352_v31  ;;  %v3317_v35 = vld [vmem:[%s8051_s5 + $0x1] ss:$0 sm:$0xff] }
 0x210   :  { %v383_v39 = vadd.f32 %v381_v37, %v373_v36 }
 0x211   :  { %v386_v12 = vmul.f32 %v384_v38, %v42_v18  ;;  %v5403_v18 = vpack.c.bf16 %v3349_v16, %v3348_v15  ;;  %v5431_v15 = vpack.c.bf16 %v3371_v14, %v3370_v13  ;;  %v3372_v16 = vld [vmem:[%s8046_s4 + $0x150] sm:$0xff] }
 0x212   :  { %v385_v40 = vmul.f32 %v383_v39, %v41_v21  ;;  %v3333_v21 = vld [vmem:[%s8049_s6 + $0xe8] sm:$0xff] }
 0x213   :  { %v6507_v41 = vadd.f32 %v386_v12, %v6318_v27  ;;  %v5375_v25 = vpack.c.bf16 %v3333_v21, %v3332_v19  ;;  %v3374_v19 = vld [vmem:[%s8046_s4 + $0x160] sm:$0xff]  ;;  %v3375_v21 = vld [vmem:[%s8046_s4 + $0x168] sm:$0xff] }
 0x214   :  { %v6515_v43 = vadd.f32 %v385_v40, %v6276_v9  ;;  %v3321_v9 = vld [vmem:[%s8049_s6 + $0x88] sm:$0xff]  ;;  %v5439_v23 = vpack.c.bf16 %v3375_v21, %v3374_v19  ;;  %v3389_v19 = vld [vmem:[%s8049_s6 + $0x138] sm:$0xff]  ;;  %v3406_v21 = vld [vmem:[%s8050_s8 + $0x130] sm:$0xff] }
 0x215   :  { %v398_v27 = vmul.f32 %v6520_v44, %v6507_v41  ;;  %v5351_v48 = vpack.c.bf16 %v3321_v9, %v3320_v46 }
 0x216   :  { %v397_v45 = vmul.f32 %v6512_v42, %v6515_v43 }
 0x217   :  { %5352 = vmatprep.subr.bf16.mxu0 %v5351_v48 }
 0x218   :  { %4415 = vmatprep.mubr.f32.mxu1 %v397_v45  ;;  %5354 = vmatpush3.bf16.msra.mxu0 %v5351_v48 }
 0x219   :  { %4416 = vmatmul.mubr.f32.vlgmr.msra.gmra.mrb[2].mxu1 %v398_v27  ;;  %5356 = vmatprep.subr.bf16.mxu0 %v5355_v54 }
 0x21a   :  { %5386 = vmatpush3.bf16.msra.mxu1 %v5383_v50 }
 0x21b   :  { %5388 = vmatprep.subr.bf16.mxu1 %v5387_v58 }
 0x21c   :  { %5358 = vmatpush3.bf16.msra.mxu0 %v5355_v54 }
 0x21d   :  { %5360 = vmatprep.subr.bf16.mxu0 %v5359_v59 }
 0x21e   :  { %5390 = vmatpush3.bf16.msra.mxu1 %v5387_v58 }
 0x21f   :  { %5392 = vmatprep.subr.bf16.mxu1 %v5391_v62 }
 0x220   :  { %5362 = vmatpush3.bf16.msra.mxu0 %v5359_v59 }
 0x221   :  { %5364 = vmatprep.subr.bf16.mxu0 %v5363_v3 }
 0x222   :  { %5394 = vmatpush3.bf16.msra.mxu1 %v5391_v62 }
 0x223   :  { %5396 = vmatprep.subr.bf16.mxu1 %v5395_v4 }
 0x224   :  { %5366 = vmatpush3.bf16.msra.mxu0 %v5363_v3  ;;  %v3365_v3 = vld [vmem:[%s8046_s4 + $0x118] sm:$0xff] }
 0x225   :  { %5368 = vmatprep.subr.bf16.mxu0 %v5367_v10 }
 0x226   :  { %5398 = vmatpush3.bf16.msra.mxu1 %v5395_v4  ;;  %v5419_v4 = vpack.c.bf16 %v3365_v3, %v3364_v2  ;;  %v3401_v2 = vld [vmem:[%s8050_s8 + $0x108] sm:$0xff] }
 0x227   :  { %5400 = vmatprep.subr.bf16.mxu1 %v5399_v11  ;;  %v5479_v3 = vpack.c.bf16 %v3401_v2, %v3400_v0 }
 0x228   :  { %5370 = vmatpush3.bf16.msra.mxu0 %v5367_v10  ;;  %v3369_v10 = vld [vmem:[%s8046_s4 + $0x138] sm:$0xff] }
 0x229   :  { %5372 = vmatprep.subr.bf16.mxu0 %v5371_v17 }
 0x22a   :  { %5402 = vmatpush3.bf16.msra.mxu1 %v5399_v11  ;;  %v5427_v11 = vpack.c.bf16 %v3369_v10, %v3368_v8  ;;  %v3403_v8 = vld [vmem:[%s8050_s8 + $0x118] sm:$0xff]  ;;  %v3386_v10 = vld [vmem:[%s8049_s6 + $0x120] sm:$0xff] }
 0x22b   :  { %5404 = vmatprep.subr.bf16.mxu1 %v5403_v18  ;;  %v5483_v13 = vpack.c.bf16 %v3403_v8, %v3402_v6 }
 0x22c   :  { %5374 = vmatpush3.bf16.msra.mxu0 %v5371_v17  ;;  %v3373_v17 = vld [vmem:[%s8046_s4 + $0x158] sm:$0xff] }
 0x22d   :  { %5376 = vmatprep.subr.bf16.mxu0 %v5375_v25 }
 0x22e   :  { %5406 = vmatpush3.bf16.msra.mxu1 %v5403_v18  ;;  %v5435_v18 = vpack.c.bf16 %v3373_v17, %v3372_v16  ;;  %v3405_v16 = vld [vmem:[%s8050_s8 + $0x128] sm:$0xff] }
 0x22f   :  { %5408 = vmatprep.subr.bf16.mxu1 %v5407_v26 }
 0x230   :  { %5378 = vmatpush3.bf16.msra.mxu0 %v5375_v25  ;;  %v3377_v25 = vld [vmem:[%s8046_s4 + $0x178] sm:$0xff] }
 0x231   :  { %5380 = vmatprep.subr.bf16.mxu0 %v5379_v33 }
 0x232   :  { %5410 = vmatpush3.bf16.msra.mxu1 %v5407_v26  ;;  %v5443_v26 = vpack.c.bf16 %v3377_v25, %v3376_v24 }
 0x233   :  { %5412 = vmatprep.subr.bf16.mxu1 %v5411_v34 }
 0x234   :  { %5382 = vmatpush3.bf16.msra.mxu0 %v5379_v33 }
 0x235   :  { %5416 = vmatprep.subr.bf16.mxu0 %v5415_v1 }
 0x236   :  { %5414 = vmatpush3.bf16.msra.mxu1 %v5411_v34 }
 0x2ec   :  { %v4417_v36 = vpop.f32.mrb[2].mxu1 }
 0x2ed   :  { %v496_v37 = vadd.f32 %v4417_v36, %v3317_v35  ;;  %v490_v38 = vpop.f32.mrb[3].mxu1 }
 0x2ee   :  { %v491_v39 = vadd.f32 %v3317_v35, %v490_v38 }
 0x2ef   :  { %6099 = vtanh.f32 %v496_v37  ;;  %v3299_v37 = vld [vmem:[%s8054_s2 + $0x18] sm:$0xff] }
 0x2f0   :  { %6101 = vtanh.f32 %v491_v39 }
 0x2f9   :  { %v6100_v12 = vpop.eup %6099 }
 0x2fa   :  { %v6102_v40 = vpop.eup %6101  ;;  %v502_v45 = vmul.f32 %v6100_v12, %v6520_v44  ;;  %v3318_v44 = vld [vmem:[%s8052_s3 + $0x2] sm:$0x1]  ;;  %v3298_v12 = vld [vmem:[%s8054_s2 + $0x10] sm:$0xff] }
 0x2fb   :  { %v501_v27 = vmul.f32 %v6102_v40, %v6512_v42 }
 0x2fc   :  { %v509_v46 = vrot.slane %v502_v45, 4 }
 0x2fd   :  { %v503_v9 = vrot.slane %v501_v27, 4 }
 0x2fe   :  { %v510_v47 = vadd.f32 %v509_v46, %v502_v45  ;;  %v3355_v46 = vld [vmem:[%s8055_s9 + $0x1] ss:$0 sm:$0xff] }
 0x2ff   :  { %v504_v48 = vadd.f32 %v503_v9, %v501_v27 }
 0x300   :  { %v511_v49 = vrot.slane %v510_v47, 2 }
 0x301   :  { %v505_v50 = vrot.slane %v504_v48, 2 }
 0x302   :  { %v512_v51 = vadd.f32 %v511_v49, %v510_v47 }
 0x303   :  { %v506_v52 = vadd.f32 %v505_v50, %v504_v48 }
 0x304   :  { %v513_v53 = vrot.slane %v512_v51, 1 }
 0x305   :  { %v507_v54 = vrot.slane %v506_v52, 1 }
 0x306   :  { %v514_v56 = vadd.f32 %v513_v53, %v512_v51 }
 0x307   :  { %v508_v42 = vadd.f32 %v507_v54, %v506_v52 }
 0x308   :  { %v519_v57 = vmul.f32 %v3319_v55, %v514_v56 }
 0x309   :  { %v518_v58 = vmul.f32 %v3318_v44, %v508_v42 }
 0x30a   :  { %v527_v59 = vrot.slane %v519_v57, %v6434_v28 }
 0x30b   :  { %v523_v60 = vrot.slane %v518_v58, %v6434_v28 }
 0x30c   :  { %v529_v62 = vadd.f32 %v527_v59, %v502_v45  ;;  %v6709_v59 = vld [vmem:[%s8048_s1 + $0x20] sm:$0xff] }
 0x30d   :  { %v528_v61 = vadd.f32 %v523_v60, %v501_v27 }
 0x30f   :  { %4450 = vmatprep.mubr.f32.mxu0 %v528_v61  ;;  %4485 = vmatprep.mubr.f32.mxu1 %v528_v61  ;;  %v6717_v61 = vld [vmem:[%s8048_s1 + $0x28] sm:$0xff] }
 0x310   :  { %4451 = vmatmul.mubr.f32.vlgmr.msra.gmra.mrb[4].mxu0 %v529_v62  ;;  %4486 = vmatmul.mubr.f32.vlgmr.msra.gmra.mrb[4].mxu1 %v529_v62 }
 0x311   :  { %5418 = vmatpush3.bf16.msra.mxu0 %v5415_v1 }
 0x312   :  { %5420 = vmatprep.subr.bf16.mxu0 %v5419_v4 }
 0x315   :  { %5422 = vmatpush3.bf16.msra.mxu0 %v5419_v4  ;;  %v3384_v4 = vld [vmem:[%s8049_s6 + $0x110] sm:$0xff] }
 0x316   :  { %5424 = vmatprep.subr.bf16.mxu0 %v5423_v7 }
 0x319   :  { %5426 = vmatpush3.bf16.msra.mxu0 %v5423_v7  ;;  %v5451_v7 = vpack.c.bf16 %v3385_v5, %v3384_v4 }
 0x31a   :  { %5428 = vmatprep.subr.bf16.mxu0 %v5427_v11 }
 0x31d   :  { %5430 = vmatpush3.bf16.msra.mxu0 %v5427_v11  ;;  %v3387_v11 = vld [vmem:[%s8049_s6 + $0x128] sm:$0xff] }
 0x31e   :  { %5432 = vmatprep.subr.bf16.mxu0 %v5431_v15  ;;  %v5455_v14 = vpack.c.bf16 %v3387_v11, %v3386_v10  ;;  %v3381_v11 = vld [vmem:[%s8052_s3 + $0x5] sm:$0x1] }
 0x321   :  { %5434 = vmatpush3.bf16.msra.mxu0 %v5431_v15  ;;  %v3404_v15 = vld [vmem:[%s8050_s8 + $0x120] sm:$0xff] }
 0x322   :  { %5436 = vmatprep.subr.bf16.mxu0 %v5435_v18  ;;  %v5487_v17 = vpack.c.bf16 %v3405_v16, %v3404_v15 }
 0x325   :  { %5438 = vmatpush3.bf16.msra.mxu0 %v5435_v18  ;;  %v3388_v18 = vld [vmem:[%s8049_s6 + $0x130] sm:$0xff] }
 0x326   :  { %5440 = vmatprep.subr.bf16.mxu0 %v5439_v23  ;;  %v5459_v24 = vpack.c.bf16 %v3389_v19, %v3388_v18 }
 0x329   :  { %5442 = vmatpush3.bf16.msra.mxu0 %v5439_v23  ;;  %v3407_v23 = vld [vmem:[%s8050_s8 + $0x138] sm:$0xff] }
 0x32a   :  { %5444 = vmatprep.subr.bf16.mxu0 %v5443_v26  ;;  %v5491_v25 = vpack.c.bf16 %v3407_v23, %v3406_v21  ;;  %v3424_v21 = vld [vmem:[%s8046_s4 + $0x180] sm:$0xff]  ;;  %v3425_v23 = vld [vmem:[%s8046_s4 + $0x188] sm:$0xff] }
 0x32d   :  { %5446 = vmatpush3.bf16.msra.mxu0 %v5443_v26  ;;  %v3390_v26 = vld [vmem:[%s8049_s6 + $0x140] sm:$0xff] }
 0x32e   :  { %5480 = vmatprep.subr.bf16.mxu0 %v5479_v3 }
 0x3e3   :  { %v4452_v30 = vpop.f32.mrb[4].mxu0  ;;  %v4487_v31 = vpop.f32.mrb[4].mxu1 }
 0x3e4   :  { %v627_v32 = vadd.f32 %v4452_v30, %v3337_v29  ;;  %v621_v33 = vpop.f32.mrb[5].mxu0  ;;  %v725_v34 = vpop.f32.mrb[5].mxu1  ;;  %v731_v9 = vadd.f32 %v4487_v31, %v3355_v46  ;;  %v3408_v30 = vld [vmem:[%s8050_s8 + $0x140] sm:$0xff]  ;;  %v3409_v31 = vld [vmem:[%s8050_s8 + $0x148] sm:$0xff] }
 0x3e5   :  { %v622_v35 = vadd.f32 %v3337_v29, %v621_v33  ;;  %v726_v48 = vadd.f32 %v3355_v46, %v725_v34  ;;  %v3391_v29 = vld [vmem:[%s8049_s6 + $0x148] sm:$0xff]  ;;  %v5495_v33 = vpack.c.bf16 %v3409_v31, %v3408_v30  ;;  %v3392_v34 = vld [vmem:[%s8049_s6 + $0x150] sm:$0xff]  ;;  %v3412_v46 = vld [vmem:[%s8050_s8 + $0x160] sm:$0xff] }
 0x3e6   :  { %6103 = vtanh.f32 %v627_v32  ;;  %v735_v52 = vmul.f32 %v3299_v37, %v731_v9  ;;  %v5463_v32 = vpack.c.bf16 %v3391_v29, %v3390_v26  ;;  %v3413_v9 = vld [vmem:[%s8050_s8 + $0x168] sm:$0xff]  ;;  %v3427_v26 = vld [vmem:[%s8046_s4 + $0x198] sm:$0xff]  ;;  %v3428_v30 = vld [vmem:[%s8046_s4 + $0x1a0] sm:$0xff] }
 0x3e7   :  { %6105 = vtanh.f32 %v622_v35  ;;  %v734_v54 = vmul.f32 %v3298_v12, %v726_v48  ;;  %v3393_v35 = vld [vmem:[%s8049_s6 + $0x158] sm:$0xff]  ;;  %v5503_v48 = vpack.c.bf16 %v3413_v9, %v3412_v46  ;;  %v3429_v31 = vld [vmem:[%s8046_s4 + $0x1a8] sm:$0xff]  ;;  %v3436_v46 = vld [vmem:[%s8046_s4 + $0x1e0] sm:$0xff] }
 0x3e8   :  { %v3437_v9 = vld [vmem:[%s8046_s4 + $0x1e8] sm:$0xff] }
 0x3f0   :  { %v6104_v36 = vpop.eup %6103 }
 0x3f1   :  { %v6106_v38 = vpop.eup %6105  ;;  %v6689_v39 = vmul.f32 %v6104_v36, %v3299_v37  ;;  %v3410_v36 = vld [vmem:[%s8050_s8 + $0x150] sm:$0xff] }
 0x3f2   :  { %v6694_v40 = vmul.f32 %v6106_v38, %v3298_v12  ;;  %v5467_v38 = vpack.c.bf16 %v3393_v35, %v3392_v34  ;;  %v3431_v34 = vld [vmem:[%s8046_s4 + $0x1b8] sm:$0xff] }
 0x3f3   :  { %v738_v45 = vmul.f32 1.442695, %v6689_v39 }
 0x3f4   :  { %v736_v27 = vmul.f32 1.442695, %v6694_v40 }
 0x3f5   :  { %6107 = vpow2.f32 %v738_v45  ;;  %v3394_v45 = vld [vmem:[%s8049_s6 + $0x160] sm:$0xff] }
 0x3f6   :  { %6109 = vpow2.f32 %v736_v27  ;;  %v3395_v27 = vld [vmem:[%s8049_s6 + $0x168] sm:$0xff] }
 0x3ff   :  { %v6108_v47 = vpop.eup %6107 }
 0x400   :  { %v6110_v49 = vpop.eup %6109  ;;  %v3357_v50 = vadd.f32 -1.0, %v6108_v47  ;;  %v5471_v47 = vpack.c.bf16 %v3395_v27, %v3394_v45  ;;  %v3435_v45 = vld [vmem:[%s8046_s4 + $0x1d8] sm:$0xff] }
 0x401   :  { %v3356_v51 = vadd.f32 -1.0, %v6110_v49  ;;  %v3396_v49 = vld [vmem:[%s8049_s6 + $0x170] sm:$0xff] }
 0x402   :  { %v743_v53 = vmul.f32 %v3357_v50, %v6507_v41  ;;  %v3397_v50 = vld [vmem:[%s8049_s6 + $0x178] sm:$0xff] }
 0x403   :  { %v742_v55 = vmul.f32 %v3356_v51, %v6515_v43  ;;  %v3414_v51 = vld [vmem:[%s8050_s8 + $0x170] sm:$0xff] }
 0x404   :  { %v745_v44 = vadd.f32 %v743_v53, %v735_v52  ;;  %v3415_v52 = vld [vmem:[%s8050_s8 + $0x178] sm:$0xff]  ;;  %v5475_v53 = vpack.c.bf16 %v3397_v50, %v3396_v49 }
 0x405   :  { %v744_v56 = vadd.f32 %v742_v55, %v734_v54  ;;  %v5507_v54 = vpack.c.bf16 %v3415_v52, %v3414_v51  ;;  %v3379_v55 = vld [vmem:[%s8051_s5 + $0x2] ss:$0 sm:$0xff]  ;;  %v3439_v49 = vld [vmem:[%s8046_s4 + $0x1f8] sm:$0xff] }
 0x406   :  { %v747_v42 = vmul.f32 %v3299_v37, %v745_v44  ;;  %v3411_v37 = vld [vmem:[%s8050_s8 + $0x158] sm:$0xff]  ;;  %v3399_v51 = vld [vmem:[%s8053_s7 + $0x2] ss:$0 sm:$0xff] }
 0x407   :  { %v746_v57 = vmul.f32 %v3298_v12, %v744_v56  ;;  %v5499_v12 = vpack.c.bf16 %v3411_v37, %v3410_v36  ;;  %v3432_v36 = vld [vmem:[%s8046_s4 + $0x1c0] sm:$0xff]  ;;  %v3433_v37 = vld [vmem:[%s8046_s4 + $0x1c8] sm:$0xff] }
 0x408   :  { %v6704_v58 = vadd.f32 %v747_v42, %v6507_v41 }
 0x409   :  { %v6712_v60 = vadd.f32 %v746_v57, %v6515_v43  ;;  %v3383_v43 = vld [vmem:[%s8049_s6 + $0x108] sm:$0xff] }
 0x40a   :  { %v759_v41 = vmul.f32 %v6717_v61, %v6704_v58  ;;  %v5447_v1 = vpack.c.bf16 %v3383_v43, %v3382_v63 }
 0x40b   :  { %v758_v62 = vmul.f32 %v6709_v59, %v6712_v60 }
 0x40c   :  { %5448 = vmatprep.subr.bf16.mxu1 %v5447_v1 }
 0x40d   :  { %4520 = vmatprep.mubr.f32.mxu0 %v758_v62  ;;  %5450 = vmatpush3.bf16.msra.mxu1 %v5447_v1 }
 0x40e   :  { %4521 = vmatmul.mubr.f32.vlgmr.msra.gmra.mrb[6].mxu0 %v759_v41  ;;  %5452 = vmatprep.subr.bf16.mxu1 %v5451_v7 }
 0x40f   :  { %5482 = vmatpush3.bf16.msra.mxu0 %v5479_v3 }
 0x410   :  { %5484 = vmatprep.subr.bf16.mxu0 %v5483_v13 }
 0x411   :  { %5454 = vmatpush3.bf16.msra.mxu1 %v5451_v7 }
 0x412   :  { %5456 = vmatprep.subr.bf16.mxu1 %v5455_v14 }
 0x413   :  { %5486 = vmatpush3.bf16.msra.mxu0 %v5483_v13 }
 0x414   :  { %5488 = vmatprep.subr.bf16.mxu0 %v5487_v17 }
 0x415   :  { %5458 = vmatpush3.bf16.msra.mxu1 %v5455_v14 }
 0x416   :  { %5460 = vmatprep.subr.bf16.mxu1 %v5459_v24 }
 0x417   :  { %5490 = vmatpush3.bf16.msra.mxu0 %v5487_v17 }
 0x418   :  { %5492 = vmatprep.subr.bf16.mxu0 %v5491_v25 }
 0x419   :  { %5462 = vmatpush3.bf16.msra.mxu1 %v5459_v24  ;;  %v5511_v24 = vpack.c.bf16 %v3425_v23, %v3424_v21  ;;  %v6916_v21 = vld [vmem:[%s8048_s1 + $0x38] sm:$0xff] }
 0x41a   :  { %5464 = vmatprep.subr.bf16.mxu1 %v5463_v32 }
 0x41b   :  { %5494 = vmatpush3.bf16.msra.mxu0 %v5491_v25  ;;  %v3426_v25 = vld [vmem:[%s8046_s4 + $0x190] sm:$0xff] }
 0x41c   :  { %5496 = vmatprep.subr.bf16.mxu0 %v5495_v33  ;;  %v5515_v29 = vpack.c.bf16 %v3427_v26, %v3426_v25  ;;  %v3462_v25 = vld [vmem:[%s8050_s8 + $0x180] sm:$0xff] }
 0x41d   :  { %5466 = vmatpush3.bf16.msra.mxu1 %v5463_v32  ;;  %v5519_v32 = vpack.c.bf16 %v3429_v31, %v3428_v30  ;;  %v3446_v31 = vld [vmem:[%s8049_s6 + $0x190] sm:$0xff] }
 0x41e   :  { %5468 = vmatprep.subr.bf16.mxu1 %v5467_v38 }
 0x41f   :  { %5498 = vmatpush3.bf16.msra.mxu0 %v5495_v33  ;;  %v3430_v33 = vld [vmem:[%s8046_s4 + $0x1b0] sm:$0xff] }
 0x420   :  { %5500 = vmatprep.subr.bf16.mxu0 %v5499_v12  ;;  %v5523_v35 = vpack.c.bf16 %v3431_v34, %v3430_v33  ;;  %v3464_v33 = vld [vmem:[%s8050_s8 + $0x190] sm:$0xff] }
 0x421   :  { %5470 = vmatpush3.bf16.msra.mxu1 %v5467_v38  ;;  %v5527_v38 = vpack.c.bf16 %v3433_v37, %v3432_v36  ;;  %v3448_v36 = vld [vmem:[%s8049_s6 + $0x1a0] sm:$0xff]  ;;  %v3449_v37 = vld [vmem:[%s8049_s6 + $0x1a8] sm:$0xff] }
 0x422   :  { %5472 = vmatprep.subr.bf16.mxu1 %v5471_v47 }
 0x423   :  { %5502 = vmatpush3.bf16.msra.mxu0 %v5499_v12  ;;  %v3434_v12 = vld [vmem:[%s8046_s4 + $0x1d0] sm:$0xff] }
 0x424   :  { %5504 = vmatprep.subr.bf16.mxu0 %v5503_v48  ;;  %v5531_v27 = vpack.c.bf16 %v3435_v45, %v3434_v12  ;;  %v5551_v12 = vpack.c.bf16 %v3449_v37, %v3448_v36  ;;  %v3466_v45 = vld [vmem:[%s8050_s8 + $0x1a0] sm:$0xff] }
 0x425   :  { %5474 = vmatpush3.bf16.msra.mxu1 %v5471_v47  ;;  %v5535_v47 = vpack.c.bf16 %v3437_v9, %v3436_v46  ;;  %v3450_v9 = vld [vmem:[%s8049_s6 + $0x1b0] sm:$0xff] }
 0x426   :  { %5476 = vmatprep.subr.bf16.mxu1 %v5475_v53 }
 0x427   :  { %5506 = vmatpush3.bf16.msra.mxu0 %v5503_v48  ;;  %v3438_v48 = vld [vmem:[%s8046_s4 + $0x1f0] sm:$0xff] }
 0x428   :  { %5508 = vmatprep.subr.bf16.mxu0 %v5507_v54  ;;  %v5539_v50 = vpack.c.bf16 %v3439_v49, %v3438_v48  ;;  %v3468_v48 = vld [vmem:[%s8050_s8 + $0x1b0] sm:$0xff]  ;;  %v3469_v49 = vld [vmem:[%s8050_s8 + $0x1b8] sm:$0xff] }
 0x429   :  { %5478 = vmatpush3.bf16.msra.mxu1 %v5475_v53 }
 0x42a   :  { %5512 = vmatprep.subr.bf16.mxu1 %v5511_v24 }
 0x42b   :  { %5510 = vmatpush3.bf16.msra.mxu0 %v5507_v54 }
 0x4e1   :  { %v4522_v44 = vpop.f32.mrb[6].mxu0 }
 0x4e2   :  { %v857_v56 = vadd.f32 %v4522_v44, %v3379_v55  ;;  %v851_v42 = vpop.f32.mrb[7].mxu0 }
 0x4e3   :  { %v852_v57 = vadd.f32 %v3379_v55, %v851_v42 }
 0x4e4   :  { %6111 = vtanh.f32 %v857_v56 }
 0x4e5   :  { %6113 = vtanh.f32 %v852_v57  ;;  %v3361_v57 = vld [vmem:[%s8054_s2 + $0x28] sm:$0xff] }
 0x4ee   :  { %v6112_v62 = vpop.eup %6111 }
 0x4ef   :  { %v6114_v41 = vpop.eup %6113  ;;  %v863_v63 = vmul.f32 %v6112_v62, %v6717_v61  ;;  %v3380_v61 = vld [vmem:[%s8052_s3 + $0x4] sm:$0x1] }
 0x4f0   :  { %v862_v43 = vmul.f32 %v6114_v41, %v6709_v59  ;;  %v751_v41 = vadd.f32 %v6689_v39, %v6492_v20  ;;  %v3417_v20 = vld [vmem:[%s8055_s9 + $0x2] ss:$0 sm:$0xff] }
 0x4f1   :  { %v870_v0 = vrot.slane %v863_v63, 4 }
 0x4f2   :  { %v864_v1 = vrot.slane %v862_v43, 4 }
 0x4f3   :  { %v871_v2 = vadd.f32 %v870_v0, %v863_v63  ;;  %v750_v0 = vadd.f32 %v6694_v40, %v6497_v22 }
 0x4f4   :  { %v865_v3 = vadd.f32 %v864_v1, %v862_v43 }
 0x4f5   :  { %v872_v4 = vrot.slane %v871_v2, 2 }
 0x4f6   :  { %v866_v5 = vrot.slane %v865_v3, 2 }
 0x4f7   :  { %v873_v6 = vadd.f32 %v872_v4, %v871_v2 }
 0x4f8   :  { %v867_v7 = vadd.f32 %v866_v5, %v865_v3 }
 0x4f9   :  { %v874_v8 = vrot.slane %v873_v6, 1 }
 0x4fa   :  { %v868_v10 = vrot.slane %v867_v7, 1 }
 0x4fb   :  { %v875_v13 = vadd.f32 %v874_v8, %v873_v6 }
 0x4fc   :  { %v869_v59 = vadd.f32 %v868_v10, %v867_v7 }
 0x4fd   :  { %v880_v14 = vmul.f32 %v3381_v11, %v875_v13 }
 0x4fe   :  { %v879_v15 = vmul.f32 %v3380_v61, %v869_v59 }
 0x4ff   :  { %v888_v16 = vrot.slane %v880_v14, %v6434_v28 }
 0x500   :  { %v884_v17 = vrot.slane %v879_v15, %v6434_v28 }
 0x501   :  { %v890_v19 = vadd.f32 %v888_v16, %v863_v63 }
 0x502   :  { %v889_v18 = vadd.f32 %v884_v17, %v862_v43  ;;  %v3360_v43 = vld [vmem:[%s8054_s2 + $0x20] sm:$0xff] }
 0x504   :  { %4555 = vmatprep.mubr.f32.mxu1 %v889_v18  ;;  %4590 = vmatprep.mubr.f32.mxu0 %v889_v18  ;;  %v6908_v18 = vld [vmem:[%s8048_s1 + $0x30] sm:$0xff] }
 0x505   :  { %4556 = vmatmul.mubr.f32.vlgmr.msra.gmra.mrb[6].mxu1 %v890_v19  ;;  %4591 = vmatmul.mubr.f32.vlgmr.msra.gmra.mrb[8].mxu0 %v890_v19 }
 0x506   :  { %5514 = vmatpush3.bf16.msra.mxu1 %v5511_v24  ;;  %v3444_v24 = vld [vmem:[%s8049_s6 + $0x180] sm:$0xff] }
 0x507   :  { %5516 = vmatprep.subr.bf16.mxu1 %v5515_v29 }
 0x50a   :  { %5518 = vmatpush3.bf16.msra.mxu1 %v5515_v29  ;;  %v3463_v29 = vld [vmem:[%s8050_s8 + $0x188] sm:$0xff] }
 0x50b   :  { %5520 = vmatprep.subr.bf16.mxu1 %v5519_v32  ;;  %v5575_v30 = vpack.c.bf16 %v3463_v29, %v3462_v25 }
 0x50e   :  { %5522 = vmatpush3.bf16.msra.mxu1 %v5519_v32  ;;  %v3447_v32 = vld [vmem:[%s8049_s6 + $0x198] sm:$0xff] }
 0x50f   :  { %5524 = vmatprep.subr.bf16.mxu1 %v5523_v35  ;;  %v5547_v34 = vpack.c.bf16 %v3447_v32, %v3446_v31 }
 0x512   :  { %5526 = vmatpush3.bf16.msra.mxu1 %v5523_v35  ;;  %v3465_v35 = vld [vmem:[%s8050_s8 + $0x198] sm:$0xff] }
 0x513   :  { %5528 = vmatprep.subr.bf16.mxu1 %v5527_v38 }
 0x516   :  { %5530 = vmatpush3.bf16.msra.mxu1 %v5527_v38  ;;  %v5579_v38 = vpack.c.bf16 %v3465_v35, %v3464_v33  ;;  %v3443_v35 = vld [vmem:[%s8052_s3 + $0x7] sm:$0x1] }
 0x517   :  { %5532 = vmatprep.subr.bf16.mxu1 %v5531_v27 }
 0x51a   :  { %5534 = vmatpush3.bf16.msra.mxu1 %v5531_v27  ;;  %v3467_v27 = vld [vmem:[%s8050_s8 + $0x1a8] sm:$0xff] }
 0x51b   :  { %5536 = vmatprep.subr.bf16.mxu1 %v5535_v47  ;;  %v5583_v46 = vpack.c.bf16 %v3467_v27, %v3466_v45 }
 0x51e   :  { %5538 = vmatpush3.bf16.msra.mxu1 %v5535_v47  ;;  %v3451_v47 = vld [vmem:[%s8049_s6 + $0x1b8] sm:$0xff] }
 0x51f   :  { %5540 = vmatprep.subr.bf16.mxu1 %v5539_v50 }
 0x522   :  { %5542 = vmatpush3.bf16.msra.mxu1 %v5539_v50  ;;  %v5555_v50 = vpack.c.bf16 %v3451_v47, %v3450_v9  ;;  %v3486_v9 = vld [vmem:[%s8046_s4 + $0x200] sm:$0xff]  ;;  %v3487_v47 = vld [vmem:[%s8046_s4 + $0x208] sm:$0xff] }
 0x523   :  { %5576 = vmatprep.subr.bf16.mxu1 %v5575_v30 }
 0x5d8   :  { %v4557_v52 = vpop.f32.mrb[6].mxu1  ;;  %v4592_v53 = vpop.f32.mrb[8].mxu0 }
 0x5d9   :  { %v988_v54 = vadd.f32 %v4557_v52, %v3399_v51  ;;  %v982_v55 = vpop.f32.mrb[7].mxu1  ;;  %v1086_v44 = vpop.f32.mrb[9].mxu0  ;;  %v1092_v39 = vadd.f32 %v4592_v53, %v3417_v20  ;;  %v3452_v52 = vld [vmem:[%s8049_s6 + $0x1c0] sm:$0xff]  ;;  %v3453_v53 = vld [vmem:[%s8049_s6 + $0x1c8] sm:$0xff] }
 0x5da   :  { %v983_v56 = vadd.f32 %v3399_v51, %v982_v55  ;;  %v1087_v7 = vadd.f32 %v3417_v20, %v1086_v44  ;;  %v5587_v51 = vpack.c.bf16 %v3469_v49, %v3468_v48  ;;  %v3471_v55 = vld [vmem:[%s8050_s8 + $0x1c8] sm:$0xff]  ;;  %v5559_v44 = vpack.c.bf16 %v3453_v53, %v3452_v52  ;;  %v3488_v49 = vld [vmem:[%s8046_s4 + $0x210] sm:$0xff]  ;;  %v3490_v52 = vld [vmem:[%s8046_s4 + $0x220] sm:$0xff] }
 0x5db   :  { %6115 = vtanh.f32 %v988_v54  ;;  %v1096_v22 = vmul.f32 %v3361_v57, %v1092_v39  ;;  %v3470_v54 = vld [vmem:[%s8050_s8 + $0x1c0] sm:$0xff]  ;;  %v5607_v48 = vpack.c.bf16 %v3487_v47, %v3486_v9  ;;  %v3491_v53 = vld [vmem:[%s8046_s4 + $0x228] sm:$0xff] }
 0x5dc   :  { %6117 = vtanh.f32 %v983_v56  ;;  %v1095_v61 = vmul.f32 %v3360_v43, %v1087_v7  ;;  %v5591_v56 = vpack.c.bf16 %v3471_v55, %v3470_v54  ;;  %v3459_v7 = vld [vmem:[%s8049_s6 + $0x1f8] sm:$0xff]  ;;  %v5615_v54 = vpack.c.bf16 %v3491_v53, %v3490_v52  ;;  %v3492_v55 = vld [vmem:[%s8046_s4 + $0x230] sm:$0xff]  ;;  %v3506_v9 = vld [vmem:[%s8049_s6 + $0x200] sm:$0xff] }
 0x5dd   :  { %v3524_v47 = vld [vmem:[%s8050_s8 + $0x200] sm:$0xff]  ;;  %v3509_v52 = vld [vmem:[%s8049_s6 + $0x218] sm:$0xff]  ;;  %v3526_v53 = vld [vmem:[%s8050_s8 + $0x210] sm:$0xff] }
 0x5e5   :  { %v6116_v42 = vpop.eup %6115 }
 0x5e6   :  { %v6118_v62 = vpop.eup %6117  ;;  %v994_v63 = vmul.f32 %v6116_v42, %v3361_v57  ;;  %v3454_v42 = vld [vmem:[%s8049_s6 + $0x1d0] sm:$0xff] }
 0x5e7   :  { %v993_v1 = vmul.f32 %v6118_v62, %v3360_v43  ;;  %v3472_v62 = vld [vmem:[%s8050_s8 + $0x1d0] sm:$0xff] }
 0x5e8   :  { %v1099_v2 = vmul.f32 1.442695, %v994_v63  ;;  %v6893_v3 = vadd.f32 %v994_v63, %v751_v41  ;;  %v3473_v41 = vld [vmem:[%s8050_s8 + $0x1d8] sm:$0xff] }
 0x5e9   :  { %v1097_v4 = vmul.f32 1.442695, %v993_v1  ;;  %v6895_v5 = vadd.f32 %v993_v1, %v750_v0  ;;  %v3456_v0 = vld [vmem:[%s8049_s6 + $0x1e0] sm:$0xff]  ;;  %v3457_v1 = vld [vmem:[%s8049_s6 + $0x1e8] sm:$0xff] }
 0x5ea   :  { %6119 = vpow2.f32 %v1099_v2  ;;  %v3474_v2 = vld [vmem:[%s8050_s8 + $0x1e0] sm:$0xff]  ;;  %v5567_v20 = vpack.c.bf16 %v3457_v1, %v3456_v0  ;;  %v3499_v1 = vld [vmem:[%s8046_s4 + $0x268] sm:$0xff] }
 0x5eb   :  { %6121 = vpow2.f32 %v1097_v4  ;;  %v3475_v4 = vld [vmem:[%s8050_s8 + $0x1e8] sm:$0xff]  ;;  %v3498_v0 = vld [vmem:[%s8046_s4 + $0x260] sm:$0xff] }
 0x5ec   :  { %v5599_v39 = vpack.c.bf16 %v3475_v4, %v3474_v2  ;;  %v5631_v2 = vpack.c.bf16 %v3499_v1, %v3498_v0  ;;  %v3500_v4 = vld [vmem:[%s8046_s4 + $0x270] sm:$0xff]  ;;  %v3513_v0 = vld [vmem:[%s8049_s6 + $0x238] sm:$0xff] }
 0x5ed   :  { %v3530_v1 = vld [vmem:[%s8050_s8 + $0x230] sm:$0xff] }
 0x5f4   :  { %v6120_v6 = vpop.eup %6119 }
 0x5f5   :  { %v6122_v8 = vpop.eup %6121  ;;  %v3419_v10 = vadd.f32 -1.0, %v6120_v6  ;;  %v3458_v6 = vld [vmem:[%s8049_s6 + $0x1f0] sm:$0xff] }
 0x5f6   :  { %v3418_v11 = vadd.f32 -1.0, %v6122_v8  ;;  %v3476_v8 = vld [vmem:[%s8050_s8 + $0x1f0] sm:$0xff] }
 0x5f7   :  { %v1104_v40 = vmul.f32 %v3419_v10, %v6704_v58  ;;  %v3477_v10 = vld [vmem:[%s8050_s8 + $0x1f8] sm:$0xff] }
 0x5f8   :  { %v1103_v13 = vmul.f32 %v3418_v11, %v6712_v60  ;;  %v5571_v11 = vpack.c.bf16 %v3459_v7, %v3458_v6  ;;  %v3461_v6 = vld [vmem:[%s8053_s7 + $0x3] ss:$0 sm:$0xff] }
 0x5f9   :  { %v1106_v59 = vadd.f32 %v1104_v40, %v1096_v22  ;;  %v5603_v22 = vpack.c.bf16 %v3477_v10, %v3476_v8  ;;  %v3441_v40 = vld [vmem:[%s8051_s5 + $0x3] ss:$0 sm:$0xff] }
 0x5fa   :  { %v1105_v14 = vadd.f32 %v1103_v13, %v1095_v61 }
 0x5fb   :  { %v1108_v15 = vmul.f32 %v3361_v57, %v1106_v59  ;;  %v3455_v57 = vld [vmem:[%s8049_s6 + $0x1d8] sm:$0xff] }
 0x5fc   :  { %v1107_v16 = vmul.f32 %v3360_v43, %v1105_v14  ;;  %v5563_v63 = vpack.c.bf16 %v3455_v57, %v3454_v42  ;;  %v5595_v43 = vpack.c.bf16 %v3473_v41, %v3472_v62  ;;  %v3494_v42 = vld [vmem:[%s8046_s4 + $0x240] sm:$0xff]  ;;  %v3495_v57 = vld [vmem:[%s8046_s4 + $0x248] sm:$0xff]  ;;  %v3496_v41 = vld [vmem:[%s8046_s4 + $0x250] sm:$0xff] }
 0x5fd   :  { %v6903_v17 = vadd.f32 %v1108_v15, %v6704_v58  ;;  %v5623_v62 = vpack.c.bf16 %v3495_v57, %v3494_v42 }
 0x5fe   :  { %v6911_v19 = vadd.f32 %v1107_v16, %v6712_v60  ;;  %v3445_v60 = vld [vmem:[%s8049_s6 + $0x188] sm:$0xff] }
 0x5ff   :  { %v1120_v58 = vmul.f32 %v6916_v21, %v6903_v17  ;;  %v5543_v26 = vpack.c.bf16 %v3445_v60, %v3444_v24 }
 0x600   :  { %v1119_v23 = vmul.f32 %v6908_v18, %v6911_v19 }
 0x601   :  { %5544 = vmatprep.subr.bf16.mxu0 %v5543_v26 }
 0x602   :  { %4625 = vmatprep.mubr.f32.mxu1 %v1119_v23  ;;  %5546 = vmatpush3.bf16.msra.mxu0 %v5543_v26 }
 0x603   :  { %4626 = vmatmul.mubr.f32.vlgmr.msra.gmra.mrb[8].mxu1 %v1120_v58  ;;  %5548 = vmatprep.subr.bf16.mxu0 %v5547_v34 }
 0x604   :  { %5578 = vmatpush3.bf16.msra.mxu1 %v5575_v30 }
 0x605   :  { %5580 = vmatprep.subr.bf16.mxu1 %v5579_v38 }
 0x606   :  { %5550 = vmatpush3.bf16.msra.mxu0 %v5547_v34 }
 0x607   :  { %5552 = vmatprep.subr.bf16.mxu0 %v5551_v12 }
 0x608   :  { %5582 = vmatpush3.bf16.msra.mxu1 %v5579_v38 }
 0x609   :  { %5584 = vmatprep.subr.bf16.mxu1 %v5583_v46 }
 0x60a   :  { %5554 = vmatpush3.bf16.msra.mxu0 %v5551_v12 }
 0x60b   :  { %5556 = vmatprep.subr.bf16.mxu0 %v5555_v50 }
 0x60c   :  { %5586 = vmatpush3.bf16.msra.mxu1 %v5583_v46 }
 0x60d   :  { %5588 = vmatprep.subr.bf16.mxu1 %v5587_v51 }
 0x60e   :  { %5558 = vmatpush3.bf16.msra.mxu0 %v5555_v50  ;;  %v3489_v50 = vld [vmem:[%s8046_s4 + $0x218] sm:$0xff] }
 0x60f   :  { %5560 = vmatprep.subr.bf16.mxu0 %v5559_v44 }
 0x610   :  { %5590 = vmatpush3.bf16.msra.mxu1 %v5587_v51  ;;  %v5611_v51 = vpack.c.bf16 %v3489_v50, %v3488_v49  ;;  %v3525_v49 = vld [vmem:[%s8050_s8 + $0x208] sm:$0xff] }
 0x611   :  { %5592 = vmatprep.subr.bf16.mxu1 %v5591_v56  ;;  %v5671_v50 = vpack.c.bf16 %v3525_v49, %v3524_v47 }
 0x612   :  { %5562 = vmatpush3.bf16.msra.mxu0 %v5559_v44  ;;  %v3493_v44 = vld [vmem:[%s8046_s4 + $0x238] sm:$0xff] }
 0x613   :  { %5564 = vmatprep.subr.bf16.mxu0 %v5563_v63 }
 0x614   :  { %5594 = vmatpush3.bf16.msra.mxu1 %v5591_v56  ;;  %v5619_v56 = vpack.c.bf16 %v3493_v44, %v3492_v55  ;;  %v3527_v55 = vld [vmem:[%s8050_s8 + $0x218] sm:$0xff]  ;;  %v3510_v44 = vld [vmem:[%s8049_s6 + $0x220] sm:$0xff] }
 0x615   :  { %5596 = vmatprep.subr.bf16.mxu1 %v5595_v43  ;;  %v5675_v42 = vpack.c.bf16 %v3527_v55, %v3526_v53  ;;  %v3505_v55 = vld [vmem:[%s8052_s3 + $0x9] sm:$0x1] }
 0x616   :  { %5566 = vmatpush3.bf16.msra.mxu0 %v5563_v63  ;;  %v3497_v63 = vld [vmem:[%s8046_s4 + $0x258] sm:$0xff] }
 0x617   :  { %5568 = vmatprep.subr.bf16.mxu0 %v5567_v20 }
 0x618   :  { %5598 = vmatpush3.bf16.msra.mxu1 %v5595_v43  ;;  %v5627_v43 = vpack.c.bf16 %v3497_v63, %v3496_v41  ;;  %v3529_v41 = vld [vmem:[%s8050_s8 + $0x228] sm:$0xff] }
 0x619   :  { %5600 = vmatprep.subr.bf16.mxu1 %v5599_v39 }
 0x61a   :  { %5570 = vmatpush3.bf16.msra.mxu0 %v5567_v20  ;;  %v3501_v20 = vld [vmem:[%s8046_s4 + $0x278] sm:$0xff] }
 0x61b   :  { %5572 = vmatprep.subr.bf16.mxu0 %v5571_v11 }
 0x61c   :  { %5602 = vmatpush3.bf16.msra.mxu1 %v5599_v39  ;;  %v5635_v39 = vpack.c.bf16 %v3501_v20, %v3500_v4 }
 0x61d   :  { %5604 = vmatprep.subr.bf16.mxu1 %v5603_v22 }
 0x61e   :  { %5574 = vmatpush3.bf16.msra.mxu0 %v5571_v11 }
 0x61f   :  { %5608 = vmatprep.subr.bf16.mxu0 %v5607_v48 }
 0x620   :  { %5606 = vmatpush3.bf16.msra.mxu1 %v5603_v22 }
 0x6d6   :  { %v4627_v61 = vpop.f32.mrb[8].mxu1 }
 0x6d7   :  { %v1218_v13 = vadd.f32 %v4627_v61, %v3441_v40  ;;  %v1212_v59 = vpop.f32.mrb[9].mxu1 }
 0x6d8   :  { %v1213_v14 = vadd.f32 %v3441_v40, %v1212_v59 }
 0x6d9   :  { %6123 = vtanh.f32 %v1218_v13  ;;  %v3423_v13 = vld [vmem:[%s8054_s2 + $0x38] sm:$0xff] }
 0x6da   :  { %6125 = vtanh.f32 %v1213_v14 }
 0x6e3   :  { %v6124_v15 = vpop.eup %6123 }
 0x6e4   :  { %v6126_v16 = vpop.eup %6125  ;;  %v1224_v23 = vmul.f32 %v6124_v15, %v6916_v21  ;;  %v3442_v21 = vld [vmem:[%s8052_s3 + $0x6] sm:$0x1]  ;;  %v3422_v15 = vld [vmem:[%s8054_s2 + $0x30] sm:$0xff] }
 0x6e5   :  { %v1223_v58 = vmul.f32 %v6126_v16, %v6908_v18 }
 0x6e6   :  { %v1231_v24 = vrot.slane %v1224_v23, 4 }
 0x6e7   :  { %v1225_v60 = vrot.slane %v1223_v58, 4 }
 0x6e8   :  { %v1232_v25 = vadd.f32 %v1231_v24, %v1224_v23 }
 0x6e9   :  { %v1226_v26 = vadd.f32 %v1225_v60, %v1223_v58 }
 0x6ea   :  { %v1233_v29 = vrot.slane %v1232_v25, 2 }
 0x6eb   :  { %v1227_v30 = vrot.slane %v1226_v26, 2 }
 0x6ec   :  { %v1234_v31 = vadd.f32 %v1233_v29, %v1232_v25  ;;  %v3479_v25 = vld [vmem:[%s8055_s9 + $0x3] ss:$0 sm:$0xff] }
 0x6ed   :  { %v1228_v32 = vadd.f32 %v1227_v30, %v1226_v26 }
 0x6ee   :  { %v1235_v33 = vrot.slane %v1234_v31, 1 }
 0x6ef   :  { %v1229_v34 = vrot.slane %v1228_v32, 1 }
 0x6f0   :  { %v1236_v36 = vadd.f32 %v1235_v33, %v1234_v31 }
 0x6f1   :  { %v1230_v18 = vadd.f32 %v1229_v34, %v1228_v32 }
 0x6f2   :  { %v1241_v37 = vmul.f32 %v3443_v35, %v1236_v36 }
 0x6f3   :  { %v1240_v38 = vmul.f32 %v3442_v21, %v1230_v18 }
 0x6f4   :  { %v1249_v12 = vrot.slane %v1241_v37, %v6434_v28 }
 0x6f5   :  { %v1245_v45 = vrot.slane %v1240_v38, %v6434_v28 }
 0x6f6   :  { %v1251_v46 = vadd.f32 %v1249_v12, %v1224_v23  ;;  %v7105_v12 = vld [vmem:[%s8048_s1 + $0x40] sm:$0xff] }
 0x6f7   :  { %v1250_v27 = vadd.f32 %v1245_v45, %v1223_v58 }
 0x6f9   :  { %4660 = vmatprep.mubr.f32.mxu0 %v1250_v27  ;;  %4695 = vmatprep.mubr.f32.mxu1 %v1250_v27  ;;  %v7113_v27 = vld [vmem:[%s8048_s1 + $0x48] sm:$0xff] }
 0x6fa   :  { %4661 = vmatmul.mubr.f32.vlgmr.msra.gmra.mrb[10].mxu0 %v1251_v46  ;;  %4696 = vmatmul.mubr.f32.vlgmr.msra.gmra.mrb[10].mxu1 %v1251_v46 }
 0x6fb   :  { %5610 = vmatpush3.bf16.msra.mxu0 %v5607_v48 }
 0x6fc   :  { %5612 = vmatprep.subr.bf16.mxu0 %v5611_v51 }
 0x6ff   :  { %5614 = vmatpush3.bf16.msra.mxu0 %v5611_v51  ;;  %v3508_v51 = vld [vmem:[%s8049_s6 + $0x210] sm:$0xff] }
 0x700   :  { %5616 = vmatprep.subr.bf16.mxu0 %v5615_v54 }
 0x703   :  { %5618 = vmatpush3.bf16.msra.mxu0 %v5615_v54  ;;  %v5643_v54 = vpack.c.bf16 %v3509_v52, %v3508_v51 }
 0x704   :  { %5620 = vmatprep.subr.bf16.mxu0 %v5619_v56 }
 0x707   :  { %5622 = vmatpush3.bf16.msra.mxu0 %v5619_v56  ;;  %v3511_v56 = vld [vmem:[%s8049_s6 + $0x228] sm:$0xff] }
 0x708   :  { %5624 = vmatprep.subr.bf16.mxu0 %v5623_v62  ;;  %v5647_v57 = vpack.c.bf16 %v3511_v56, %v3510_v44 }
 0x70b   :  { %5626 = vmatpush3.bf16.msra.mxu0 %v5623_v62  ;;  %v3528_v62 = vld [vmem:[%s8050_s8 + $0x220] sm:$0xff] }
 0x70c   :  { %5628 = vmatprep.subr.bf16.mxu0 %v5627_v43  ;;  %v5679_v63 = vpack.c.bf16 %v3529_v41, %v3528_v62 }
 0x70f   :  { %5630 = vmatpush3.bf16.msra.mxu0 %v5627_v43  ;;  %v3512_v43 = vld [vmem:[%s8049_s6 + $0x230] sm:$0xff] }
 0x710   :  { %5632 = vmatprep.subr.bf16.mxu0 %v5631_v2  ;;  %v5651_v4 = vpack.c.bf16 %v3513_v0, %v3512_v43  ;;  %v3548_v43 = vld [vmem:[%s8046_s4 + $0x280] sm:$0xff]  ;;  %v3549_v0 = vld [vmem:[%s8046_s4 + $0x288] sm:$0xff] }
 0x713   :  { %5634 = vmatpush3.bf16.msra.mxu0 %v5631_v2  ;;  %v3531_v2 = vld [vmem:[%s8050_s8 + $0x238] sm:$0xff] }
 0x714   :  { %5636 = vmatprep.subr.bf16.mxu0 %v5635_v39  ;;  %v5683_v20 = vpack.c.bf16 %v3531_v2, %v3530_v1  ;;  %v5703_v1 = vpack.c.bf16 %v3549_v0, %v3548_v43  ;;  %v3550_v2 = vld [vmem:[%s8046_s4 + $0x290] sm:$0xff]  ;;  %v3568_v43 = vld [vmem:[%s8049_s6 + $0x280] sm:$0xff] }
 0x715   :  { %v3586_v0 = vld [vmem:[%s8050_s8 + $0x280] sm:$0xff] }
 0x717   :  { %5638 = vmatpush3.bf16.msra.mxu0 %v5635_v39  ;;  %v3514_v39 = vld [vmem:[%s8049_s6 + $0x240] sm:$0xff] }
 0x718   :  { %5672 = vmatprep.subr.bf16.mxu0 %v5671_v50 }
 0x7cd   :  { %v4662_v7 = vpop.f32.mrb[10].mxu0  ;;  %v4697_v8 = vpop.f32.mrb[10].mxu1 }
 0x7ce   :  { %v1349_v10 = vadd.f32 %v4662_v7, %v3461_v6  ;;  %v1343_v11 = vpop.f32.mrb[11].mxu0  ;;  %v1447_v22 = vpop.f32.mrb[11].mxu1  ;;  %v1453_v26 = vadd.f32 %v4697_v8, %v3479_v25  ;;  %v3532_v7 = vld [vmem:[%s8050_s8 + $0x240] sm:$0xff]  ;;  %v3533_v8 = vld [vmem:[%s8050_s8 + $0x248] sm:$0xff] }
 0x7cf   :  { %v1344_v40 = vadd.f32 %v3461_v6, %v1343_v11  ;;  %v1448_v30 = vadd.f32 %v3479_v25, %v1447_v22  ;;  %v3515_v6 = vld [vmem:[%s8049_s6 + $0x248] sm:$0xff]  ;;  %v5687_v11 = vpack.c.bf16 %v3533_v8, %v3532_v7  ;;  %v3516_v22 = vld [vmem:[%s8049_s6 + $0x250] sm:$0xff] }
 0x7d0   :  { %6127 = vtanh.f32 %v1349_v10  ;;  %v1457_v34 = vmul.f32 %v3423_v13, %v1453_v26  ;;  %v5655_v10 = vpack.c.bf16 %v3515_v6, %v3514_v39  ;;  %v3552_v39 = vld [vmem:[%s8046_s4 + $0x2a0] sm:$0xff]  ;;  %v3553_v6 = vld [vmem:[%s8046_s4 + $0x2a8] sm:$0xff]  ;;  %v3554_v8 = vld [vmem:[%s8046_s4 + $0x2b0] sm:$0xff] }
 0x7d1   :  { %6129 = vtanh.f32 %v1344_v40  ;;  %v1456_v35 = vmul.f32 %v3422_v15, %v1448_v30  ;;  %v3517_v40 = vld [vmem:[%s8049_s6 + $0x258] sm:$0xff]  ;;  %v5711_v7 = vpack.c.bf16 %v3553_v6, %v3552_v39  ;;  %v3588_v6 = vld [vmem:[%s8050_s8 + $0x290] sm:$0xff] }
 0x7d2   :  { %v3521_v30 = vld [vmem:[%s8049_s6 + $0x278] sm:$0xff] }
 0x7d3   :  { %v3571_v39 = vld [vmem:[%s8049_s6 + $0x298] sm:$0xff] }
 0x7da   :  { %v6128_v61 = vpop.eup %6127 }
 0x7db   :  { %v6130_v59 = vpop.eup %6129  ;;  %v1355_v14 = vmul.f32 %v6128_v61, %v3423_v13  ;;  %v3534_v61 = vld [vmem:[%s8050_s8 + $0x250] sm:$0xff] }
 0x7dc   :  { %v1354_v16 = vmul.f32 %v6130_v59, %v3422_v15  ;;  %v5659_v59 = vpack.c.bf16 %v3517_v40, %v3516_v22  ;;  %v3556_v22 = vld [vmem:[%s8046_s4 + $0x2c0] sm:$0xff]  ;;  %v3557_v40 = vld [vmem:[%s8046_s4 + $0x2c8] sm:$0xff] }
 0x7dd   :  { %v1460_v23 = vmul.f32 1.442695, %v1355_v14  ;;  %v7089_v58 = vadd.f32 %v1355_v14, %v6893_v3 }
 0x7de   :  { %v1458_v24 = vmul.f32 1.442695, %v1354_v16  ;;  %v7092_v60 = vadd.f32 %v1354_v16, %v6895_v5  ;;  %v3519_v16 = vld [vmem:[%s8049_s6 + $0x268] sm:$0xff] }
 0x7df   :  { %6131 = vpow2.f32 %v1460_v23  ;;  %v3536_v23 = vld [vmem:[%s8050_s8 + $0x260] sm:$0xff] }
 0x7e0   :  { %6133 = vpow2.f32 %v1458_v24  ;;  %v3537_v24 = vld [vmem:[%s8050_s8 + $0x268] sm:$0xff] }
 0x7e1   :  { %v5695_v26 = vpack.c.bf16 %v3537_v24, %v3536_v23  ;;  %v3562_v24 = vld [vmem:[%s8046_s4 + $0x2f0] sm:$0xff] }
 0x7e9   :  { %v6132_v29 = vpop.eup %6131 }
 0x7ea   :  { %v6134_v31 = vpop.eup %6133  ;;  %v3481_v32 = vadd.f32 -1.0, %v6132_v29  ;;  %v3520_v29 = vld [vmem:[%s8049_s6 + $0x270] sm:$0xff] }
 0x7eb   :  { %v3480_v33 = vadd.f32 -1.0, %v6134_v31  ;;  %v3538_v31 = vld [vmem:[%s8050_s8 + $0x270] sm:$0xff] }
 0x7ec   :  { %v1465_v3 = vmul.f32 %v3481_v32, %v6903_v17  ;;  %v3539_v32 = vld [vmem:[%s8050_s8 + $0x278] sm:$0xff] }
 0x7ed   :  { %v1464_v21 = vmul.f32 %v3480_v33, %v6911_v19  ;;  %v5667_v33 = vpack.c.bf16 %v3521_v30, %v3520_v29  ;;  %v3523_v29 = vld [vmem:[%s8053_s7 + $0x4] ss:$0 sm:$0xff] }
 0x7ee   :  { %v1467_v5 = vadd.f32 %v1465_v3, %v1457_v34  ;;  %v5699_v34 = vpack.c.bf16 %v3539_v32, %v3538_v31  ;;  %v3503_v3 = vld [vmem:[%s8051_s5 + $0x4] ss:$0 sm:$0xff] }
 0x7ef   :  { %v1466_v36 = vadd.f32 %v1464_v21, %v1456_v35 }
 0x7f0   :  { %v1469_v18 = vmul.f32 %v3423_v13, %v1467_v5  ;;  %v3535_v13 = vld [vmem:[%s8050_s8 + $0x258] sm:$0xff] }
 0x7f1   :  { %v1468_v37 = vmul.f32 %v3422_v15, %v1466_v36  ;;  %v5691_v14 = vpack.c.bf16 %v3535_v13, %v3534_v61  ;;  %v3518_v15 = vld [vmem:[%s8049_s6 + $0x260] sm:$0xff]  ;;  %v5719_v61 = vpack.c.bf16 %v3557_v40, %v3556_v22  ;;  %v3558_v13 = vld [vmem:[%s8046_s4 + $0x2d0] sm:$0xff] }
 0x7f2   :  { %v7100_v38 = vadd.f32 %v1469_v18, %v6903_v17  ;;  %v5663_v25 = vpack.c.bf16 %v3519_v16, %v3518_v15  ;;  %v3560_v15 = vld [vmem:[%s8046_s4 + $0x2e0] sm:$0xff]  ;;  %v3561_v16 = vld [vmem:[%s8046_s4 + $0x2e8] sm:$0xff] }
 0x7f3   :  { %v7108_v45 = vadd.f32 %v1468_v37, %v6911_v19  ;;  %v3507_v19 = vld [vmem:[%s8049_s6 + $0x208] sm:$0xff]  ;;  %v5727_v23 = vpack.c.bf16 %v3561_v16, %v3560_v15  ;;  %v3575_v15 = vld [vmem:[%s8049_s6 + $0x2b8] sm:$0xff]  ;;  %v3592_v16 = vld [vmem:[%s8050_s8 + $0x2b0] sm:$0xff] }
 0x7f4   :  { %v1481_v17 = vmul.f32 %v7113_v27, %v7100_v38  ;;  %v5639_v48 = vpack.c.bf16 %v3507_v19, %v3506_v9 }
 0x7f5   :  { %v1480_v46 = vmul.f32 %v7105_v12, %v7108_v45 }
 0x7f6   :  { %5640 = vmatprep.subr.bf16.mxu1 %v5639_v48 }
 0x7f7   :  { %4730 = vmatprep.mubr.f32.mxu0 %v1480_v46  ;;  %5642 = vmatpush3.bf16.msra.mxu1 %v5639_v48 }
 0x7f8   :  { %4731 = vmatmul.mubr.f32.vlgmr.msra.gmra.mrb[12].mxu0 %v1481_v17  ;;  %5644 = vmatprep.subr.bf16.mxu1 %v5643_v54 }
 0x7f9   :  { %5674 = vmatpush3.bf16.msra.mxu0 %v5671_v50 }
 0x7fa   :  { %5676 = vmatprep.subr.bf16.mxu0 %v5675_v42 }
 0x7fb   :  { %5646 = vmatpush3.bf16.msra.mxu1 %v5643_v54 }
 0x7fc   :  { %5648 = vmatprep.subr.bf16.mxu1 %v5647_v57 }
 0x7fd   :  { %5678 = vmatpush3.bf16.msra.mxu0 %v5675_v42 }
 0x7fe   :  { %5680 = vmatprep.subr.bf16.mxu0 %v5679_v63 }
 0x7ff   :  { %5650 = vmatpush3.bf16.msra.mxu1 %v5647_v57 }
 0x800   :  { %5652 = vmatprep.subr.bf16.mxu1 %v5651_v4 }
 0x801   :  { %5682 = vmatpush3.bf16.msra.mxu0 %v5679_v63 }
 0x802   :  { %5684 = vmatprep.subr.bf16.mxu0 %v5683_v20 }
 0x803   :  { %5654 = vmatpush3.bf16.msra.mxu1 %v5651_v4  ;;  %v3551_v4 = vld [vmem:[%s8046_s4 + $0x298] sm:$0xff] }
 0x804   :  { %5656 = vmatprep.subr.bf16.mxu1 %v5655_v10 }
 0x805   :  { %5686 = vmatpush3.bf16.msra.mxu0 %v5683_v20  ;;  %v5707_v20 = vpack.c.bf16 %v3551_v4, %v3550_v2  ;;  %v3587_v2 = vld [vmem:[%s8050_s8 + $0x288] sm:$0xff] }
 0x806   :  { %5688 = vmatprep.subr.bf16.mxu0 %v5687_v11  ;;  %v5767_v4 = vpack.c.bf16 %v3587_v2, %v3586_v0 }
 0x807   :  { %5658 = vmatpush3.bf16.msra.mxu1 %v5655_v10  ;;  %v3555_v10 = vld [vmem:[%s8046_s4 + $0x2b8] sm:$0xff] }
 0x808   :  { %5660 = vmatprep.subr.bf16.mxu1 %v5659_v59 }
 0x809   :  { %5690 = vmatpush3.bf16.msra.mxu0 %v5687_v11  ;;  %v5715_v11 = vpack.c.bf16 %v3555_v10, %v3554_v8  ;;  %v3589_v8 = vld [vmem:[%s8050_s8 + $0x298] sm:$0xff]  ;;  %v3572_v10 = vld [vmem:[%s8049_s6 + $0x2a0] sm:$0xff] }
 0x80a   :  { %5692 = vmatprep.subr.bf16.mxu0 %v5691_v14  ;;  %v5771_v22 = vpack.c.bf16 %v3589_v8, %v3588_v6  ;;  %v3567_v8 = vld [vmem:[%s8052_s3 + $0xb] sm:$0x1] }
 0x80b   :  { %5662 = vmatpush3.bf16.msra.mxu1 %v5659_v59  ;;  %v3559_v59 = vld [vmem:[%s8046_s4 + $0x2d8] sm:$0xff] }
 0x80c   :  { %5664 = vmatprep.subr.bf16.mxu1 %v5663_v25 }
 0x80d   :  { %5694 = vmatpush3.bf16.msra.mxu0 %v5691_v14  ;;  %v5723_v14 = vpack.c.bf16 %v3559_v59, %v3558_v13  ;;  %v3591_v13 = vld [vmem:[%s8050_s8 + $0x2a8] sm:$0xff] }
 0x80e   :  { %5696 = vmatprep.subr.bf16.mxu0 %v5695_v26 }
 0x80f   :  { %5666 = vmatpush3.bf16.msra.mxu1 %v5663_v25  ;;  %v3563_v25 = vld [vmem:[%s8046_s4 + $0x2f8] sm:$0xff] }
 0x810   :  { %5668 = vmatprep.subr.bf16.mxu1 %v5667_v33 }
 0x811   :  { %5698 = vmatpush3.bf16.msra.mxu0 %v5695_v26  ;;  %v5731_v26 = vpack.c.bf16 %v3563_v25, %v3562_v24 }
 0x812   :  { %5700 = vmatprep.subr.bf16.mxu0 %v5699_v34 }
 0x813   :  { %5670 = vmatpush3.bf16.msra.mxu1 %v5667_v33 }
 0x814   :  { %5704 = vmatprep.subr.bf16.mxu1 %v5703_v1 }
 0x815   :  { %5702 = vmatpush3.bf16.msra.mxu0 %v5699_v34 }
 0x8cb   :  { %v4732_v35 = vpop.f32.mrb[12].mxu0 }
 0x8cc   :  { %v1579_v21 = vadd.f32 %v4732_v35, %v3503_v3  ;;  %v1573_v5 = vpop.f32.mrb[13].mxu0 }
 0x8cd   :  { %v1574_v36 = vadd.f32 %v3503_v3, %v1573_v5 }
 0x8ce   :  { %6135 = vtanh.f32 %v1579_v21  ;;  %v3485_v21 = vld [vmem:[%s8054_s2 + $0x48] sm:$0xff] }
 0x8cf   :  { %6137 = vtanh.f32 %v1574_v36 }
 0x8d8   :  { %v6136_v18 = vpop.eup %6135 }
 0x8d9   :  { %v6138_v37 = vpop.eup %6137  ;;  %v1585_v46 = vmul.f32 %v6136_v18, %v7113_v27  ;;  %v3504_v27 = vld [vmem:[%s8052_s3 + $0x8] sm:$0x1]  ;;  %v3484_v18 = vld [vmem:[%s8054_s2 + $0x40] sm:$0xff] }
 0x8da   :  { %v1584_v17 = vmul.f32 %v6138_v37, %v7105_v12 }
 0x8db   :  { %v1592_v9 = vrot.slane %v1585_v46, 4 }
 0x8dc   :  { %v1586_v19 = vrot.slane %v1584_v17, 4 }
 0x8dd   :  { %v1593_v47 = vadd.f32 %v1592_v9, %v1585_v46 }
 0x8de   :  { %v1587_v48 = vadd.f32 %v1586_v19, %v1584_v17 }
 0x8df   :  { %v1594_v49 = vrot.slane %v1593_v47, 2 }
 0x8e0   :  { %v1588_v50 = vrot.slane %v1587_v48, 2 }
 0x8e1   :  { %v1595_v51 = vadd.f32 %v1594_v49, %v1593_v47  ;;  %v3541_v47 = vld [vmem:[%s8055_s9 + $0x4] ss:$0 sm:$0xff] }
 0x8e2   :  { %v1589_v52 = vadd.f32 %v1588_v50, %v1587_v48 }
 0x8e3   :  { %v1596_v53 = vrot.slane %v1595_v51, 1 }
 0x8e4   :  { %v1590_v54 = vrot.slane %v1589_v52, 1 }
 0x8e5   :  { %v1597_v44 = vadd.f32 %v1596_v53, %v1595_v51 }
 0x8e6   :  { %v1591_v12 = vadd.f32 %v1590_v54, %v1589_v52 }
 0x8e7   :  { %v1602_v56 = vmul.f32 %v3505_v55, %v1597_v44 }
 0x8e8   :  { %v1601_v42 = vmul.f32 %v3504_v27, %v1591_v12 }
 0x8e9   :  { %v1610_v57 = vrot.slane %v1602_v56, %v6434_v28 }
 0x8ea   :  { %v1606_v62 = vrot.slane %v1601_v42, %v6434_v28 }
 0x8eb   :  { %v1612_v63 = vadd.f32 %v1610_v57, %v1585_v46  ;;  %v7302_v57 = vld [vmem:[%s8048_s1 + $0x50] sm:$0xff] }
 0x8ec   :  { %v1611_v41 = vadd.f32 %v1606_v62, %v1584_v17 }
 0x8ee   :  { %4765 = vmatprep.mubr.f32.mxu1 %v1611_v41  ;;  %4800 = vmatprep.mubr.f32.mxu0 %v1611_v41  ;;  %v7310_v41 = vld [vmem:[%s8048_s1 + $0x58] sm:$0xff] }
 0x8ef   :  { %4766 = vmatmul.mubr.f32.vlgmr.msra.gmra.mrb[12].mxu1 %v1612_v63  ;;  %4801 = vmatmul.mubr.f32.vlgmr.msra.gmra.mrb[14].mxu0 %v1612_v63 }
 0x8f0   :  { %5706 = vmatpush3.bf16.msra.mxu1 %v5703_v1 }
 0x8f1   :  { %5708 = vmatprep.subr.bf16.mxu1 %v5707_v20 }
 0x8f4   :  { %5710 = vmatpush3.bf16.msra.mxu1 %v5707_v20  ;;  %v3570_v20 = vld [vmem:[%s8049_s6 + $0x290] sm:$0xff] }
 0x8f5   :  { %5712 = vmatprep.subr.bf16.mxu1 %v5711_v7 }
 0x8f8   :  { %5714 = vmatpush3.bf16.msra.mxu1 %v5711_v7  ;;  %v5739_v7 = vpack.c.bf16 %v3571_v39, %v3570_v20 }
 0x8f9   :  { %5716 = vmatprep.subr.bf16.mxu1 %v5715_v11 }
 0x8fc   :  { %5718 = vmatpush3.bf16.msra.mxu1 %v5715_v11  ;;  %v3573_v11 = vld [vmem:[%s8049_s6 + $0x2a8] sm:$0xff] }
 0x8fd   :  { %5720 = vmatprep.subr.bf16.mxu1 %v5719_v61  ;;  %v5743_v40 = vpack.c.bf16 %v3573_v11, %v3572_v10 }
 0x900   :  { %5722 = vmatpush3.bf16.msra.mxu1 %v5719_v61  ;;  %v3590_v61 = vld [vmem:[%s8050_s8 + $0x2a0] sm:$0xff] }
 0x901   :  { %5724 = vmatprep.subr.bf16.mxu1 %v5723_v14  ;;  %v5775_v59 = vpack.c.bf16 %v3591_v13, %v3590_v61 }
 0x904   :  { %5726 = vmatpush3.bf16.msra.mxu1 %v5723_v14  ;;  %v3574_v14 = vld [vmem:[%s8049_s6 + $0x2b0] sm:$0xff] }
 0x905   :  { %5728 = vmatprep.subr.bf16.mxu1 %v5727_v23  ;;  %v5747_v24 = vpack.c.bf16 %v3575_v15, %v3574_v14  ;;  %v3610_v14 = vld [vmem:[%s8046_s4 + $0x300] sm:$0xff]  ;;  %v3611_v15 = vld [vmem:[%s8046_s4 + $0x308] sm:$0xff] }
 0x908   :  { %5730 = vmatpush3.bf16.msra.mxu1 %v5727_v23  ;;  %v3593_v23 = vld [vmem:[%s8050_s8 + $0x2b8] sm:$0xff] }
 0x909   :  { %5732 = vmatprep.subr.bf16.mxu1 %v5731_v26  ;;  %v5779_v25 = vpack.c.bf16 %v3593_v23, %v3592_v16  ;;  %v5799_v16 = vpack.c.bf16 %v3611_v15, %v3610_v14  ;;  %v3612_v23 = vld [vmem:[%s8046_s4 + $0x310] sm:$0xff]  ;;  %v3630_v14 = vld [vmem:[%s8049_s6 + $0x300] sm:$0xff] }
 0x90a   :  { %v3648_v15 = vld [vmem:[%s8050_s8 + $0x300] sm:$0xff] }
 0x90c   :  { %5734 = vmatpush3.bf16.msra.mxu1 %v5731_v26  ;;  %v3576_v26 = vld [vmem:[%s8049_s6 + $0x2c0] sm:$0xff] }
 0x90d   :  { %5768 = vmatprep.subr.bf16.mxu1 %v5767_v4 }
 0x9c2   :  { %v4767_v30 = vpop.f32.mrb[12].mxu1  ;;  %v4802_v31 = vpop.f32.mrb[14].mxu0 }
 0x9c3   :  { %v1710_v32 = vadd.f32 %v4767_v30, %v3523_v29  ;;  %v1704_v33 = vpop.f32.mrb[13].mxu1  ;;  %v1808_v34 = vpop.f32.mrb[15].mxu0  ;;  %v1814_v48 = vadd.f32 %v4802_v31, %v3541_v47  ;;  %v3594_v30 = vld [vmem:[%s8050_s8 + $0x2c0] sm:$0xff]  ;;  %v3595_v31 = vld [vmem:[%s8050_s8 + $0x2c8] sm:$0xff] }
 0x9c4   :  { %v1705_v3 = vadd.f32 %v3523_v29, %v1704_v33  ;;  %v1809_v50 = vadd.f32 %v3541_v47, %v1808_v34  ;;  %v3577_v29 = vld [vmem:[%s8049_s6 + $0x2c8] sm:$0xff]  ;;  %v5783_v33 = vpack.c.bf16 %v3595_v31, %v3594_v30  ;;  %v3578_v34 = vld [vmem:[%s8049_s6 + $0x2d0] sm:$0xff] }
 0x9c5   :  { %6139 = vtanh.f32 %v1710_v32  ;;  %v1818_v54 = vmul.f32 %v3485_v21, %v1814_v48  ;;  %v5751_v32 = vpack.c.bf16 %v3577_v29, %v3576_v26  ;;  %v3614_v26 = vld [vmem:[%s8046_s4 + $0x320] sm:$0xff]  ;;  %v3615_v29 = vld [vmem:[%s8046_s4 + $0x328] sm:$0xff]  ;;  %v3616_v31 = vld [vmem:[%s8046_s4 + $0x330] sm:$0xff] }
 0x9c6   :  { %6141 = vtanh.f32 %v1705_v3  ;;  %v1817_v55 = vmul.f32 %v3484_v18, %v1809_v50  ;;  %v3579_v3 = vld [vmem:[%s8049_s6 + $0x2d8] sm:$0xff]  ;;  %v5807_v30 = vpack.c.bf16 %v3615_v29, %v3614_v26  ;;  %v3650_v29 = vld [vmem:[%s8050_s8 + $0x310] sm:$0xff] }
 0x9c7   :  { %v3583_v50 = vld [vmem:[%s8049_s6 + $0x2f8] sm:$0xff] }
 0x9c8   :  { %v3633_v26 = vld [vmem:[%s8049_s6 + $0x318] sm:$0xff] }
 0x9cf   :  { %v6140_v35 = vpop.eup %6139 }
 0x9d0   :  { %v6142_v5 = vpop.eup %6141  ;;  %v1716_v36 = vmul.f32 %v6140_v35, %v3485_v21  ;;  %v3596_v35 = vld [vmem:[%s8050_s8 + $0x2d0] sm:$0xff] }
 0x9d1   :  { %v1715_v37 = vmul.f32 %v6142_v5, %v3484_v18  ;;  %v5755_v5 = vpack.c.bf16 %v3579_v3, %v3578_v34  ;;  %v3618_v34 = vld [vmem:[%s8046_s4 + $0x340] sm:$0xff]  ;;  %v3619_v3 = vld [vmem:[%s8046_s4 + $0x348] sm:$0xff] }
 0x9d2   :  { %v1821_v46 = vmul.f32 1.442695, %v1716_v36  ;;  %v7286_v17 = vadd.f32 %v1716_v36, %v7089_v58 }
 0x9d3   :  { %v1819_v9 = vmul.f32 1.442695, %v1715_v37  ;;  %v7289_v19 = vadd.f32 %v1715_v37, %v7092_v60  ;;  %v3581_v37 = vld [vmem:[%s8049_s6 + $0x2e8] sm:$0xff] }
 0x9d4   :  { %6143 = vpow2.f32 %v1821_v46  ;;  %v3598_v46 = vld [vmem:[%s8050_s8 + $0x2e0] sm:$0xff] }
 0x9d5   :  { %6145 = vpow2.f32 %v1819_v9  ;;  %v3599_v9 = vld [vmem:[%s8050_s8 + $0x2e8] sm:$0xff] }
 0x9d6   :  { %v5791_v48 = vpack.c.bf16 %v3599_v9, %v3598_v46  ;;  %v3624_v9 = vld [vmem:[%s8046_s4 + $0x370] sm:$0xff] }
 0x9de   :  { %v6144_v49 = vpop.eup %6143 }
 0x9df   :  { %v6146_v51 = vpop.eup %6145  ;;  %v3543_v52 = vadd.f32 -1.0, %v6144_v49  ;;  %v3582_v49 = vld [vmem:[%s8049_s6 + $0x2f0] sm:$0xff] }
 0x9e0   :  { %v3542_v53 = vadd.f32 -1.0, %v6146_v51  ;;  %v3600_v51 = vld [vmem:[%s8050_s8 + $0x2f0] sm:$0xff] }
 0x9e1   :  { %v1826_v58 = vmul.f32 %v3543_v52, %v7100_v38  ;;  %v3601_v52 = vld [vmem:[%s8050_s8 + $0x2f8] sm:$0xff] }
 0x9e2   :  { %v1825_v27 = vmul.f32 %v3542_v53, %v7108_v45  ;;  %v5763_v53 = vpack.c.bf16 %v3583_v50, %v3582_v49  ;;  %v3585_v49 = vld [vmem:[%s8053_s7 + $0x5] ss:$0 sm:$0xff] }
 0x9e3   :  { %v1828_v60 = vadd.f32 %v1826_v58, %v1818_v54  ;;  %v5795_v54 = vpack.c.bf16 %v3601_v52, %v3600_v51  ;;  %v3565_v58 = vld [vmem:[%s8051_s5 + $0x5] ss:$0 sm:$0xff] }
 0x9e4   :  { %v1827_v44 = vadd.f32 %v1825_v27, %v1817_v55 }
 0x9e5   :  { %v1830_v12 = vmul.f32 %v3485_v21, %v1828_v60  ;;  %v3597_v21 = vld [vmem:[%s8050_s8 + $0x2d8] sm:$0xff] }
 0x9e6   :  { %v1829_v56 = vmul.f32 %v3484_v18, %v1827_v44  ;;  %v5787_v36 = vpack.c.bf16 %v3597_v21, %v3596_v35  ;;  %v3580_v18 = vld [vmem:[%s8049_s6 + $0x2e0] sm:$0xff]  ;;  %v5815_v35 = vpack.c.bf16 %v3619_v3, %v3618_v34  ;;  %v3620_v21 = vld [vmem:[%s8046_s4 + $0x350] sm:$0xff] }
 0x9e7   :  { %v7297_v42 = vadd.f32 %v1830_v12, %v7100_v38  ;;  %v5759_v47 = vpack.c.bf16 %v3581_v37, %v3580_v18  ;;  %v3622_v18 = vld [vmem:[%s8046_s4 + $0x360] sm:$0xff]  ;;  %v3623_v37 = vld [vmem:[%s8046_s4 + $0x368] sm:$0xff] }
 0x9e8   :  { %v7305_v62 = vadd.f32 %v1829_v56, %v7108_v45  ;;  %v3569_v45 = vld [vmem:[%s8049_s6 + $0x288] sm:$0xff]  ;;  %v5823_v46 = vpack.c.bf16 %v3623_v37, %v3622_v18  ;;  %v3637_v18 = vld [vmem:[%s8049_s6 + $0x338] sm:$0xff]  ;;  %v3654_v37 = vld [vmem:[%s8050_s8 + $0x330] sm:$0xff] }
 0x9e9   :  { %v1842_v38 = vmul.f32 %v7310_v41, %v7297_v42  ;;  %v5735_v1 = vpack.c.bf16 %v3569_v45, %v3568_v43 }
 0x9ea   :  { %v1841_v63 = vmul.f32 %v7302_v57, %v7305_v62 }
 0x9eb   :  { %5736 = vmatprep.subr.bf16.mxu0 %v5735_v1 }
 0x9ec   :  { %4835 = vmatprep.mubr.f32.mxu1 %v1841_v63  ;;  %5738 = vmatpush3.bf16.msra.mxu0 %v5735_v1 }
 0x9ed   :  { %4836 = vmatmul.mubr.f32.vlgmr.msra.gmra.mrb[14].mxu1 %v1842_v38  ;;  %5740 = vmatprep.subr.bf16.mxu0 %v5739_v7 }
 0x9ee   :  { %5770 = vmatpush3.bf16.msra.mxu1 %v5767_v4 }
 0x9ef   :  { %5772 = vmatprep.subr.bf16.mxu1 %v5771_v22 }
 0x9f0   :  { %5742 = vmatpush3.bf16.msra.mxu0 %v5739_v7 }
 0x9f1   :  { %5744 = vmatprep.subr.bf16.mxu0 %v5743_v40 }
 0x9f2   :  { %5774 = vmatpush3.bf16.msra.mxu1 %v5771_v22 }
 0x9f3   :  { %5776 = vmatprep.subr.bf16.mxu1 %v5775_v59 }
 0x9f4   :  { %5746 = vmatpush3.bf16.msra.mxu0 %v5743_v40 }
 0x9f5   :  { %5748 = vmatprep.subr.bf16.mxu0 %v5747_v24 }
 0x9f6   :  { %5778 = vmatpush3.bf16.msra.mxu1 %v5775_v59 }
 0x9f7   :  { %5780 = vmatprep.subr.bf16.mxu1 %v5779_v25 }
 0x9f8   :  { %5750 = vmatpush3.bf16.msra.mxu0 %v5747_v24  ;;  %v3613_v24 = vld [vmem:[%s8046_s4 + $0x318] sm:$0xff] }
 0x9f9   :  { %5752 = vmatprep.subr.bf16.mxu0 %v5751_v32 }
 0x9fa   :  { %5782 = vmatpush3.bf16.msra.mxu1 %v5779_v25  ;;  %v5803_v25 = vpack.c.bf16 %v3613_v24, %v3612_v23  ;;  %v3649_v23 = vld [vmem:[%s8050_s8 + $0x308] sm:$0xff] }
 0x9fb   :  { %5784 = vmatprep.subr.bf16.mxu1 %v5783_v33  ;;  %v5863_v24 = vpack.c.bf16 %v3649_v23, %v3648_v15 }
 0x9fc   :  { %5754 = vmatpush3.bf16.msra.mxu0 %v5751_v32  ;;  %v3617_v32 = vld [vmem:[%s8046_s4 + $0x338] sm:$0xff] }
 0x9fd   :  { %5756 = vmatprep.subr.bf16.mxu0 %v5755_v5 }
 0x9fe   :  { %5786 = vmatpush3.bf16.msra.mxu1 %v5783_v33  ;;  %v5811_v33 = vpack.c.bf16 %v3617_v32, %v3616_v31  ;;  %v3651_v31 = vld [vmem:[%s8050_s8 + $0x318] sm:$0xff]  ;;  %v3634_v32 = vld [vmem:[%s8049_s6 + $0x320] sm:$0xff] }
 0x9ff   :  { %5788 = vmatprep.subr.bf16.mxu1 %v5787_v36  ;;  %v5867_v34 = vpack.c.bf16 %v3651_v31, %v3650_v29  ;;  %v3629_v31 = vld [vmem:[%s8052_s3 + $0xd] sm:$0x1] }
 0xa00   :  { %5758 = vmatpush3.bf16.msra.mxu0 %v5755_v5  ;;  %v3621_v5 = vld [vmem:[%s8046_s4 + $0x358] sm:$0xff] }
 0xa01   :  { %5760 = vmatprep.subr.bf16.mxu0 %v5759_v47 }
 0xa02   :  { %5790 = vmatpush3.bf16.msra.mxu1 %v5787_v36  ;;  %v5819_v36 = vpack.c.bf16 %v3621_v5, %v3620_v21  ;;  %v3653_v21 = vld [vmem:[%s8050_s8 + $0x328] sm:$0xff] }
 0xa03   :  { %5792 = vmatprep.subr.bf16.mxu1 %v5791_v48 }
 0xa04   :  { %5762 = vmatpush3.bf16.msra.mxu0 %v5759_v47  ;;  %v3625_v47 = vld [vmem:[%s8046_s4 + $0x378] sm:$0xff] }
 0xa05   :  { %5764 = vmatprep.subr.bf16.mxu0 %v5763_v53 }
 0xa06   :  { %5794 = vmatpush3.bf16.msra.mxu1 %v5791_v48  ;;  %v5827_v48 = vpack.c.bf16 %v3625_v47, %v3624_v9 }
 0xa07   :  { %5796 = vmatprep.subr.bf16.mxu1 %v5795_v54 }
 0xa08   :  { %5766 = vmatpush3.bf16.msra.mxu0 %v5763_v53 }
 0xa09   :  { %5800 = vmatprep.subr.bf16.mxu0 %v5799_v16 }
 0xa0a   :  { %5798 = vmatpush3.bf16.msra.mxu1 %v5795_v54 }
 0xac0   :  { %v4837_v55 = vpop.f32.mrb[14].mxu1 }
 0xac1   :  { %v1940_v27 = vadd.f32 %v4837_v55, %v3565_v58  ;;  %v1934_v60 = vpop.f32.mrb[15].mxu1 }
 0xac2   :  { %v1935_v44 = vadd.f32 %v3565_v58, %v1934_v60 }
 0xac3   :  { %6147 = vtanh.f32 %v1940_v27  ;;  %v3547_v27 = vld [vmem:[%s8054_s2 + $0x58] sm:$0xff] }
 0xac4   :  { %6149 = vtanh.f32 %v1935_v44 }
 0xacd   :  { %v6148_v12 = vpop.eup %6147 }
 0xace   :  { %v6150_v56 = vpop.eup %6149  ;;  %v1946_v63 = vmul.f32 %v6148_v12, %v7310_v41  ;;  %v3566_v41 = vld [vmem:[%s8052_s3 + $0xa] sm:$0x1]  ;;  %v3546_v12 = vld [vmem:[%s8054_s2 + $0x50] sm:$0xff] }
 0xacf   :  { %v1945_v38 = vmul.f32 %v6150_v56, %v7302_v57 }
 0xad0   :  { %v1953_v43 = vrot.slane %v1946_v63, 4 }
 0xad1   :  { %v1947_v45 = vrot.slane %v1945_v38, 4 }
 0xad2   :  { %v1954_v0 = vadd.f32 %v1953_v43, %v1946_v63 }
 0xad3   :  { %v1948_v1 = vadd.f32 %v1947_v45, %v1945_v38 }
 0xad4   :  { %v1955_v2 = vrot.slane %v1954_v0, 2 }
 0xad5   :  { %v1949_v4 = vrot.slane %v1948_v1, 2 }
 0xad6   :  { %v1956_v20 = vadd.f32 %v1955_v2, %v1954_v0  ;;  %v3603_v0 = vld [vmem:[%s8055_s9 + $0x5] ss:$0 sm:$0xff] }
 0xad7   :  { %v1950_v39 = vadd.f32 %v1949_v4, %v1948_v1 }
 0xad8   :  { %v1957_v6 = vrot.slane %v1956_v20, 1 }
 0xad9   :  { %v1951_v7 = vrot.slane %v1950_v39, 1 }
 0xada   :  { %v1958_v10 = vadd.f32 %v1957_v6, %v1956_v20 }
 0xadb   :  { %v1952_v57 = vadd.f32 %v1951_v7, %v1950_v39 }
 0xadc   :  { %v1963_v11 = vmul.f32 %v3567_v8, %v1958_v10 }
 0xadd   :  { %v1962_v22 = vmul.f32 %v3566_v41, %v1952_v57 }
 0xade   :  { %v1971_v40 = vrot.slane %v1963_v11, %v6434_v28 }
 0xadf   :  { %v1967_v61 = vrot.slane %v1962_v22, %v6434_v28 }
 0xae0   :  { %v1973_v59 = vadd.f32 %v1971_v40, %v1946_v63  ;;  %v7499_v40 = vld [vmem:[%s8048_s1 + $0x60] sm:$0xff] }
 0xae1   :  { %v1972_v13 = vadd.f32 %v1967_v61, %v1945_v38 }
 0xae3   :  { %4870 = vmatprep.mubr.f32.mxu0 %v1972_v13  ;;  %4905 = vmatprep.mubr.f32.mxu1 %v1972_v13  ;;  %v7507_v13 = vld [vmem:[%s8048_s1 + $0x68] sm:$0xff] }
 0xae4   :  { %4871 = vmatmul.mubr.f32.vlgmr.msra.gmra.mrb[16].mxu0 %v1973_v59  ;;  %4906 = vmatmul.mubr.f32.vlgmr.msra.gmra.mrb[16].mxu1 %v1973_v59 }
 0xae5   :  { %5802 = vmatpush3.bf16.msra.mxu0 %v5799_v16 }
 0xae6   :  { %5804 = vmatprep.subr.bf16.mxu0 %v5803_v25 }
 0xae9   :  { %5806 = vmatpush3.bf16.msra.mxu0 %v5803_v25  ;;  %v3632_v25 = vld [vmem:[%s8049_s6 + $0x310] sm:$0xff] }
 0xaea   :  { %5808 = vmatprep.subr.bf16.mxu0 %v5807_v30 }
 0xaed   :  { %5810 = vmatpush3.bf16.msra.mxu0 %v5807_v30  ;;  %v5835_v30 = vpack.c.bf16 %v3633_v26, %v3632_v25 }
 0xaee   :  { %5812 = vmatprep.subr.bf16.mxu0 %v5811_v33 }
 0xaf1   :  { %5814 = vmatpush3.bf16.msra.mxu0 %v5811_v33  ;;  %v3635_v33 = vld [vmem:[%s8049_s6 + $0x328] sm:$0xff] }
 0xaf2   :  { %5816 = vmatprep.subr.bf16.mxu0 %v5815_v35  ;;  %v5839_v3 = vpack.c.bf16 %v3635_v33, %v3634_v32 }
 0xaf5   :  { %5818 = vmatpush3.bf16.msra.mxu0 %v5815_v35  ;;  %v3652_v35 = vld [vmem:[%s8050_s8 + $0x320] sm:$0xff] }
 0xaf6   :  { %5820 = vmatprep.subr.bf16.mxu0 %v5819_v36  ;;  %v5871_v5 = vpack.c.bf16 %v3653_v21, %v3652_v35 }
 0xaf9   :  { %5822 = vmatpush3.bf16.msra.mxu0 %v5819_v36  ;;  %v3636_v36 = vld [vmem:[%s8049_s6 + $0x330] sm:$0xff] }
 0xafa   :  { %5824 = vmatprep.subr.bf16.mxu0 %v5823_v46  ;;  %v5843_v9 = vpack.c.bf16 %v3637_v18, %v3636_v36  ;;  %v3672_v36 = vld [vmem:[%s8046_s4 + $0x380] sm:$0xff]  ;;  %v3673_v18 = vld [vmem:[%s8046_s4 + $0x388] sm:$0xff] }
 0xafd   :  { %5826 = vmatpush3.bf16.msra.mxu0 %v5823_v46  ;;  %v3655_v46 = vld [vmem:[%s8050_s8 + $0x338] sm:$0xff] }
 0xafe   :  { %5828 = vmatprep.subr.bf16.mxu0 %v5827_v48  ;;  %v5875_v47 = vpack.c.bf16 %v3655_v46, %v3654_v37  ;;  %v5895_v37 = vpack.c.bf16 %v3673_v18, %v3672_v36  ;;  %v3674_v46 = vld [vmem:[%s8046_s4 + $0x390] sm:$0xff]  ;;  %v3692_v36 = vld [vmem:[%s8049_s6 + $0x380] sm:$0xff] }
 0xaff   :  { %v3710_v18 = vld [vmem:[%s8050_s8 + $0x380] sm:$0xff] }
 0xb01   :  { %5830 = vmatpush3.bf16.msra.mxu0 %v5827_v48  ;;  %v3638_v48 = vld [vmem:[%s8049_s6 + $0x340] sm:$0xff] }
 0xb02   :  { %5864 = vmatprep.subr.bf16.mxu0 %v5863_v24 }
 0xbb7   :  { %v4872_v50 = vpop.f32.mrb[16].mxu0  ;;  %v4907_v51 = vpop.f32.mrb[16].mxu1 }
 0xbb8   :  { %v2071_v52 = vadd.f32 %v4872_v50, %v3585_v49  ;;  %v2065_v53 = vpop.f32.mrb[17].mxu0  ;;  %v2169_v54 = vpop.f32.mrb[17].mxu1  ;;  %v2175_v1 = vadd.f32 %v4907_v51, %v3603_v0  ;;  %v3656_v50 = vld [vmem:[%s8050_s8 + $0x340] sm:$0xff]  ;;  %v3657_v51 = vld [vmem:[%s8050_s8 + $0x348] sm:$0xff] }
 0xbb9   :  { %v2066_v58 = vadd.f32 %v3585_v49, %v2065_v53  ;;  %v2170_v4 = vadd.f32 %v3603_v0, %v2169_v54  ;;  %v3639_v49 = vld [vmem:[%s8049_s6 + $0x348] sm:$0xff]  ;;  %v5879_v53 = vpack.c.bf16 %v3657_v51, %v3656_v50  ;;  %v3640_v54 = vld [vmem:[%s8049_s6 + $0x350] sm:$0xff] }
 0xbba   :  { %6151 = vtanh.f32 %v2071_v52  ;;  %v2179_v7 = vmul.f32 %v3547_v27, %v2175_v1  ;;  %v5847_v52 = vpack.c.bf16 %v3639_v49, %v3638_v48  ;;  %v3676_v48 = vld [vmem:[%s8046_s4 + $0x3a0] sm:$0xff]  ;;  %v3677_v49 = vld [vmem:[%s8046_s4 + $0x3a8] sm:$0xff]  ;;  %v3678_v51 = vld [vmem:[%s8046_s4 + $0x3b0] sm:$0xff] }
 0xbbb   :  { %6153 = vtanh.f32 %v2066_v58  ;;  %v2178_v8 = vmul.f32 %v3546_v12, %v2170_v4  ;;  %v3641_v58 = vld [vmem:[%s8049_s6 + $0x358] sm:$0xff]  ;;  %v5903_v50 = vpack.c.bf16 %v3677_v49, %v3676_v48  ;;  %v3712_v49 = vld [vmem:[%s8050_s8 + $0x390] sm:$0xff] }
 0xbbc   :  { %v3645_v4 = vld [vmem:[%s8049_s6 + $0x378] sm:$0xff] }
 0xbbd   :  { %v3695_v48 = vld [vmem:[%s8049_s6 + $0x398] sm:$0xff] }
 0xbc4   :  { %v6152_v55 = vpop.eup %6151 }
 0xbc5   :  { %v6154_v60 = vpop.eup %6153  ;;  %v2077_v44 = vmul.f32 %v6152_v55, %v3547_v27  ;;  %v3658_v55 = vld [vmem:[%s8050_s8 + $0x350] sm:$0xff] }
 0xbc6   :  { %v2076_v56 = vmul.f32 %v6154_v60, %v3546_v12  ;;  %v5851_v60 = vpack.c.bf16 %v3641_v58, %v3640_v54  ;;  %v3680_v54 = vld [vmem:[%s8046_s4 + $0x3c0] sm:$0xff]  ;;  %v3681_v58 = vld [vmem:[%s8046_s4 + $0x3c8] sm:$0xff] }
 0xbc7   :  { %v2182_v63 = vmul.f32 1.442695, %v2077_v44  ;;  %v7483_v38 = vadd.f32 %v2077_v44, %v7286_v17 }
 0xbc8   :  { %v2180_v43 = vmul.f32 1.442695, %v2076_v56  ;;  %v7486_v45 = vadd.f32 %v2076_v56, %v7289_v19  ;;  %v3643_v56 = vld [vmem:[%s8049_s6 + $0x368] sm:$0xff] }
 0xbc9   :  { %6155 = vpow2.f32 %v2182_v63  ;;  %v3660_v63 = vld [vmem:[%s8050_s8 + $0x360] sm:$0xff] }
 0xbca   :  { %6157 = vpow2.f32 %v2180_v43  ;;  %v3661_v43 = vld [vmem:[%s8050_s8 + $0x368] sm:$0xff] }
 0xbcb   :  { %v5887_v1 = vpack.c.bf16 %v3661_v43, %v3660_v63  ;;  %v3686_v43 = vld [vmem:[%s8046_s4 + $0x3f0] sm:$0xff] }
 0xbd3   :  { %v6156_v2 = vpop.eup %6155 }
 0xbd4   :  { %v6158_v20 = vpop.eup %6157  ;;  %v3605_v39 = vadd.f32 -1.0, %v6156_v2  ;;  %v3644_v2 = vld [vmem:[%s8049_s6 + $0x370] sm:$0xff] }
 0xbd5   :  { %v3604_v6 = vadd.f32 -1.0, %v6158_v20  ;;  %v3662_v20 = vld [vmem:[%s8050_s8 + $0x370] sm:$0xff] }
 0xbd6   :  { %v2187_v17 = vmul.f32 %v3605_v39, %v7297_v42  ;;  %v3663_v39 = vld [vmem:[%s8050_s8 + $0x378] sm:$0xff] }
 0xbd7   :  { %v2186_v41 = vmul.f32 %v3604_v6, %v7305_v62  ;;  %v5859_v6 = vpack.c.bf16 %v3645_v4, %v3644_v2  ;;  %v3647_v2 = vld [vmem:[%s8053_s7 + $0x6] ss:$0 sm:$0xff] }
 0xbd8   :  { %v2189_v19 = vadd.f32 %v2187_v17, %v2179_v7  ;;  %v5891_v7 = vpack.c.bf16 %v3663_v39, %v3662_v20  ;;  %v3627_v17 = vld [vmem:[%s8051_s5 + $0x6] ss:$0 sm:$0xff] }
 0xbd9   :  { %v2188_v10 = vadd.f32 %v2186_v41, %v2178_v8 }
 0xbda   :  { %v2191_v57 = vmul.f32 %v3547_v27, %v2189_v19  ;;  %v3659_v27 = vld [vmem:[%s8050_s8 + $0x358] sm:$0xff] }
 0xbdb   :  { %v2190_v11 = vmul.f32 %v3546_v12, %v2188_v10  ;;  %v5883_v44 = vpack.c.bf16 %v3659_v27, %v3658_v55  ;;  %v3642_v12 = vld [vmem:[%s8049_s6 + $0x360] sm:$0xff]  ;;  %v5911_v55 = vpack.c.bf16 %v3681_v58, %v3680_v54  ;;  %v3682_v27 = vld [vmem:[%s8046_s4 + $0x3d0] sm:$0xff] }
 0xbdc   :  { %v7494_v22 = vadd.f32 %v2191_v57, %v7297_v42  ;;  %v5855_v0 = vpack.c.bf16 %v3643_v56, %v3642_v12  ;;  %v3684_v12 = vld [vmem:[%s8046_s4 + $0x3e0] sm:$0xff]  ;;  %v3685_v56 = vld [vmem:[%s8046_s4 + $0x3e8] sm:$0xff] }
 0xbdd   :  { %v7502_v61 = vadd.f32 %v2190_v11, %v7305_v62  ;;  %v3631_v62 = vld [vmem:[%s8049_s6 + $0x308] sm:$0xff]  ;;  %v5919_v63 = vpack.c.bf16 %v3685_v56, %v3684_v12  ;;  %v3699_v12 = vld [vmem:[%s8049_s6 + $0x3b8] sm:$0xff]  ;;  %v3716_v56 = vld [vmem:[%s8050_s8 + $0x3b0] sm:$0xff] }
 0xbde   :  { %v2203_v42 = vmul.f32 %v7507_v13, %v7494_v22  ;;  %v5831_v16 = vpack.c.bf16 %v3631_v62, %v3630_v14 }
 0xbdf   :  { %v2202_v59 = vmul.f32 %v7499_v40, %v7502_v61 }
 0xbe0   :  { %5832 = vmatprep.subr.bf16.mxu1 %v5831_v16 }
 0xbe1   :  { %4940 = vmatprep.mubr.f32.mxu0 %v2202_v59  ;;  %5834 = vmatpush3.bf16.msra.mxu1 %v5831_v16 }
 0xbe2   :  { %4941 = vmatmul.mubr.f32.vlgmr.msra.gmra.mrb[18].mxu0 %v2203_v42  ;;  %5836 = vmatprep.subr.bf16.mxu1 %v5835_v30 }
 0xbe3   :  { %5866 = vmatpush3.bf16.msra.mxu0 %v5863_v24 }
 0xbe4   :  { %5868 = vmatprep.subr.bf16.mxu0 %v5867_v34 }
 0xbe5   :  { %5838 = vmatpush3.bf16.msra.mxu1 %v5835_v30 }
 0xbe6   :  { %5840 = vmatprep.subr.bf16.mxu1 %v5839_v3 }
 0xbe7   :  { %5870 = vmatpush3.bf16.msra.mxu0 %v5867_v34 }
 0xbe8   :  { %5872 = vmatprep.subr.bf16.mxu0 %v5871_v5 }
 0xbe9   :  { %5842 = vmatpush3.bf16.msra.mxu1 %v5839_v3 }
 0xbea   :  { %5844 = vmatprep.subr.bf16.mxu1 %v5843_v9 }
 0xbeb   :  { %5874 = vmatpush3.bf16.msra.mxu0 %v5871_v5 }
 0xbec   :  { %5876 = vmatprep.subr.bf16.mxu0 %v5875_v47 }
 0xbed   :  { %5846 = vmatpush3.bf16.msra.mxu1 %v5843_v9  ;;  %v3675_v9 = vld [vmem:[%s8046_s4 + $0x398] sm:$0xff] }
 0xbee   :  { %5848 = vmatprep.subr.bf16.mxu1 %v5847_v52 }
 0xbef   :  { %5878 = vmatpush3.bf16.msra.mxu0 %v5875_v47  ;;  %v5899_v47 = vpack.c.bf16 %v3675_v9, %v3674_v46  ;;  %v3711_v46 = vld [vmem:[%s8050_s8 + $0x388] sm:$0xff] }
 0xbf0   :  { %5880 = vmatprep.subr.bf16.mxu0 %v5879_v53  ;;  %v5959_v9 = vpack.c.bf16 %v3711_v46, %v3710_v18 }
 0xbf1   :  { %5850 = vmatpush3.bf16.msra.mxu1 %v5847_v52  ;;  %v3679_v52 = vld [vmem:[%s8046_s4 + $0x3b8] sm:$0xff] }
 0xbf2   :  { %5852 = vmatprep.subr.bf16.mxu1 %v5851_v60 }
 0xbf3   :  { %5882 = vmatpush3.bf16.msra.mxu0 %v5879_v53  ;;  %v5907_v53 = vpack.c.bf16 %v3679_v52, %v3678_v51  ;;  %v3713_v51 = vld [vmem:[%s8050_s8 + $0x398] sm:$0xff]  ;;  %v3696_v52 = vld [vmem:[%s8049_s6 + $0x3a0] sm:$0xff] }
 0xbf4   :  { %5884 = vmatprep.subr.bf16.mxu0 %v5883_v44  ;;  %v5963_v54 = vpack.c.bf16 %v3713_v51, %v3712_v49  ;;  %v3691_v51 = vld [vmem:[%s8052_s3 + $0xf] sm:$0x1] }
 0xbf5   :  { %5854 = vmatpush3.bf16.msra.mxu1 %v5851_v60  ;;  %v3683_v60 = vld [vmem:[%s8046_s4 + $0x3d8] sm:$0xff] }
 0xbf6   :  { %5856 = vmatprep.subr.bf16.mxu1 %v5855_v0 }
 0xbf7   :  { %5886 = vmatpush3.bf16.msra.mxu0 %v5883_v44  ;;  %v5915_v44 = vpack.c.bf16 %v3683_v60, %v3682_v27  ;;  %v3715_v27 = vld [vmem:[%s8050_s8 + $0x3a8] sm:$0xff] }
 0xbf8   :  { %5888 = vmatprep.subr.bf16.mxu0 %v5887_v1 }
 0xbf9   :  { %5858 = vmatpush3.bf16.msra.mxu1 %v5855_v0  ;;  %v3687_v0 = vld [vmem:[%s8046_s4 + $0x3f8] sm:$0xff] }
 0xbfa   :  { %5860 = vmatprep.subr.bf16.mxu1 %v5859_v6 }
 0xbfb   :  { %5890 = vmatpush3.bf16.msra.mxu0 %v5887_v1  ;;  %v5923_v1 = vpack.c.bf16 %v3687_v0, %v3686_v43 }
 0xbfc   :  { %5892 = vmatprep.subr.bf16.mxu0 %v5891_v7 }
 0xbfd   :  { %5862 = vmatpush3.bf16.msra.mxu1 %v5859_v6 }
 0xbfe   :  { %5896 = vmatprep.subr.bf16.mxu1 %v5895_v37 }
 0xbff   :  { %5894 = vmatpush3.bf16.msra.mxu0 %v5891_v7 }
 0xcb5   :  { %v4942_v8 = vpop.f32.mrb[18].mxu0 }
 0xcb6   :  { %v2301_v41 = vadd.f32 %v4942_v8, %v3627_v17  ;;  %v2295_v19 = vpop.f32.mrb[19].mxu0 }
 0xcb7   :  { %v2296_v10 = vadd.f32 %v3627_v17, %v2295_v19 }
 0xcb8   :  { %6159 = vtanh.f32 %v2301_v41  ;;  %v3609_v41 = vld [vmem:[%s8054_s2 + $0x68] sm:$0xff] }
 0xcb9   :  { %6161 = vtanh.f32 %v2296_v10 }
 0xcc2   :  { %v6160_v57 = vpop.eup %6159 }
 0xcc3   :  { %v6162_v11 = vpop.eup %6161  ;;  %v2307_v59 = vmul.f32 %v6160_v57, %v7507_v13  ;;  %v3628_v13 = vld [vmem:[%s8052_s3 + $0xc] sm:$0x1]  ;;  %v3608_v57 = vld [vmem:[%s8054_s2 + $0x60] sm:$0xff] }
 0xcc4   :  { %v2306_v42 = vmul.f32 %v6162_v11, %v7499_v40 }
 0xcc5   :  { %v2314_v14 = vrot.slane %v2307_v59, 4 }
 0xcc6   :  { %v2308_v62 = vrot.slane %v2306_v42, 4 }
 0xcc7   :  { %v2315_v15 = vadd.f32 %v2314_v14, %v2307_v59 }
 0xcc8   :  { %v2309_v16 = vadd.f32 %v2308_v62, %v2306_v42 }
 0xcc9   :  { %v2316_v23 = vrot.slane %v2315_v15, 2 }
 0xcca   :  { %v2310_v24 = vrot.slane %v2309_v16, 2 }
 0xccb   :  { %v2317_v25 = vadd.f32 %v2316_v23, %v2315_v15  ;;  %v3665_v15 = vld [vmem:[%s8055_s9 + $0x6] ss:$0 sm:$0xff] }
 0xccc   :  { %v2311_v26 = vadd.f32 %v2310_v24, %v2309_v16 }
 0xccd   :  { %v2318_v29 = vrot.slane %v2317_v25, 1 }
 0xcce   :  { %v2312_v30 = vrot.slane %v2311_v26, 1 }
 0xccf   :  { %v2319_v32 = vadd.f32 %v2318_v29, %v2317_v25 }
 0xcd0   :  { %v2313_v40 = vadd.f32 %v2312_v30, %v2311_v26 }
 0xcd1   :  { %v2324_v33 = vmul.f32 %v3629_v31, %v2319_v32 }
 0xcd2   :  { %v2323_v34 = vmul.f32 %v3628_v13, %v2313_v40 }
 0xcd3   :  { %v2332_v3 = vrot.slane %v2324_v33, %v6434_v28 }
 0xcd4   :  { %v2328_v35 = vrot.slane %v2323_v34, %v6434_v28 }
 0xcd5   :  { %v2334_v5 = vadd.f32 %v2332_v3, %v2307_v59  ;;  %v7696_v3 = vld [vmem:[%s8048_s1 + $0x70] sm:$0xff] }
 0xcd6   :  { %v2333_v21 = vadd.f32 %v2328_v35, %v2306_v42 }
 0xcd8   :  { %4975 = vmatprep.mubr.f32.mxu1 %v2333_v21  ;;  %5010 = vmatprep.mubr.f32.mxu0 %v2333_v21  ;;  %v7704_v21 = vld [vmem:[%s8048_s1 + $0x78] sm:$0xff] }
 0xcd9   :  { %4976 = vmatmul.mubr.f32.vlgmr.msra.gmra.mrb[18].mxu1 %v2334_v5  ;;  %5011 = vmatmul.mubr.f32.vlgmr.msra.gmra.mrb[20].mxu0 %v2334_v5 }
 0xcda   :  { %5898 = vmatpush3.bf16.msra.mxu1 %v5895_v37 }
 0xcdb   :  { %5900 = vmatprep.subr.bf16.mxu1 %v5899_v47 }
 0xcde   :  { %5902 = vmatpush3.bf16.msra.mxu1 %v5899_v47  ;;  %v3694_v47 = vld [vmem:[%s8049_s6 + $0x390] sm:$0xff] }
 0xcdf   :  { %5904 = vmatprep.subr.bf16.mxu1 %v5903_v50 }
 0xce2   :  { %5906 = vmatpush3.bf16.msra.mxu1 %v5903_v50  ;;  %v5931_v50 = vpack.c.bf16 %v3695_v48, %v3694_v47 }
 0xce3   :  { %5908 = vmatprep.subr.bf16.mxu1 %v5907_v53 }
 0xce6   :  { %5910 = vmatpush3.bf16.msra.mxu1 %v5907_v53  ;;  %v3697_v53 = vld [vmem:[%s8049_s6 + $0x3a8] sm:$0xff] }
 0xce7   :  { %5912 = vmatprep.subr.bf16.mxu1 %v5911_v55  ;;  %v5935_v58 = vpack.c.bf16 %v3697_v53, %v3696_v52 }
 0xcea   :  { %5914 = vmatpush3.bf16.msra.mxu1 %v5911_v55  ;;  %v3714_v55 = vld [vmem:[%s8050_s8 + $0x3a0] sm:$0xff] }
 0xceb   :  { %5916 = vmatprep.subr.bf16.mxu1 %v5915_v44  ;;  %v5967_v60 = vpack.c.bf16 %v3715_v27, %v3714_v55 }
 0xcee   :  { %5918 = vmatpush3.bf16.msra.mxu1 %v5915_v44  ;;  %v3698_v44 = vld [vmem:[%s8049_s6 + $0x3b0] sm:$0xff] }
 0xcef   :  { %5920 = vmatprep.subr.bf16.mxu1 %v5919_v63  ;;  %v5939_v43 = vpack.c.bf16 %v3699_v12, %v3698_v44  ;;  %v3734_v44 = vld [vmem:[%s8046_s4 + $0x400] sm:$0xff]  ;;  %v3735_v12 = vld [vmem:[%s8046_s4 + $0x408] sm:$0xff] }
 0xcf2   :  { %5922 = vmatpush3.bf16.msra.mxu1 %v5919_v63  ;;  %v3717_v63 = vld [vmem:[%s8050_s8 + $0x3b8] sm:$0xff] }
 0xcf3   :  { %5924 = vmatprep.subr.bf16.mxu1 %v5923_v1  ;;  %v5971_v0 = vpack.c.bf16 %v3717_v63, %v3716_v56  ;;  %v5991_v56 = vpack.c.bf16 %v3735_v12, %v3734_v44  ;;  %v3736_v63 = vld [vmem:[%s8046_s4 + $0x410] sm:$0xff]  ;;  %v3754_v44 = vld [vmem:[%s8049_s6 + $0x400] sm:$0xff] }
 0xcf4   :  { %v3772_v12 = vld [vmem:[%s8050_s8 + $0x400] sm:$0xff] }
 0xcf6   :  { %5926 = vmatpush3.bf16.msra.mxu1 %v5923_v1  ;;  %v3700_v1 = vld [vmem:[%s8049_s6 + $0x3c0] sm:$0xff] }
 0xcf7   :  { %5960 = vmatprep.subr.bf16.mxu1 %v5959_v9 }
 0xdac   :  { %v4977_v4 = vpop.f32.mrb[18].mxu1  ;;  %v5012_v20 = vpop.f32.mrb[20].mxu0 }
 0xdad   :  { %v2432_v39 = vadd.f32 %v4977_v4, %v3647_v2  ;;  %v2426_v6 = vpop.f32.mrb[19].mxu1  ;;  %v2530_v7 = vpop.f32.mrb[21].mxu0  ;;  %v2536_v16 = vadd.f32 %v5012_v20, %v3665_v15  ;;  %v3718_v4 = vld [vmem:[%s8050_s8 + $0x3c0] sm:$0xff]  ;;  %v3719_v20 = vld [vmem:[%s8050_s8 + $0x3c8] sm:$0xff] }
 0xdae   :  { %v2427_v17 = vadd.f32 %v3647_v2, %v2426_v6  ;;  %v2531_v24 = vadd.f32 %v3665_v15, %v2530_v7  ;;  %v3701_v2 = vld [vmem:[%s8049_s6 + $0x3c8] sm:$0xff]  ;;  %v5975_v6 = vpack.c.bf16 %v3719_v20, %v3718_v4  ;;  %v3702_v7 = vld [vmem:[%s8049_s6 + $0x3d0] sm:$0xff] }
 0xdaf   :  { %6163 = vtanh.f32 %v2432_v39  ;;  %v2540_v30 = vmul.f32 %v3609_v41, %v2536_v16  ;;  %v5943_v39 = vpack.c.bf16 %v3701_v2, %v3700_v1  ;;  %v3738_v1 = vld [vmem:[%s8046_s4 + $0x420] sm:$0xff]  ;;  %v3739_v2 = vld [vmem:[%s8046_s4 + $0x428] sm:$0xff]  ;;  %v3740_v20 = vld [vmem:[%s8046_s4 + $0x430] sm:$0xff] }
 0xdb0   :  { %6165 = vtanh.f32 %v2427_v17  ;;  %v2539_v31 = vmul.f32 %v3608_v57, %v2531_v24  ;;  %v3703_v17 = vld [vmem:[%s8049_s6 + $0x3d8] sm:$0xff]  ;;  %v5999_v4 = vpack.c.bf16 %v3739_v2, %v3738_v1  ;;  %v3774_v2 = vld [vmem:[%s8050_s8 + $0x410] sm:$0xff] }
 0xdb1   :  { %v3707_v24 = vld [vmem:[%s8049_s6 + $0x3f8] sm:$0xff] }
 0xdb2   :  { %v3757_v1 = vld [vmem:[%s8049_s6 + $0x418] sm:$0xff] }
 0xdb9   :  { %v6164_v8 = vpop.eup %6163 }
 0xdba   :  { %v6166_v19 = vpop.eup %6165  ;;  %v2438_v10 = vmul.f32 %v6164_v8, %v3609_v41  ;;  %v3720_v8 = vld [vmem:[%s8050_s8 + $0x3d0] sm:$0xff] }
 0xdbb   :  { %v2437_v11 = vmul.f32 %v6166_v19, %v3608_v57  ;;  %v5947_v19 = vpack.c.bf16 %v3703_v17, %v3702_v7  ;;  %v3742_v7 = vld [vmem:[%s8046_s4 + $0x440] sm:$0xff]  ;;  %v3743_v17 = vld [vmem:[%s8046_s4 + $0x448] sm:$0xff] }
 0xdbc   :  { %v2543_v59 = vmul.f32 1.442695, %v2438_v10  ;;  %v7680_v42 = vadd.f32 %v2438_v10, %v7483_v38 }
 0xdbd   :  { %v2541_v14 = vmul.f32 1.442695, %v2437_v11  ;;  %v7683_v62 = vadd.f32 %v2437_v11, %v7486_v45  ;;  %v3705_v11 = vld [vmem:[%s8049_s6 + $0x3e8] sm:$0xff] }
 0xdbe   :  { %6167 = vpow2.f32 %v2543_v59  ;;  %v3722_v59 = vld [vmem:[%s8050_s8 + $0x3e0] sm:$0xff] }
 0xdbf   :  { %6169 = vpow2.f32 %v2541_v14  ;;  %v3723_v14 = vld [vmem:[%s8050_s8 + $0x3e8] sm:$0xff] }
 0xdc0   :  { %v5983_v16 = vpack.c.bf16 %v3723_v14, %v3722_v59  ;;  %v3748_v14 = vld [vmem:[%s8046_s4 + $0x470] sm:$0xff] }
 0xdc8   :  { %v6168_v23 = vpop.eup %6167 }
 0xdc9   :  { %v6170_v25 = vpop.eup %6169  ;;  %v3667_v26 = vadd.f32 -1.0, %v6168_v23  ;;  %v3706_v23 = vld [vmem:[%s8049_s6 + $0x3f0] sm:$0xff] }
 0xdca   :  { %v3666_v29 = vadd.f32 -1.0, %v6170_v25  ;;  %v3724_v25 = vld [vmem:[%s8050_s8 + $0x3f0] sm:$0xff] }
 0xdcb   :  { %v2548_v38 = vmul.f32 %v3667_v26, %v7494_v22  ;;  %v3725_v26 = vld [vmem:[%s8050_s8 + $0x3f8] sm:$0xff] }
 0xdcc   :  { %v2547_v13 = vmul.f32 %v3666_v29, %v7502_v61  ;;  %v5955_v29 = vpack.c.bf16 %v3707_v24, %v3706_v23  ;;  %v3709_v23 = vld [vmem:[%s8053_s7 + $0x7] ss:$0 sm:$0xff] }
 0xdcd   :  { %v2550_v45 = vadd.f32 %v2548_v38, %v2540_v30  ;;  %v5987_v30 = vpack.c.bf16 %v3725_v26, %v3724_v25  ;;  %v3689_v38 = vld [vmem:[%s8051_s5 + $0x7] ss:$0 sm:$0xff] }
 0xdce   :  { %v2549_v32 = vadd.f32 %v2547_v13, %v2539_v31 }
 0xdcf   :  { %v2552_v40 = vmul.f32 %v3609_v41, %v2550_v45  ;;  %v3721_v41 = vld [vmem:[%s8050_s8 + $0x3d8] sm:$0xff] }
 0xdd0   :  { %v2551_v33 = vmul.f32 %v3608_v57, %v2549_v32  ;;  %v5979_v10 = vpack.c.bf16 %v3721_v41, %v3720_v8  ;;  %v3704_v57 = vld [vmem:[%s8049_s6 + $0x3e0] sm:$0xff]  ;;  %v6007_v8 = vpack.c.bf16 %v3743_v17, %v3742_v7  ;;  %v3744_v41 = vld [vmem:[%s8046_s4 + $0x450] sm:$0xff] }
 0xdd1   :  { %v7691_v34 = vadd.f32 %v2552_v40, %v7494_v22  ;;  %v5951_v15 = vpack.c.bf16 %v3705_v11, %v3704_v57  ;;  %v3746_v57 = vld [vmem:[%s8046_s4 + $0x460] sm:$0xff]  ;;  %v3747_v11 = vld [vmem:[%s8046_s4 + $0x468] sm:$0xff] }
 0xdd2   :  { %v7699_v35 = vadd.f32 %v2551_v33, %v7502_v61  ;;  %v3693_v61 = vld [vmem:[%s8049_s6 + $0x388] sm:$0xff]  ;;  %v6015_v59 = vpack.c.bf16 %v3747_v11, %v3746_v57  ;;  %v3761_v57 = vld [vmem:[%s8049_s6 + $0x438] sm:$0xff]  ;;  %v3778_v11 = vld [vmem:[%s8050_s8 + $0x430] sm:$0xff] }
 0xdd3   :  { %v2564_v22 = vmul.f32 %v7704_v21, %v7691_v34  ;;  %v5927_v37 = vpack.c.bf16 %v3693_v61, %v3692_v36 }
 0xdd4   :  { %v2563_v5 = vmul.f32 %v7696_v3, %v7699_v35 }
 0xdd5   :  { %5928 = vmatprep.subr.bf16.mxu0 %v5927_v37 }
 0xdd6   :  { %5045 = vmatprep.mubr.f32.mxu1 %v2563_v5  ;;  %5930 = vmatpush3.bf16.msra.mxu0 %v5927_v37 }
 0xdd7   :  { %5046 = vmatmul.mubr.f32.vlgmr.msra.gmra.mrb[20].mxu1 %v2564_v22  ;;  %5932 = vmatprep.subr.bf16.mxu0 %v5931_v50 }
 0xdd8   :  { %5962 = vmatpush3.bf16.msra.mxu1 %v5959_v9 }
 0xdd9   :  { %5964 = vmatprep.subr.bf16.mxu1 %v5963_v54 }
 0xdda   :  { %5934 = vmatpush3.bf16.msra.mxu0 %v5931_v50 }
 0xddb   :  { %5936 = vmatprep.subr.bf16.mxu0 %v5935_v58 }
 0xddc   :  { %5966 = vmatpush3.bf16.msra.mxu1 %v5963_v54 }
 0xddd   :  { %5968 = vmatprep.subr.bf16.mxu1 %v5967_v60 }
 0xdde   :  { %5938 = vmatpush3.bf16.msra.mxu0 %v5935_v58 }
 0xddf   :  { %5940 = vmatprep.subr.bf16.mxu0 %v5939_v43 }
 0xde0   :  { %5970 = vmatpush3.bf16.msra.mxu1 %v5967_v60 }
 0xde1   :  { %5972 = vmatprep.subr.bf16.mxu1 %v5971_v0 }
 0xde2   :  { %5942 = vmatpush3.bf16.msra.mxu0 %v5939_v43  ;;  %v3737_v43 = vld [vmem:[%s8046_s4 + $0x418] sm:$0xff] }
 0xde3   :  { %5944 = vmatprep.subr.bf16.mxu0 %v5943_v39 }
 0xde4   :  { %5974 = vmatpush3.bf16.msra.mxu1 %v5971_v0  ;;  %v5995_v0 = vpack.c.bf16 %v3737_v43, %v3736_v63  ;;  %v3773_v63 = vld [vmem:[%s8050_s8 + $0x408] sm:$0xff] }
 0xde5   :  { %5976 = vmatprep.subr.bf16.mxu1 %v5975_v6  ;;  %v6055_v43 = vpack.c.bf16 %v3773_v63, %v3772_v12 }
 0xde6   :  { %5946 = vmatpush3.bf16.msra.mxu0 %v5943_v39  ;;  %v3741_v39 = vld [vmem:[%s8046_s4 + $0x438] sm:$0xff] }
 0xde7   :  { %5948 = vmatprep.subr.bf16.mxu0 %v5947_v19 }
 0xde8   :  { %5978 = vmatpush3.bf16.msra.mxu1 %v5975_v6  ;;  %v6003_v6 = vpack.c.bf16 %v3741_v39, %v3740_v20  ;;  %v3775_v20 = vld [vmem:[%s8050_s8 + $0x418] sm:$0xff]  ;;  %v3758_v39 = vld [vmem:[%s8049_s6 + $0x420] sm:$0xff] }
 0xde9   :  { %5980 = vmatprep.subr.bf16.mxu1 %v5979_v10  ;;  %v6059_v7 = vpack.c.bf16 %v3775_v20, %v3774_v2  ;;  %v3753_v20 = vld [vmem:[%s8052_s3 + $0x11] sm:$0x1] }
 0xdea   :  { %5950 = vmatpush3.bf16.msra.mxu0 %v5947_v19  ;;  %v3745_v19 = vld [vmem:[%s8046_s4 + $0x458] sm:$0xff] }
 0xdeb   :  { %5952 = vmatprep.subr.bf16.mxu0 %v5951_v15 }
 0xdec   :  { %5982 = vmatpush3.bf16.msra.mxu1 %v5979_v10  ;;  %v6011_v10 = vpack.c.bf16 %v3745_v19, %v3744_v41  ;;  %v3777_v41 = vld [vmem:[%s8050_s8 + $0x428] sm:$0xff] }
 0xded   :  { %5984 = vmatprep.subr.bf16.mxu1 %v5983_v16 }
 0xdee   :  { %5954 = vmatpush3.bf16.msra.mxu0 %v5951_v15  ;;  %v3749_v15 = vld [vmem:[%s8046_s4 + $0x478] sm:$0xff] }
 0xdef   :  { %5956 = vmatprep.subr.bf16.mxu0 %v5955_v29 }
 0xdf0   :  { %5986 = vmatpush3.bf16.msra.mxu1 %v5983_v16  ;;  %v6019_v16 = vpack.c.bf16 %v3749_v15, %v3748_v14 }
 0xdf1   :  { %5988 = vmatprep.subr.bf16.mxu1 %v5987_v30 }
 0xdf2   :  { %5958 = vmatpush3.bf16.msra.mxu0 %v5955_v29 }
 0xdf3   :  { %5992 = vmatprep.subr.bf16.mxu0 %v5991_v56 }
 0xdf4   :  { %5990 = vmatpush3.bf16.msra.mxu1 %v5987_v30 }
 0xeaa   :  { %v5047_v31 = vpop.f32.mrb[20].mxu1 }
 0xeab   :  { %v2662_v13 = vadd.f32 %v5047_v31, %v3689_v38  ;;  %v2656_v45 = vpop.f32.mrb[21].mxu1 }
 0xeac   :  { %v2657_v32 = vadd.f32 %v3689_v38, %v2656_v45 }
 0xead   :  { %6171 = vtanh.f32 %v2662_v13  ;;  %v3671_v13 = vld [vmem:[%s8054_s2 + $0x78] sm:$0xff] }
 0xeae   :  { %6173 = vtanh.f32 %v2657_v32 }
 0xeb7   :  { %v6172_v40 = vpop.eup %6171 }
 0xeb8   :  { %v6174_v33 = vpop.eup %6173  ;;  %v2668_v5 = vmul.f32 %v6172_v40, %v7704_v21  ;;  %v3690_v21 = vld [vmem:[%s8052_s3 + $0xe] sm:$0x1]  ;;  %v3670_v40 = vld [vmem:[%s8054_s2 + $0x70] sm:$0xff] }
 0xeb9   :  { %v2667_v22 = vmul.f32 %v6174_v33, %v7696_v3 }
 0xeba   :  { %v2675_v36 = vrot.slane %v2668_v5, 4 }
 0xebb   :  { %v2669_v61 = vrot.slane %v2667_v22, 4 }
 0xebc   :  { %v2676_v18 = vadd.f32 %v2675_v36, %v2668_v5 }
 0xebd   :  { %v2670_v37 = vadd.f32 %v2669_v61, %v2667_v22 }
 0xebe   :  { %v2677_v46 = vrot.slane %v2676_v18, 2 }
 0xebf   :  { %v2671_v9 = vrot.slane %v2670_v37, 2 }
 0xec0   :  { %v2678_v47 = vadd.f32 %v2677_v46, %v2676_v18  ;;  %v3727_v18 = vld [vmem:[%s8055_s9 + $0x7] ss:$0 sm:$0xff] }
 0xec1   :  { %v2672_v48 = vadd.f32 %v2671_v9, %v2670_v37 }
 0xec2   :  { %v2679_v49 = vrot.slane %v2678_v47, 1 }
 0xec3   :  { %v2673_v50 = vrot.slane %v2672_v48, 1 }
 0xec4   :  { %v2680_v52 = vadd.f32 %v2679_v49, %v2678_v47 }
 0xec5   :  { %v2674_v3 = vadd.f32 %v2673_v50, %v2672_v48 }
 0xec6   :  { %v2685_v53 = vmul.f32 %v3691_v51, %v2680_v52 }
 0xec7   :  { %v2684_v54 = vmul.f32 %v3690_v21, %v2674_v3 }
 0xec8   :  { %v2693_v58 = vrot.slane %v2685_v53, %v6434_v28 }
 0xec9   :  { %v2689_v55 = vrot.slane %v2684_v54, %v6434_v28 }
 0xeca   :  { %v2695_v60 = vadd.f32 %v2693_v58, %v2668_v5  ;;  %v7893_v58 = vld [vmem:[%s8048_s1 + $0x80] sm:$0xff] }
 0xecb   :  { %v2694_v27 = vadd.f32 %v2689_v55, %v2667_v22 }
 0xecd   :  { %5080 = vmatprep.mubr.f32.mxu0 %v2694_v27  ;;  %5115 = vmatprep.mubr.f32.mxu1 %v2694_v27  ;;  %v7901_v27 = vld [vmem:[%s8048_s1 + $0x88] sm:$0xff] }
 0xece   :  { %5081 = vmatmul.mubr.f32.vlgmr.msra.gmra.mrb[22].mxu0 %v2695_v60  ;;  %5116 = vmatmul.mubr.f32.vlgmr.msra.gmra.mrb[22].mxu1 %v2695_v60 }
 0xecf   :  { %5994 = vmatpush3.bf16.msra.mxu0 %v5991_v56 }
 0xed0   :  { %5996 = vmatprep.subr.bf16.mxu0 %v5995_v0 }
 0xed3   :  { %5998 = vmatpush3.bf16.msra.mxu0 %v5995_v0  ;;  %v3756_v0 = vld [vmem:[%s8049_s6 + $0x410] sm:$0xff] }
 0xed4   :  { %6000 = vmatprep.subr.bf16.mxu0 %v5999_v4 }
 0xed7   :  { %6002 = vmatpush3.bf16.msra.mxu0 %v5999_v4  ;;  %v6027_v4 = vpack.c.bf16 %v3757_v1, %v3756_v0 }
 0xed8   :  { %6004 = vmatprep.subr.bf16.mxu0 %v6003_v6 }
 0xedb   :  { %6006 = vmatpush3.bf16.msra.mxu0 %v6003_v6  ;;  %v3759_v6 = vld [vmem:[%s8049_s6 + $0x428] sm:$0xff] }
 0xedc   :  { %6008 = vmatprep.subr.bf16.mxu0 %v6007_v8  ;;  %v6031_v17 = vpack.c.bf16 %v3759_v6, %v3758_v39 }
 0xedf   :  { %6010 = vmatpush3.bf16.msra.mxu0 %v6007_v8  ;;  %v3776_v8 = vld [vmem:[%s8050_s8 + $0x420] sm:$0xff] }
 0xee0   :  { %6012 = vmatprep.subr.bf16.mxu0 %v6011_v10  ;;  %v6063_v19 = vpack.c.bf16 %v3777_v41, %v3776_v8 }
 0xee3   :  { %6014 = vmatpush3.bf16.msra.mxu0 %v6011_v10  ;;  %v3760_v10 = vld [vmem:[%s8049_s6 + $0x430] sm:$0xff] }
 0xee4   :  { %6016 = vmatprep.subr.bf16.mxu0 %v6015_v59  ;;  %v6035_v14 = vpack.c.bf16 %v3761_v57, %v3760_v10  ;;  %v3771_v10 = vld [vmem:[%s8053_s7 + $0x8] ss:$0 sm:$0xff] }
 0xee7   :  { %6018 = vmatpush3.bf16.msra.mxu0 %v6015_v59  ;;  %v3779_v59 = vld [vmem:[%s8050_s8 + $0x438] sm:$0xff] }
 0xee8   :  { %6020 = vmatprep.subr.bf16.mxu0 %v6019_v16  ;;  %v6067_v15 = vpack.c.bf16 %v3779_v59, %v3778_v11 }
 0xeeb   :  { %6022 = vmatpush3.bf16.msra.mxu0 %v6019_v16  ;;  %v3762_v16 = vld [vmem:[%s8049_s6 + $0x440] sm:$0xff] }
 0xeec   :  { %6056 = vmatprep.subr.bf16.mxu0 %v6055_v43 }
 0xfa1   :  { %v5082_v24 = vpop.f32.mrb[22].mxu0  ;;  %v5117_v25 = vpop.f32.mrb[22].mxu1 }
 0xfa2   :  { %v2793_v26 = vadd.f32 %v5082_v24, %v3709_v23  ;;  %v2787_v29 = vpop.f32.mrb[23].mxu0  ;;  %v2891_v30 = vpop.f32.mrb[23].mxu1  ;;  %v2897_v37 = vadd.f32 %v5117_v25, %v3727_v18  ;;  %v3780_v24 = vld [vmem:[%s8050_s8 + $0x440] sm:$0xff]  ;;  %v3781_v25 = vld [vmem:[%s8050_s8 + $0x448] sm:$0xff] }
 0xfa3   :  { %v2788_v38 = vadd.f32 %v3709_v23, %v2787_v29  ;;  %v2892_v9 = vadd.f32 %v3727_v18, %v2891_v30  ;;  %v3763_v23 = vld [vmem:[%s8049_s6 + $0x448] sm:$0xff]  ;;  %v6071_v29 = vpack.c.bf16 %v3781_v25, %v3780_v24  ;;  %v3764_v30 = vld [vmem:[%s8049_s6 + $0x450] sm:$0xff] }
 0xfa4   :  { %6175 = vtanh.f32 %v2793_v26  ;;  %v2901_v50 = vmul.f32 %v3671_v13, %v2897_v37  ;;  %v6039_v26 = vpack.c.bf16 %v3763_v23, %v3762_v16 }
 0xfa5   :  { %6177 = vtanh.f32 %v2788_v38  ;;  %v2900_v51 = vmul.f32 %v3670_v40, %v2892_v9  ;;  %v3765_v38 = vld [vmem:[%s8049_s6 + $0x458] sm:$0xff] }
 0xfa6   :  { %v3769_v9 = vld [vmem:[%s8049_s6 + $0x478] sm:$0xff] }
 0xfae   :  { %v6176_v31 = vpop.eup %6175 }
 0xfaf   :  { %v6178_v45 = vpop.eup %6177  ;;  %v2799_v32 = vmul.f32 %v6176_v31, %v3671_v13  ;;  %v3782_v31 = vld [vmem:[%s8050_s8 + $0x450] sm:$0xff] }
 0xfb0   :  { %v2798_v33 = vmul.f32 %v6178_v45, %v3670_v40  ;;  %v6043_v45 = vpack.c.bf16 %v3765_v38, %v3764_v30 }
 0xfb1   :  { %v2904_v5 = vmul.f32 1.442695, %v2799_v32  ;;  %v7877_v22 = vadd.f32 %v2799_v32, %v7680_v42 }
 0xfb2   :  { %v2902_v36 = vmul.f32 1.442695, %v2798_v33  ;;  %v7880_v61 = vadd.f32 %v2798_v33, %v7683_v62  ;;  %v3767_v33 = vld [vmem:[%s8049_s6 + $0x468] sm:$0xff] }
 0xfb3   :  { %6179 = vpow2.f32 %v2904_v5  ;;  %v3784_v5 = vld [vmem:[%s8050_s8 + $0x460] sm:$0xff] }
 0xfb4   :  { %6181 = vpow2.f32 %v2902_v36  ;;  %v3785_v36 = vld [vmem:[%s8050_s8 + $0x468] sm:$0xff] }
 0xfb5   :  { %v6079_v37 = vpack.c.bf16 %v3785_v36, %v3784_v5 }
 0xfbd   :  { %v6180_v46 = vpop.eup %6179 }
 0xfbe   :  { %v6182_v47 = vpop.eup %6181  ;;  %v3729_v48 = vadd.f32 -1.0, %v6180_v46  ;;  %v3768_v46 = vld [vmem:[%s8049_s6 + $0x470] sm:$0xff] }
 0xfbf   :  { %v3728_v49 = vadd.f32 -1.0, %v6182_v47  ;;  %v3786_v47 = vld [vmem:[%s8050_s8 + $0x470] sm:$0xff] }
 0xfc0   :  { %v2909_v42 = vmul.f32 %v3729_v48, %v7691_v34  ;;  %v3787_v48 = vld [vmem:[%s8050_s8 + $0x478] sm:$0xff] }
 0xfc1   :  { %v2908_v21 = vmul.f32 %v3728_v49, %v7699_v35  ;;  %v6051_v49 = vpack.c.bf16 %v3769_v9, %v3768_v46 }
 0xfc2   :  { %v2911_v62 = vadd.f32 %v2909_v42, %v2901_v50  ;;  %v6083_v50 = vpack.c.bf16 %v3787_v48, %v3786_v47  ;;  %v3751_v42 = vld [vmem:[%s8051_s5 + $0x8] ss:$0 sm:$0xff] }
 0xfc3   :  { %v2910_v52 = vadd.f32 %v2908_v21, %v2900_v51 }
 0xfc4   :  { %v2913_v3 = vmul.f32 %v3671_v13, %v2911_v62  ;;  %v3783_v13 = vld [vmem:[%s8050_s8 + $0x458] sm:$0xff] }
 0xfc5   :  { %v2912_v53 = vmul.f32 %v3670_v40, %v2910_v52  ;;  %v6075_v32 = vpack.c.bf16 %v3783_v13, %v3782_v31  ;;  %v3766_v40 = vld [vmem:[%s8049_s6 + $0x460] sm:$0xff] }
 0xfc6   :  { %v7888_v54 = vadd.f32 %v2913_v3, %v7691_v34  ;;  %v6047_v18 = vpack.c.bf16 %v3767_v33, %v3766_v40 }
 0xfc7   :  { %v7896_v55 = vadd.f32 %v2912_v53, %v7699_v35  ;;  %v3755_v35 = vld [vmem:[%s8049_s6 + $0x408] sm:$0xff] }
 0xfc8   :  { %v2925_v34 = vmul.f32 %v7901_v27, %v7888_v54  ;;  %v6023_v56 = vpack.c.bf16 %v3755_v35, %v3754_v44 }
 0xfc9   :  { %v2924_v60 = vmul.f32 %v7893_v58, %v7896_v55 }
 0xfca   :  { %6024 = vmatprep.subr.bf16.mxu1 %v6023_v56 }
 0xfcb   :  { %5150 = vmatprep.mubr.f32.mxu0 %v2924_v60  ;;  %6026 = vmatpush3.bf16.msra.mxu1 %v6023_v56 }
 0xfcc   :  { %5151 = vmatmul.mubr.f32.vlgmr.msra.gmra.mrb[24].mxu0 %v2925_v34  ;;  %6028 = vmatprep.subr.bf16.mxu1 %v6027_v4 }
 0xfcd   :  { %6058 = vmatpush3.bf16.msra.mxu0 %v6055_v43 }
 0xfce   :  { %6060 = vmatprep.subr.bf16.mxu0 %v6059_v7 }
 0xfcf   :  { %6030 = vmatpush3.bf16.msra.mxu1 %v6027_v4 }
 0xfd0   :  { %6032 = vmatprep.subr.bf16.mxu1 %v6031_v17 }
 0xfd1   :  { %6062 = vmatpush3.bf16.msra.mxu0 %v6059_v7 }
 0xfd2   :  { %6064 = vmatprep.subr.bf16.mxu0 %v6063_v19 }
 0xfd3   :  { %6034 = vmatpush3.bf16.msra.mxu1 %v6031_v17 }
 0xfd4   :  { %6036 = vmatprep.subr.bf16.mxu1 %v6035_v14 }
 0xfd5   :  { %6066 = vmatpush3.bf16.msra.mxu0 %v6063_v19 }
 0xfd6   :  { %6068 = vmatprep.subr.bf16.mxu0 %v6067_v15 }
 0xfd7   :  { %6038 = vmatpush3.bf16.msra.mxu1 %v6035_v14 }
 0xfd8   :  { %6040 = vmatprep.subr.bf16.mxu1 %v6039_v26 }
 0xfd9   :  { %6070 = vmatpush3.bf16.msra.mxu0 %v6067_v15 }
 0xfda   :  { %6072 = vmatprep.subr.bf16.mxu0 %v6071_v29 }
 0xfdb   :  { %6042 = vmatpush3.bf16.msra.mxu1 %v6039_v26  ;;  %v3732_v26 = vld [vmem:[%s8054_s2 + $0x80] sm:$0xff] }
 0xfdc   :  { %6044 = vmatprep.subr.bf16.mxu1 %v6043_v45 }
 0xfdd   :  { %6074 = vmatpush3.bf16.msra.mxu0 %v6071_v29 }
 0xfde   :  { %6076 = vmatprep.subr.bf16.mxu0 %v6075_v32 }
 0xfdf   :  { %6046 = vmatpush3.bf16.msra.mxu1 %v6043_v45  ;;  %v3789_v45 = vld [vmem:[%s8055_s9 + $0x8] ss:$0 sm:$0xff] }
 0xfe0   :  { %6048 = vmatprep.subr.bf16.mxu1 %v6047_v18 }
 0xfe1   :  { %6078 = vmatpush3.bf16.msra.mxu0 %v6075_v32 }
 0xfe2   :  { %6080 = vmatprep.subr.bf16.mxu0 %v6079_v37 }
 0xfe3   :  { %6050 = vmatpush3.bf16.msra.mxu1 %v6047_v18 }
 0xfe4   :  { %6052 = vmatprep.subr.bf16.mxu1 %v6051_v49 }
 0xfe5   :  { %6082 = vmatpush3.bf16.msra.mxu0 %v6079_v37 }
 0xfe6   :  { %6084 = vmatprep.subr.bf16.mxu0 %v6083_v50 }
 0xfe7   :  { %6054 = vmatpush3.bf16.msra.mxu1 %v6051_v49 }
 0xfe9   :  { %6086 = vmatpush3.bf16.msra.mxu0 %v6083_v50 }
0x109f   :  { %v5152_v51 = vpop.f32.mrb[24].mxu0 }
0x10a0   :  { %v3023_v21 = vadd.f32 %v5152_v51, %v3751_v42  ;;  %v3017_v62 = vpop.f32.mrb[25].mxu0 }
0x10a1   :  { %v3018_v52 = vadd.f32 %v3751_v42, %v3017_v62 }
0x10a2   :  { %6183 = vtanh.f32 %v3023_v21 }
0x10a3   :  { %6185 = vtanh.f32 %v3018_v52 }
0x10ac   :  { %v6184_v3 = vpop.eup %6183 }
0x10ad   :  { %v6186_v53 = vpop.eup %6185  ;;  %v3029_v60 = vmul.f32 %v6184_v3, %v7901_v27  ;;  %v3752_v27 = vld [vmem:[%s8052_s3 + $0x10] sm:$0x1] }
0x10ae   :  { %v3028_v34 = vmul.f32 %v6186_v53, %v7893_v58 }
0x10af   :  { %v3036_v44 = vrot.slane %v3029_v60, 4 }
0x10b0   :  { %v3030_v35 = vrot.slane %v3028_v34, 4 }
0x10b1   :  { %v3037_v12 = vadd.f32 %v3036_v44, %v3029_v60 }
0x10b2   :  { %v3031_v56 = vadd.f32 %v3030_v35, %v3028_v34 }
0x10b3   :  { %v3038_v63 = vrot.slane %v3037_v12, 2 }
0x10b4   :  { %v3032_v43 = vrot.slane %v3031_v56, 2 }
0x10b5   :  { %v3039_v0 = vadd.f32 %v3038_v63, %v3037_v12 }
0x10b6   :  { %v3033_v1 = vadd.f32 %v3032_v43, %v3031_v56 }
0x10b7   :  { %v3040_v2 = vrot.slane %v3039_v0, 1 }
0x10b8   :  { %v3034_v4 = vrot.slane %v3033_v1, 1 }
0x10b9   :  { %v3041_v39 = vadd.f32 %v3040_v2, %v3039_v0 }
0x10ba   :  { %v3035_v58 = vadd.f32 %v3034_v4, %v3033_v1 }
0x10bb   :  { %v3046_v6 = vmul.f32 %v3753_v20, %v3041_v39 }
0x10bc   :  { %v3045_v7 = vmul.f32 %v3752_v27, %v3035_v58 }
0x10bd   :  { %v3054_v17 = vrot.slane %v3046_v6, %v6434_v28 }
0x10be   :  { %v3050_v8 = vrot.slane %v3045_v7, %v6434_v28  ;;  %v3733_v28 = vld [vmem:[%s8054_s2 + $0x88] sm:$0xff] }
0x10bf   :  { %v3056_v19 = vadd.f32 %v3054_v17, %v3029_v60 }
0x10c0   :  { %v3055_v41 = vadd.f32 %v3050_v8, %v3028_v34 }
0x10c2   :  { %5185 = vmatprep.mubr.f32.mxu1 %v3055_v41  ;;  %5220 = vmatprep.mubr.f32.mxu0 %v3055_v41 }
0x10c3   :  { %5186 = vmatmul.mubr.f32.vlgmr.msra.gmra.mrb[24].mxu1 %v3056_v19  ;;  %5221 = vmatmul.mubr.f32.vlgmr.msra.gmra.mrb[26].mxu0 %v3056_v19 }
0x1196   :  { %v5187_v57 = vpop.f32.mrb[24].mxu1  ;;  %v5222_v11 = vpop.f32.mrb[26].mxu0 }
0x1197   :  { %v3154_v59 = vadd.f32 %v5187_v57, %v3771_v10  ;;  %v3148_v14 = vpop.f32.mrb[25].mxu1  ;;  %v3252_v15 = vpop.f32.mrb[27].mxu0  ;;  %v3258_v32 = vadd.f32 %v5222_v11, %v3789_v45 }
0x1198   :  { %v3149_v16 = vadd.f32 %v3771_v10, %v3148_v14 }
0x1199   :  { %6187 = vtanh.f32 %v3154_v59  ;;  %v3262_v36 = vmul.f32 %v3733_v28, %v3258_v32 }
0x119a   :  { %6189 = vtanh.f32 %v3149_v16 }
0x11a3   :  { %v6188_v23 = vpop.eup %6187 }
0x11a4   :  { %v6190_v24 = vpop.eup %6189  ;;  %v3160_v25 = vmul.f32 %v6188_v23, %v3733_v28 }
0x11a5   :  { %v3159_v29 = vmul.f32 %v6190_v24, %v3732_v26 }
0x11a6   :  { %v3265_v30 = vmul.f32 1.442695, %v3160_v25  ;;  %v3278_v38 = vadd.f32 %v3160_v25, %v7877_v22  ;;  %v3253_v22 = vadd.f32 %v3789_v45, %v3252_v15 }
0x11a7   :  { %v3263_v31 = vmul.f32 1.442695, %v3159_v29  ;;  %v3277_v13 = vadd.f32 %v3159_v29, %v7880_v61 }
0x11a8   :  { %6191 = vpow2.f32 %v3265_v30  ;;  %3282 = vst [vmem:[%s8056_s11 + $0x8] sm:$0xff] %v3278_v38  ;;  %v3261_v37 = vmul.f32 %v3732_v26, %v3253_v22 }
0x11a9   :  { %6193 = vpow2.f32 %v3263_v31  ;;  %3281 = vst [vmem:[%s8056_s11] sm:$0xff] %v3277_v13 }
0x11b2   :  { %v6192_v40 = vpop.eup %6191 }
0x11b3   :  { %v6194_v33 = vpop.eup %6193  ;;  %v3791_v5 = vadd.f32 -1.0, %v6192_v40 }
0x11b4   :  { %v3790_v61 = vadd.f32 -1.0, %v6194_v33 }
0x11b5   :  { %v3270_v18 = vmul.f32 %v3791_v5, %v7888_v54 }
0x11b6   :  { %v3269_v46 = vmul.f32 %v3790_v61, %v7896_v55 }
0x11b7   :  { %v3272_v9 = vadd.f32 %v3270_v18, %v3262_v36 }
0x11b8   :  { %v3271_v47 = vadd.f32 %v3269_v46, %v3261_v37 }
0x11b9   :  { %v3274_v48 = vmul.f32 %v3733_v28, %v3272_v9 }
0x11ba   :  { %v3273_v49 = vmul.f32 %v3732_v26, %v3271_v47 }
0x11bb   :  { %v3276_v50 = vadd.f32 %v3274_v48, %v7888_v54 }
0x11bc   :  { %v3275_v42 = vadd.f32 %v3273_v49, %v7896_v55 }
0x11bd   :  { %3280 = vst [vmem:[%s8057_s10 + $0x8] sm:$0xff] %v3276_v50 }
0x11be   :  { %3279 = vst [vmem:[%s8057_s10] sm:$0xff] %v3275_v42 }

</bundles_post_ra>
